<compile_context>
chip_gen: v6e
topology: v6e:2x2x1
jax: 0.10.0
libtpu: 0.0.40
codegen_flags: <defaults>
</compile_context>

<pallas_src>
import jax
import jax.numpy as jnp
from jax.experimental import pallas as pl
from jax.experimental.pallas import tpu as pltpu

LRELU_SLOPE = 0.2
BN_EPS = 1e-5
VMEM_LIMIT_BYTES = 32 * 1024 * 1024   # safe per-TensorCore on v5e/v6e/v7x


def _round_up(x, m):
    return ((x + m - 1) // m) * m


# ----------------------------------------------------------------------------
# Pallas kernels
# ----------------------------------------------------------------------------
def _conv_block_kernel(x_ref, w_ref, scale_ref, shift_ref, o_ref):
    """One (image, row-block) tile of Conv(k=4,s=2,p=1) -> BN affine -> LeakyReLU.

    x_ref : (tr+1, wo_pad+1, 4*cin_p)  space-to-depth input cells (+1 halo row/col)
    w_ref : (16*cin_p, cout)           weights ordered (dh, dw, sub_h, sub_w, cin)
    o_ref : (tr*wo_pad, cout)
    """
    trp1, wcp1, c4 = x_ref.shape
    tr, wo = trp1 - 1, wcp1 - 1

    acc = None
    for idx, (dh, dw) in enumerate(((0, 0), (0, 1), (1, 0), (1, 1))):
        slab = x_ref[pl.ds(dh, tr), pl.ds(dw, wo), :]          # (tr, wo, c4)
        slab = slab.reshape(tr * wo, c4)                       # wo % 8 == 0
        part = jnp.dot(slab, w_ref[pl.ds(idx * c4, c4), :],
                       preferred_element_type=jnp.float32)
        acc = part if acc is None else acc + part

    y = acc * scale_ref[...] + shift_ref[...]
    y = jnp.where(y >= 0.0, y, LRELU_SLOPE * y)
    o_ref[...] = y.astype(o_ref.dtype)
    # Dropout2d(0.25) is identity in inference mode (no-op here).


def _head_kernel(x_ref, w1_ref, b1_ref, w2_ref, o_ref, acc_ref):
    """adv_layer: K-tiled fc1 -> bias -> LeakyReLU -> elementwise fc2 products.

    Grid is (hidden_half, K_tile); the tiny 512-wide sum + fc2 bias + sigmoid
    run in JAX outside the kernel.
    """
    k = pl.program_id(1)

    @pl.when(k == 0)
    def _():
        acc_ref[...] = jnp.zeros_like(acc_ref)

    acc_ref[...] += jnp.dot(x_ref[...], w1_ref[...],
                            preferred_element_type=jnp.float32)

    @pl.when(k == pl.num_programs(1) - 1)
    def _():
        h = acc_ref[...] + b1_ref[...]
        h = jnp.where(h >= 0.0, h, LRELU_SLOPE * h)
        # fc2 as a VPU elementwise product (avoids an N=1 MXU matmul).
        o_ref[...] = h * w2_ref[...]


# ----------------------------------------------------------------------------
# Conv block wrapper (space-to-depth glue + tiled Pallas conv kernel)
# ----------------------------------------------------------------------------
def conv_block(x_nhwc, w, b, bn=None, *, target_px=2048):
    """Conv2d(4, stride 2, pad 1) -> [BatchNorm2d] -> LeakyReLU(0.2) -> Dropout(eval).

    x_nhwc : (N, H, W, >=Cin) activations, channels-last
    w      : (Cout, Cin, 4, 4) PyTorch conv weight layout
    b      : (Cout,)
    bn     : optional dict(gamma, beta, mean, var) — eval-mode running stats
    """
    cout, cin = int(w.shape[0]), int(w.shape[1])
    n, h, wd = int(x_nhwc.shape[0]), int(x_nhwc.shape[1]), int(x_nhwc.shape[2])
    ho, wo = h // 2, wd // 2
    wo_pad = _round_up(wo, 8)

    # Balanced row-tile: as many output rows as target_px allows, then rebalance
    # so the padded row count wastes at most one partial block.
    tr = max(1, min(ho, target_px // wo_pad))
    nrb = -(-ho // tr)
    tr = -(-ho // nrb)
    ho_pad = nrb * tr

    cin_p = _round_up(cin, 8)
    c4 = 4 * cin_p
    K = 16 * cin_p

    # ---- JAX glue: channel slice/pad + spatial pad + space-to-depth + halo ----
    x = x_nhwc[..., :cin].astype(jnp.bfloat16)
    hp, wp = 2 * ho_pad + 2, 2 * wo_pad + 2
    x = jnp.pad(x, ((0, 0), (1, hp - 1 - h), (1, wp - 1 - wd),
                    (0, cin_p - cin)))
    hc, wc = ho_pad + 1, wo_pad + 1
    xs2d = x.reshape(n, hc, 2, wc, 2, cin_p)
    xs2d = xs2d.transpose(0, 1, 3, 2, 4, 5).reshape(n, hc, wc, c4)
    if nrb == 1:
        xhal = xs2d[:, None]                                   # (n,1,tr+1,wc,c4)
    else:
        idx = tr * jnp.arange(nrb)[:, None] + jnp.arange(tr + 1)[None, :]
        xhal = xs2d[:, idx]                                    # (n,nrb,tr+1,wc,c4)

    # ---- weights reordered to the (dh, dw, sub_h, sub_w, cin) patch order ----
    wr = jnp.transpose(w, (2, 3, 1, 0))                        # (kh, kw, cin, cout)
    wr = jnp.pad(wr, ((0, 0), (0, 0), (0, cin_p - cin), (0, 0)))
    wr = wr.reshape(2, 2, 2, 2, cin_p, cout)                   # (dh, sr, dw, sc, c, o)
    wr = jnp.transpose(wr, (0, 2, 1, 3, 4, 5))                 # (dh, dw, sr, sc, c, o)
    wmat = wr.reshape(K, cout).astype(jnp.bfloat16)

    # ---- conv bias + eval BatchNorm folded into per-channel scale / shift ----
    if bn is not None:
        scale = bn["gamma"] / jnp.sqrt(bn["var"] + BN_EPS)
        shift = (b - bn["mean"]) * scale + bn["beta"]
    else:
        scale = jnp.ones((cout,), jnp.float32)
        shift = b.astype(jnp.float32)
    scale = scale.astype(jnp.float32).reshape(1, cout)
    shift = shift.astype(jnp.float32).reshape(1, cout)

    tm_px = tr * wo_pad
    m_pad = n * nrb * tm_px

    cost = pl.CostEstimate(
        flops=2 * m_pad * K * cout,
        transcendentals=0,
        bytes_accessed=2 * xhal.size + 2 * wmat.size + 2 * m_pad * cout
        + 8 * cout)

    out = pl.pallas_call(
        _conv_block_kernel,
        out_shape=jax.ShapeDtypeStruct((m_pad, cout), jnp.bfloat16),
        grid=(n, nrb),
        in_specs=[
            pl.BlockSpec((None, None, tr + 1, wc, c4),
                         lambda i, r: (i, r, 0, 0, 0)),
            pl.BlockSpec((K, cout), lambda i, r: (0, 0)),
            pl.BlockSpec((1, cout), lambda i, r: (0, 0)),
            pl.BlockSpec((1, cout), lambda i, r: (0, 0)),
        ],
        out_specs=pl.BlockSpec((tm_px, cout), lambda i, r: (i * nrb + r, 0)),
        compiler_params=pltpu.CompilerParams(
            dimension_semantics=("parallel", "parallel"),
            vmem_limit_bytes=VMEM_LIMIT_BYTES),
        cost_estimate=cost,
    )(xhal, wmat, scale, shift)

    return out.reshape(n, ho_pad, wo_pad, cout)[:, :ho, :wo, :]


# ----------------------------------------------------------------------------
# adv_layer wrapper (K-tiled fc1 reduction, hidden dim split across 2 cores)
# ----------------------------------------------------------------------------
def adv_head(feat, w1, b1, w2, b2, *, tk=2048, hdim_splits=2):
    n, fc_in = int(feat.shape[0]), int(feat.shape[1])
    hdim = int(w1.shape[1])
    hchunk = hdim // hdim_splits

    tk_eff = min(tk, _round_up(fc_in, 256))
    fc_pad = _round_up(fc_in, tk_eff)
    if fc_pad != fc_in:
        feat = jnp.pad(feat, ((0, 0), (0, fc_pad - fc_in)))
        w1 = jnp.pad(w1, ((0, fc_pad - fc_in), (0, 0)))
    feat = feat.astype(jnp.bfloat16)
    w1 = w1.astype(jnp.bfloat16)
    b1 = b1.reshape(1, hdim).astype(jnp.float32)
    w2t = w2.reshape(1, hdim).astype(jnp.float32)
    grid_k = fc_pad // tk_eff

    prod = pl.pallas_call(
        _head_kernel,
        out_shape=jax.ShapeDtypeStruct((n, hdim), jnp.float32),
        grid=(hdim_splits, grid_k),
        in_specs=[
            pl.BlockSpec((n, tk_eff), lambda hh, k: (0, k)),
            pl.BlockSpec((tk_eff, hchunk), lambda hh, k: (k, hh)),
            pl.BlockSpec((1, hchunk), lambda hh, k: (0, hh)),
            pl.BlockSpec((1, hchunk), lambda hh, k: (0, hh)),
        ],
        out_specs=pl.BlockSpec((n, hchunk), lambda hh, k: (0, hh)),
        scratch_shapes=[pltpu.VMEM((n, hchunk), jnp.float32)],
        compiler_params=pltpu.CompilerParams(
            dimension_semantics=("parallel", "arbitrary"),
            vmem_limit_bytes=VMEM_LIMIT_BYTES),
    )(feat, w1, b1, w2t)

    # Tiny epilogue in JAX: 512-wide sum per sample + fc2 bias + sigmoid.
    logit = jnp.sum(prod, axis=-1, keepdims=True) + b2.reshape(1, 1)
    return jax.nn.sigmoid(logit)


# ----------------------------------------------------------------------------
# Full forward pass
# ----------------------------------------------------------------------------
@jax.jit
def discriminator_forward(img_nchw, params):
    # bf16 cast fused into the NCHW -> NHWC transpose (channels-last layout).
    x = jnp.transpose(img_nchw.astype(jnp.bfloat16), (0, 2, 3, 1))

    x = conv_block(x, params["w1"], params["b1"], bn=None, target_px=4096)           # 3   -> 32
    x = conv_block(x, params["w2"], params["b2"], bn=params["bn2"], target_px=4096)  # 32  -> 64
    x = conv_block(x, params["w3"], params["b3"], bn=params["bn3"], target_px=2048)  # 64  -> 128
    x = conv_block(x, params["w4"], params["b4"], bn=params["bn4"], target_px=1024)  # 128 -> 256

    # Flatten in NHWC order; fc1_w rows were permuted once at param construction
    # so this matches torch.nn.Flatten's (C, H, W) semantics without an extra
    # HBM transpose here.
    n = x.shape[0]
    feat = x.reshape(n, -1)

    return adv_head(feat, params["fc1_w"], params["fc1_b"],
                    params["fc2_w"], params["fc2_b"])


# ----------------------------------------------------------------------------
# Deterministic parameter construction (synthetic weights, PyTorch shapes)
# ----------------------------------------------------------------------------
def make_params(key, img_height, img_width):
    ds_h, ds_w = img_height // 2 ** 4, img_width // 2 ** 4
    fc_in = 256 * ds_h * ds_w

    keys = jax.random.split(key, 12)

    def conv_w(k, cout, cin):
        fan_in = cin * 16
        return (jax.random.normal(k, (cout, cin, 4, 4), jnp.float32)
                / jnp.sqrt(jnp.float32(fan_in)))

    def bn(c):
        # PyTorch defaults for an untrained BatchNorm2d (eval mode).
        return dict(gamma=jnp.ones((c,), jnp.float32),
                    beta=jnp.zeros((c,), jnp.float32),
                    mean=jnp.zeros((c,), jnp.float32),
                    var=jnp.ones((c,), jnp.float32))

    # fc1 weight generated in PyTorch-equivalent (C,H,W)-flatten order, then
    # rows permuted once so the kernel can consume an NHWC flatten directly.
    fc1_w_chw = (jax.random.normal(keys[8], (fc_in, 512), jnp.float32)
                 / jnp.sqrt(jnp.float32(fc_in)))
    perm = jnp.arange(fc_in).reshape(256, ds_h, ds_w).transpose(1, 2, 0).reshape(-1)
    fc1_w_nhwc = fc1_w_chw[perm]

    params = {
        "w1": conv_w(keys[0], 32, 3),
        "b1": 0.01 * jax.random.normal(keys[1], (32,), jnp.float32),
        "w2": conv_w(keys[2], 64, 32),
        "b2": 0.01 * jax.random.normal(keys[3], (64,), jnp.float32),
        "bn2": bn(64),
        "w3": conv_w(keys[4], 128, 64),
        "b3": 0.01 * jax.random.normal(keys[5], (128,), jnp.float32),
        "bn3": bn(128),
        "w4": conv_w(keys[6], 256, 128),
        "b4": 0.01 * jax.random.normal(keys[7], (256,), jnp.float32),
        "bn4": bn(256),
        "fc1_w": fc1_w_nhwc,
        "fc1_b": 0.01 * jax.random.normal(keys[9], (1, 512), jnp.float32),
        "fc2_w": (jax.random.normal(keys[10], (512, 1), jnp.float32)
                  / jnp.sqrt(jnp.float32(512))),
        "fc2_b": 0.01 * jax.random.normal(keys[11], (1, 1), jnp.float32),
    }
    return params


if __name__ == "__main__":
    # Small shapes consistent with the module: 4 stride-2 convs need H, W % 16 == 0.
    batch, channels, img_height, img_width = 2, 3, 32, 32

    key = jax.random.PRNGKey(0)
    k_x, k_p = jax.random.split(key)
    img = jax.random.normal(k_x, (batch, channels, img_height, img_width),
                            jnp.float32)
    params = make_params(k_p, img_height, img_width)

    out = discriminator_forward(img, params)
    out = jax.block_until_ready(out)

    assert out.shape == (batch, 1), out.shape
    assert bool(jnp.all((out >= 0.0) & (out <= 1.0))), "sigmoid output out of range"
    print("KERNEL_OK")
</pallas_src>

<mosaic_0001>
module attributes {stable_mosaic.version = 11 : i64} {
  func.func @_conv_block_kernel(%arg0: i32, %arg1: i32, %arg2: memref<1x1x17x17x32xbf16, #tpu.memory_space<vmem>>, %arg3: memref<128x32xbf16, #tpu.memory_space<vmem>>, %arg4: memref<1x32xf32, #tpu.memory_space<vmem>>, %arg5: memref<1x32xf32, #tpu.memory_space<vmem>>, %arg6: memref<256x32xbf16, #tpu.memory_space<vmem>>) attributes {dimension_semantics = [#tpu.dimension_semantics<parallel>, #tpu.dimension_semantics<parallel>], iteration_bounds = array<i64: 2, 1>, scalar_prefetch = 0 : i64, scratch_operands = 0 : i64, tpu.core_type = #tpu.core_type<tc>, window_params = [{transform_indices = @transform_0, window_bounds = array<i64: 1, 1, 17, 17, 32>}, {pipeline_mode = #tpu.pipeline_mode<synchronous>, transform_indices = @transform_1, window_bounds = array<i64: 128, 32>}, {pipeline_mode = #tpu.pipeline_mode<synchronous>, transform_indices = @transform_2, window_bounds = array<i64: 1, 32>}, {pipeline_mode = #tpu.pipeline_mode<synchronous>, transform_indices = @transform_3, window_bounds = array<i64: 1, 32>}, {transform_indices = @transform_4, window_bounds = array<i64: 256, 32>}]} {
    %c0 = arith.constant 0 : index
    %c0_0 = arith.constant 0 : index
    %c0_1 = arith.constant 0 : index
    %c0_2 = arith.constant 0 : index
    %c0_3 = arith.constant 0 : index
    %0 = vector.load %arg2[%c0, %c0_0, %c0_1, %c0_2, %c0_3] : memref<1x1x17x17x32xbf16, #tpu.memory_space<vmem>>, vector<1x1x16x16x32xbf16>
    %1 = vector.shape_cast %0 : vector<1x1x16x16x32xbf16> to vector<16x16x32xbf16>
    %2 = vector.shape_cast %1 : vector<16x16x32xbf16> to vector<256x32xbf16>
    %c0_4 = arith.constant 0 : index
    %c0_5 = arith.constant 0 : index
    %3 = vector.load %arg3[%c0_4, %c0_5] : memref<128x32xbf16, #tpu.memory_space<vmem>>, vector<32x32xbf16>
    %cst = arith.constant dense<0.000000e+00> : vector<256x32xf32>
    %4 = tpu.matmul %2, %3, %cst {dimension_numbers = #tpu.dot_dimension_numbers<[1], [0], [0], [1], [0, 0, 1, 1], [], []>} : vector<256x32xbf16>, vector<32x32xbf16>, vector<256x32xf32> -> vector<256x32xf32>
    %c0_6 = arith.constant 0 : index
    %c0_7 = arith.constant 0 : index
    %c0_8 = arith.constant 0 : index
    %c1 = arith.constant 1 : index
    %c0_9 = arith.constant 0 : index
    %5 = vector.load %arg2[%c0_6, %c0_7, %c0_8, %c1, %c0_9] : memref<1x1x17x17x32xbf16, #tpu.memory_space<vmem>>, vector<1x1x16x16x32xbf16>
    %6 = vector.shape_cast %5 : vector<1x1x16x16x32xbf16> to vector<16x16x32xbf16>
    %7 = vector.shape_cast %6 : vector<16x16x32xbf16> to vector<256x32xbf16>
    %c32 = arith.constant 32 : index
    %c0_10 = arith.constant 0 : index
    %8 = vector.load %arg3[%c32, %c0_10] : memref<128x32xbf16, #tpu.memory_space<vmem>>, vector<32x32xbf16>
    %cst_11 = arith.constant dense<0.000000e+00> : vector<256x32xf32>
    %9 = tpu.matmul %7, %8, %cst_11 {dimension_numbers = #tpu.dot_dimension_numbers<[1], [0], [0], [1], [0, 0, 1, 1], [], []>} : vector<256x32xbf16>, vector<32x32xbf16>, vector<256x32xf32> -> vector<256x32xf32>
    %10 = arith.addf %4, %9 : vector<256x32xf32>
    %c0_12 = arith.constant 0 : index
    %c0_13 = arith.constant 0 : index
    %c1_14 = arith.constant 1 : index
    %c0_15 = arith.constant 0 : index
    %c0_16 = arith.constant 0 : index
    %11 = vector.load %arg2[%c0_12, %c0_13, %c1_14, %c0_15, %c0_16] : memref<1x1x17x17x32xbf16, #tpu.memory_space<vmem>>, vector<1x1x16x16x32xbf16>
    %12 = vector.shape_cast %11 : vector<1x1x16x16x32xbf16> to vector<16x16x32xbf16>
    %13 = vector.shape_cast %12 : vector<16x16x32xbf16> to vector<256x32xbf16>
    %c64 = arith.constant 64 : index
    %c0_17 = arith.constant 0 : index
    %14 = vector.load %arg3[%c64, %c0_17] : memref<128x32xbf16, #tpu.memory_space<vmem>>, vector<32x32xbf16>
    %cst_18 = arith.constant dense<0.000000e+00> : vector<256x32xf32>
    %15 = tpu.matmul %13, %14, %cst_18 {dimension_numbers = #tpu.dot_dimension_numbers<[1], [0], [0], [1], [0, 0, 1, 1], [], []>} : vector<256x32xbf16>, vector<32x32xbf16>, vector<256x32xf32> -> vector<256x32xf32>
    %16 = arith.addf %10, %15 : vector<256x32xf32>
    %c0_19 = arith.constant 0 : index
    %c0_20 = arith.constant 0 : index
    %c1_21 = arith.constant 1 : index
    %c1_22 = arith.constant 1 : index
    %c0_23 = arith.constant 0 : index
    %17 = vector.load %arg2[%c0_19, %c0_20, %c1_21, %c1_22, %c0_23] : memref<1x1x17x17x32xbf16, #tpu.memory_space<vmem>>, vector<1x1x16x16x32xbf16>
    %18 = vector.shape_cast %17 : vector<1x1x16x16x32xbf16> to vector<16x16x32xbf16>
    %19 = vector.shape_cast %18 : vector<16x16x32xbf16> to vector<256x32xbf16>
    %c96 = arith.constant 96 : index
    %c0_24 = arith.constant 0 : index
    %20 = vector.load %arg3[%c96, %c0_24] : memref<128x32xbf16, #tpu.memory_space<vmem>>, vector<32x32xbf16>
    %cst_25 = arith.constant dense<0.000000e+00> : vector<256x32xf32>
    %21 = tpu.matmul %19, %20, %cst_25 {dimension_numbers = #tpu.dot_dimension_numbers<[1], [0], [0], [1], [0, 0, 1, 1], [], []>} : vector<256x32xbf16>, vector<32x32xbf16>, vector<256x32xf32> -> vector<256x32xf32>
    %22 = arith.addf %16, %21 : vector<256x32xf32>
    %c0_26 = arith.constant 0 : index
    %c0_27 = arith.constant 0 : index
    %23 = vector.load %arg4[%c0_26, %c0_27] : memref<1x32xf32, #tpu.memory_space<vmem>>, vector<1x32xf32>
    %24 = vector.broadcast %23 : vector<1x32xf32> to vector<256x32xf32>
    %25 = arith.mulf %22, %24 : vector<256x32xf32>
    %c0_28 = arith.constant 0 : index
    %c0_29 = arith.constant 0 : index
    %26 = vector.load %arg5[%c0_28, %c0_29] : memref<1x32xf32, #tpu.memory_space<vmem>>, vector<1x32xf32>
    %27 = vector.broadcast %26 : vector<1x32xf32> to vector<256x32xf32>
    %28 = arith.addf %25, %27 : vector<256x32xf32>
    %cst_30 = arith.constant 0.000000e+00 : f32
    %29 = vector.broadcast %cst_30 : f32 to vector<256x32xf32>
    %30 = arith.cmpf oge, %28, %29 : vector<256x32xf32>
    %cst_31 = arith.constant 2.000000e-01 : f32
    %31 = vector.broadcast %cst_31 : f32 to vector<256x32xf32>
    %32 = arith.mulf %31, %28 : vector<256x32xf32>
    %33 = arith.select %30, %28, %32 : vector<256x32xi1>, vector<256x32xf32>
    %34 = arith.truncf %33 : vector<256x32xf32> to vector<256x32xbf16>
    %c0_32 = arith.constant 0 : index
    %c0_33 = arith.constant 0 : index
    %35 = vector.load %arg6[%c0_32, %c0_33] : memref<256x32xbf16, #tpu.memory_space<vmem>>, vector<256x32xbf16>
    tpu.vector_store %arg6[%c0_32, %c0_33], %34 {strides = array<i32>} : memref<256x32xbf16, #tpu.memory_space<vmem>>, vector<256x32xbf16>,
    return
  }
  func.func @transform_0(%arg0: i32, %arg1: i32) -> (i32, i32, i32, i32, i32) {
    %c0_i32 = arith.constant 0 : i32
    %c0_i32_0 = arith.constant 0 : i32
    %c0_i32_1 = arith.constant 0 : i32
    %c0_i32_2 = arith.constant 0 : i32
    return %arg0, %arg1, %c0_i32, %c0_i32_0, %c0_i32_1 : i32, i32, i32, i32, i32
  }
  func.func @transform_1(%arg0: i32, %arg1: i32) -> (i32, i32) {
    %c0_i32 = arith.constant 0 : i32
    %c0_i32_0 = arith.constant 0 : i32
    %c0_i32_1 = arith.constant 0 : i32
    return %c0_i32, %c0_i32_0 : i32, i32
  }
  func.func @transform_2(%arg0: i32, %arg1: i32) -> (i32, i32) {
    %c0_i32 = arith.constant 0 : i32
    %c0_i32_0 = arith.constant 0 : i32
    %c0_i32_1 = arith.constant 0 : i32
    return %c0_i32, %c0_i32_0 : i32, i32
  }
  func.func @transform_3(%arg0: i32, %arg1: i32) -> (i32, i32) {
    %c0_i32 = arith.constant 0 : i32
    %c0_i32_0 = arith.constant 0 : i32
    %c0_i32_1 = arith.constant 0 : i32
    return %c0_i32, %c0_i32_0 : i32, i32
  }
  func.func @transform_4(%arg0: i32, %arg1: i32) -> (i32, i32) {
    %c1_i32 = arith.constant 1 : i32
    %0 = arith.muli %arg0, %c1_i32 : i32
    %1 = arith.addi %0, %arg1 : i32
    %c0_i32 = arith.constant 0 : i32
    %c0_i32_0 = arith.constant 0 : i32
    return %1, %c0_i32 : i32, i32
  }
}

module attributes {stable_mosaic.version = 11 : i64} {
  func.func @_conv_block_kernel(%arg0: i32, %arg1: i32, %arg2: memref<1x1x9x9x128xbf16, #tpu.memory_space<vmem>>, %arg3: memref<512x64xbf16, #tpu.memory_space<vmem>>, %arg4: memref<1x64xf32, #tpu.memory_space<vmem>>, %arg5: memref<1x64xf32, #tpu.memory_space<vmem>>, %arg6: memref<64x64xbf16, #tpu.memory_space<vmem>>) attributes {dimension_semantics = [#tpu.dimension_semantics<parallel>, #tpu.dimension_semantics<parallel>], iteration_bounds = array<i64: 2, 1>, scalar_prefetch = 0 : i64, scratch_operands = 0 : i64, tpu.core_type = #tpu.core_type<tc>, window_params = [{transform_indices = @transform_0, window_bounds = array<i64: 1, 1, 9, 9, 128>}, {pipeline_mode = #tpu.pipeline_mode<synchronous>, transform_indices = @transform_1, window_bounds = array<i64: 512, 64>}, {pipeline_mode = #tpu.pipeline_mode<synchronous>, transform_indices = @transform_2, window_bounds = array<i64: 1, 64>}, {pipeline_mode = #tpu.pipeline_mode<synchronous>, transform_indices = @transform_3, window_bounds = array<i64: 1, 64>}, {transform_indices = @transform_4, window_bounds = array<i64: 64, 64>}]} {
    %c0 = arith.constant 0 : index
    %c0_0 = arith.constant 0 : index
    %c0_1 = arith.constant 0 : index
    %c0_2 = arith.constant 0 : index
    %c0_3 = arith.constant 0 : index
    %0 = vector.load %arg2[%c0, %c0_0, %c0_1, %c0_2, %c0_3] : memref<1x1x9x9x128xbf16, #tpu.memory_space<vmem>>, vector<1x1x8x8x128xbf16>
    %1 = vector.shape_cast %0 : vector<1x1x8x8x128xbf16> to vector<8x8x128xbf16>
    %2 = vector.shape_cast %1 : vector<8x8x128xbf16> to vector<64x128xbf16>
    %c0_4 = arith.constant 0 : index
    %c0_5 = arith.constant 0 : index
    %3 = vector.load %arg3[%c0_4, %c0_5] : memref<512x64xbf16, #tpu.memory_space<vmem>>, vector<128x64xbf16>
    %cst = arith.constant dense<0.000000e+00> : vector<64x64xf32>
    %4 = tpu.matmul %2, %3, %cst {dimension_numbers = #tpu.dot_dimension_numbers<[1], [0], [0], [1], [0, 0, 1, 1], [], []>} : vector<64x128xbf16>, vector<128x64xbf16>, vector<64x64xf32> -> vector<64x64xf32>
    %c0_6 = arith.constant 0 : index
    %c0_7 = arith.constant 0 : index
    %c0_8 = arith.constant 0 : index
    %c1 = arith.constant 1 : index
    %c0_9 = arith.constant 0 : index
    %5 = vector.load %arg2[%c0_6, %c0_7, %c0_8, %c1, %c0_9] : memref<1x1x9x9x128xbf16, #tpu.memory_space<vmem>>, vector<1x1x8x8x128xbf16>
    %6 = vector.shape_cast %5 : vector<1x1x8x8x128xbf16> to vector<8x8x128xbf16>
    %7 = vector.shape_cast %6 : vector<8x8x128xbf16> to vector<64x128xbf16>
    %c128 = arith.constant 128 : index
    %c0_10 = arith.constant 0 : index
    %8 = vector.load %arg3[%c128, %c0_10] : memref<512x64xbf16, #tpu.memory_space<vmem>>, vector<128x64xbf16>
    %cst_11 = arith.constant dense<0.000000e+00> : vector<64x64xf32>
    %9 = tpu.matmul %7, %8, %cst_11 {dimension_numbers = #tpu.dot_dimension_numbers<[1], [0], [0], [1], [0, 0, 1, 1], [], []>} : vector<64x128xbf16>, vector<128x64xbf16>, vector<64x64xf32> -> vector<64x64xf32>
    %10 = arith.addf %4, %9 : vector<64x64xf32>
    %c0_12 = arith.constant 0 : index
    %c0_13 = arith.constant 0 : index
    %c1_14 = arith.constant 1 : index
    %c0_15 = arith.constant 0 : index
    %c0_16 = arith.constant 0 : index
    %11 = vector.load %arg2[%c0_12, %c0_13, %c1_14, %c0_15, %c0_16] : memref<1x1x9x9x128xbf16, #tpu.memory_space<vmem>>, vector<1x1x8x8x128xbf16>
    %12 = vector.shape_cast %11 : vector<1x1x8x8x128xbf16> to vector<8x8x128xbf16>
    %13 = vector.shape_cast %12 : vector<8x8x128xbf16> to vector<64x128xbf16>
    %c256 = arith.constant 256 : index
    %c0_17 = arith.constant 0 : index
    %14 = vector.load %arg3[%c256, %c0_17] : memref<512x64xbf16, #tpu.memory_space<vmem>>, vector<128x64xbf16>
    %cst_18 = arith.constant dense<0.000000e+00> : vector<64x64xf32>
    %15 = tpu.matmul %13, %14, %cst_18 {dimension_numbers = #tpu.dot_dimension_numbers<[1], [0], [0], [1], [0, 0, 1, 1], [], []>} : vector<64x128xbf16>, vector<128x64xbf16>, vector<64x64xf32> -> vector<64x64xf32>
    %16 = arith.addf %10, %15 : vector<64x64xf32>
    %c0_19 = arith.constant 0 : index
    %c0_20 = arith.constant 0 : index
    %c1_21 = arith.constant 1 : index
    %c1_22 = arith.constant 1 : index
    %c0_23 = arith.constant 0 : index
    %17 = vector.load %arg2[%c0_19, %c0_20, %c1_21, %c1_22, %c0_23] : memref<1x1x9x9x128xbf16, #tpu.memory_space<vmem>>, vector<1x1x8x8x128xbf16>
    %18 = vector.shape_cast %17 : vector<1x1x8x8x128xbf16> to vector<8x8x128xbf16>
    %19 = vector.shape_cast %18 : vector<8x8x128xbf16> to vector<64x128xbf16>
    %c384 = arith.constant 384 : index
    %c0_24 = arith.constant 0 : index
    %20 = vector.load %arg3[%c384, %c0_24] : memref<512x64xbf16, #tpu.memory_space<vmem>>, vector<128x64xbf16>
    %cst_25 = arith.constant dense<0.000000e+00> : vector<64x64xf32>
    %21 = tpu.matmul %19, %20, %cst_25 {dimension_numbers = #tpu.dot_dimension_numbers<[1], [0], [0], [1], [0, 0, 1, 1], [], []>} : vector<64x128xbf16>, vector<128x64xbf16>, vector<64x64xf32> -> vector<64x64xf32>
    %22 = arith.addf %16, %21 : vector<64x64xf32>
    %c0_26 = arith.constant 0 : index
    %c0_27 = arith.constant 0 : index
    %23 = vector.load %arg4[%c0_26, %c0_27] : memref<1x64xf32, #tpu.memory_space<vmem>>, vector<1x64xf32>
    %24 = vector.broadcast %23 : vector<1x64xf32> to vector<64x64xf32>
    %25 = arith.mulf %22, %24 : vector<64x64xf32>
    %c0_28 = arith.constant 0 : index
    %c0_29 = arith.constant 0 : index
    %26 = vector.load %arg5[%c0_28, %c0_29] : memref<1x64xf32, #tpu.memory_space<vmem>>, vector<1x64xf32>
    %27 = vector.broadcast %26 : vector<1x64xf32> to vector<64x64xf32>
    %28 = arith.addf %25, %27 : vector<64x64xf32>
    %cst_30 = arith.constant 0.000000e+00 : f32
    %29 = vector.broadcast %cst_30 : f32 to vector<64x64xf32>
    %30 = arith.cmpf oge, %28, %29 : vector<64x64xf32>
    %cst_31 = arith.constant 2.000000e-01 : f32
    %31 = vector.broadcast %cst_31 : f32 to vector<64x64xf32>
    %32 = arith.mulf %31, %28 : vector<64x64xf32>
    %33 = arith.select %30, %28, %32 : vector<64x64xi1>, vector<64x64xf32>
    %34 = arith.truncf %33 : vector<64x64xf32> to vector<64x64xbf16>
    %c0_32 = arith.constant 0 : index
    %c0_33 = arith.constant 0 : index
    %35 = vector.load %arg6[%c0_32, %c0_33] : memref<64x64xbf16, #tpu.memory_space<vmem>>, vector<64x64xbf16>
    tpu.vector_store %arg6[%c0_32, %c0_33], %34 {strides = array<i32>} : memref<64x64xbf16, #tpu.memory_space<vmem>>, vector<64x64xbf16>,
    return
  }
  func.func @transform_0(%arg0: i32, %arg1: i32) -> (i32, i32, i32, i32, i32) {
    %c0_i32 = arith.constant 0 : i32
    %c0_i32_0 = arith.constant 0 : i32
    %c0_i32_1 = arith.constant 0 : i32
    %c0_i32_2 = arith.constant 0 : i32
    return %arg0, %arg1, %c0_i32, %c0_i32_0, %c0_i32_1 : i32, i32, i32, i32, i32
  }
  func.func @transform_1(%arg0: i32, %arg1: i32) -> (i32, i32) {
    %c0_i32 = arith.constant 0 : i32
    %c0_i32_0 = arith.constant 0 : i32
    %c0_i32_1 = arith.constant 0 : i32
    return %c0_i32, %c0_i32_0 : i32, i32
  }
  func.func @transform_2(%arg0: i32, %arg1: i32) -> (i32, i32) {
    %c0_i32 = arith.constant 0 : i32
    %c0_i32_0 = arith.constant 0 : i32
    %c0_i32_1 = arith.constant 0 : i32
    return %c0_i32, %c0_i32_0 : i32, i32
  }
  func.func @transform_3(%arg0: i32, %arg1: i32) -> (i32, i32) {
    %c0_i32 = arith.constant 0 : i32
    %c0_i32_0 = arith.constant 0 : i32
    %c0_i32_1 = arith.constant 0 : i32
    return %c0_i32, %c0_i32_0 : i32, i32
  }
  func.func @transform_4(%arg0: i32, %arg1: i32) -> (i32, i32) {
    %c1_i32 = arith.constant 1 : i32
    %0 = arith.muli %arg0, %c1_i32 : i32
    %1 = arith.addi %0, %arg1 : i32
    %c0_i32 = arith.constant 0 : i32
    %c0_i32_0 = arith.constant 0 : i32
    return %1, %c0_i32 : i32, i32
  }
}

module attributes {stable_mosaic.version = 11 : i64} {
  func.func @_conv_block_kernel(%arg0: i32, %arg1: i32, %arg2: memref<1x1x5x9x256xbf16, #tpu.memory_space<vmem>>, %arg3: memref<1024x128xbf16, #tpu.memory_space<vmem>>, %arg4: memref<1x128xf32, #tpu.memory_space<vmem>>, %arg5: memref<1x128xf32, #tpu.memory_space<vmem>>, %arg6: memref<32x128xbf16, #tpu.memory_space<vmem>>) attributes {dimension_semantics = [#tpu.dimension_semantics<parallel>, #tpu.dimension_semantics<parallel>], iteration_bounds = array<i64: 2, 1>, scalar_prefetch = 0 : i64, scratch_operands = 0 : i64, tpu.core_type = #tpu.core_type<tc>, window_params = [{transform_indices = @transform_0, window_bounds = array<i64: 1, 1, 5, 9, 256>}, {pipeline_mode = #tpu.pipeline_mode<synchronous>, transform_indices = @transform_1, window_bounds = array<i64: 1024, 128>}, {pipeline_mode = #tpu.pipeline_mode<synchronous>, transform_indices = @transform_2, window_bounds = array<i64: 1, 128>}, {pipeline_mode = #tpu.pipeline_mode<synchronous>, transform_indices = @transform_3, window_bounds = array<i64: 1, 128>}, {transform_indices = @transform_4, window_bounds = array<i64: 32, 128>}]} {
    %c0 = arith.constant 0 : index
    %c0_0 = arith.constant 0 : index
    %c0_1 = arith.constant 0 : index
    %c0_2 = arith.constant 0 : index
    %c0_3 = arith.constant 0 : index
    %0 = vector.load %arg2[%c0, %c0_0, %c0_1, %c0_2, %c0_3] : memref<1x1x5x9x256xbf16, #tpu.memory_space<vmem>>, vector<1x1x4x8x256xbf16>
    %1 = vector.shape_cast %0 : vector<1x1x4x8x256xbf16> to vector<4x8x256xbf16>
    %2 = vector.shape_cast %1 : vector<4x8x256xbf16> to vector<32x256xbf16>
    %c0_4 = arith.constant 0 : index
    %c0_5 = arith.constant 0 : index
    %3 = vector.load %arg3[%c0_4, %c0_5] : memref<1024x128xbf16, #tpu.memory_space<vmem>>, vector<256x128xbf16>
    %cst = arith.constant dense<0.000000e+00> : vector<32x128xf32>
    %4 = tpu.matmul %2, %3, %cst {dimension_numbers = #tpu.dot_dimension_numbers<[1], [0], [0], [1], [0, 0, 1, 1], [], []>} : vector<32x256xbf16>, vector<256x128xbf16>, vector<32x128xf32> -> vector<32x128xf32>
    %c0_6 = arith.constant 0 : index
    %c0_7 = arith.constant 0 : index
    %c0_8 = arith.constant 0 : index
    %c1 = arith.constant 1 : index
    %c0_9 = arith.constant 0 : index
    %5 = vector.load %arg2[%c0_6, %c0_7, %c0_8, %c1, %c0_9] : memref<1x1x5x9x256xbf16, #tpu.memory_space<vmem>>, vector<1x1x4x8x256xbf16>
    %6 = vector.shape_cast %5 : vector<1x1x4x8x256xbf16> to vector<4x8x256xbf16>
    %7 = vector.shape_cast %6 : vector<4x8x256xbf16> to vector<32x256xbf16>
    %c256 = arith.constant 256 : index
    %c0_10 = arith.constant 0 : index
    %8 = vector.load %arg3[%c256, %c0_10] : memref<1024x128xbf16, #tpu.memory_space<vmem>>, vector<256x128xbf16>
    %cst_11 = arith.constant dense<0.000000e+00> : vector<32x128xf32>
    %9 = tpu.matmul %7, %8, %cst_11 {dimension_numbers = #tpu.dot_dimension_numbers<[1], [0], [0], [1], [0, 0, 1, 1], [], []>} : vector<32x256xbf16>, vector<256x128xbf16>, vector<32x128xf32> -> vector<32x128xf32>
    %10 = arith.addf %4, %9 : vector<32x128xf32>
    %c0_12 = arith.constant 0 : index
    %c0_13 = arith.constant 0 : index
    %c1_14 = arith.constant 1 : index
    %c0_15 = arith.constant 0 : index
    %c0_16 = arith.constant 0 : index
    %11 = vector.load %arg2[%c0_12, %c0_13, %c1_14, %c0_15, %c0_16] : memref<1x1x5x9x256xbf16, #tpu.memory_space<vmem>>, vector<1x1x4x8x256xbf16>
    %12 = vector.shape_cast %11 : vector<1x1x4x8x256xbf16> to vector<4x8x256xbf16>
    %13 = vector.shape_cast %12 : vector<4x8x256xbf16> to vector<32x256xbf16>
    %c512 = arith.constant 512 : index
    %c0_17 = arith.constant 0 : index
    %14 = vector.load %arg3[%c512, %c0_17] : memref<1024x128xbf16, #tpu.memory_space<vmem>>, vector<256x128xbf16>
    %cst_18 = arith.constant dense<0.000000e+00> : vector<32x128xf32>
    %15 = tpu.matmul %13, %14, %cst_18 {dimension_numbers = #tpu.dot_dimension_numbers<[1], [0], [0], [1], [0, 0, 1, 1], [], []>} : vector<32x256xbf16>, vector<256x128xbf16>, vector<32x128xf32> -> vector<32x128xf32>
    %16 = arith.addf %10, %15 : vector<32x128xf32>
    %c0_19 = arith.constant 0 : index
    %c0_20 = arith.constant 0 : index
    %c1_21 = arith.constant 1 : index
    %c1_22 = arith.constant 1 : index
    %c0_23 = arith.constant 0 : index
    %17 = vector.load %arg2[%c0_19, %c0_20, %c1_21, %c1_22, %c0_23] : memref<1x1x5x9x256xbf16, #tpu.memory_space<vmem>>, vector<1x1x4x8x256xbf16>
    %18 = vector.shape_cast %17 : vector<1x1x4x8x256xbf16> to vector<4x8x256xbf16>
    %19 = vector.shape_cast %18 : vector<4x8x256xbf16> to vector<32x256xbf16>
    %c768 = arith.constant 768 : index
    %c0_24 = arith.constant 0 : index
    %20 = vector.load %arg3[%c768, %c0_24] : memref<1024x128xbf16, #tpu.memory_space<vmem>>, vector<256x128xbf16>
    %cst_25 = arith.constant dense<0.000000e+00> : vector<32x128xf32>
    %21 = tpu.matmul %19, %20, %cst_25 {dimension_numbers = #tpu.dot_dimension_numbers<[1], [0], [0], [1], [0, 0, 1, 1], [], []>} : vector<32x256xbf16>, vector<256x128xbf16>, vector<32x128xf32> -> vector<32x128xf32>
    %22 = arith.addf %16, %21 : vector<32x128xf32>
    %c0_26 = arith.constant 0 : index
    %c0_27 = arith.constant 0 : index
    %23 = vector.load %arg4[%c0_26, %c0_27] : memref<1x128xf32, #tpu.memory_space<vmem>>, vector<1x128xf32>
    %24 = vector.broadcast %23 : vector<1x128xf32> to vector<32x128xf32>
    %25 = arith.mulf %22, %24 : vector<32x128xf32>
    %c0_28 = arith.constant 0 : index
    %c0_29 = arith.constant 0 : index
    %26 = vector.load %arg5[%c0_28, %c0_29] : memref<1x128xf32, #tpu.memory_space<vmem>>, vector<1x128xf32>
    %27 = vector.broadcast %26 : vector<1x128xf32> to vector<32x128xf32>
    %28 = arith.addf %25, %27 : vector<32x128xf32>
    %cst_30 = arith.constant 0.000000e+00 : f32
    %29 = vector.broadcast %cst_30 : f32 to vector<32x128xf32>
    %30 = arith.cmpf oge, %28, %29 : vector<32x128xf32>
    %cst_31 = arith.constant 2.000000e-01 : f32
    %31 = vector.broadcast %cst_31 : f32 to vector<32x128xf32>
    %32 = arith.mulf %31, %28 : vector<32x128xf32>
    %33 = arith.select %30, %28, %32 : vector<32x128xi1>, vector<32x128xf32>
    %34 = arith.truncf %33 : vector<32x128xf32> to vector<32x128xbf16>
    %c0_32 = arith.constant 0 : index
    %c0_33 = arith.constant 0 : index
    %35 = vector.load %arg6[%c0_32, %c0_33] : memref<32x128xbf16, #tpu.memory_space<vmem>>, vector<32x128xbf16>
    tpu.vector_store %arg6[%c0_32, %c0_33], %34 {strides = array<i32>} : memref<32x128xbf16, #tpu.memory_space<vmem>>, vector<32x128xbf16>,
    return
  }
  func.func @transform_0(%arg0: i32, %arg1: i32) -> (i32, i32, i32, i32, i32) {
    %c0_i32 = arith.constant 0 : i32
    %c0_i32_0 = arith.constant 0 : i32
    %c0_i32_1 = arith.constant 0 : i32
    %c0_i32_2 = arith.constant 0 : i32
    return %arg0, %arg1, %c0_i32, %c0_i32_0, %c0_i32_1 : i32, i32, i32, i32, i32
  }
  func.func @transform_1(%arg0: i32, %arg1: i32) -> (i32, i32) {
    %c0_i32 = arith.constant 0 : i32
    %c0_i32_0 = arith.constant 0 : i32
    %c0_i32_1 = arith.constant 0 : i32
    return %c0_i32, %c0_i32_0 : i32, i32
  }
  func.func @transform_2(%arg0: i32, %arg1: i32) -> (i32, i32) {
    %c0_i32 = arith.constant 0 : i32
    %c0_i32_0 = arith.constant 0 : i32
    %c0_i32_1 = arith.constant 0 : i32
    return %c0_i32, %c0_i32_0 : i32, i32
  }
  func.func @transform_3(%arg0: i32, %arg1: i32) -> (i32, i32) {
    %c0_i32 = arith.constant 0 : i32
    %c0_i32_0 = arith.constant 0 : i32
    %c0_i32_1 = arith.constant 0 : i32
    return %c0_i32, %c0_i32_0 : i32, i32
  }
  func.func @transform_4(%arg0: i32, %arg1: i32) -> (i32, i32) {
    %c1_i32 = arith.constant 1 : i32
    %0 = arith.muli %arg0, %c1_i32 : i32
    %1 = arith.addi %0, %arg1 : i32
    %c0_i32 = arith.constant 0 : i32
    %c0_i32_0 = arith.constant 0 : i32
    return %1, %c0_i32 : i32, i32
  }
}

module attributes {stable_mosaic.version = 11 : i64} {
  func.func @_conv_block_kernel(%arg0: i32, %arg1: i32, %arg2: memref<1x1x3x9x512xbf16, #tpu.memory_space<vmem>>, %arg3: memref<2048x256xbf16, #tpu.memory_space<vmem>>, %arg4: memref<1x256xf32, #tpu.memory_space<vmem>>, %arg5: memref<1x256xf32, #tpu.memory_space<vmem>>, %arg6: memref<16x256xbf16, #tpu.memory_space<vmem>>) attributes {dimension_semantics = [#tpu.dimension_semantics<parallel>, #tpu.dimension_semantics<parallel>], iteration_bounds = array<i64: 2, 1>, scalar_prefetch = 0 : i64, scratch_operands = 0 : i64, tpu.core_type = #tpu.core_type<tc>, window_params = [{transform_indices = @transform_0, window_bounds = array<i64: 1, 1, 3, 9, 512>}, {pipeline_mode = #tpu.pipeline_mode<synchronous>, transform_indices = @transform_1, window_bounds = array<i64: 2048, 256>}, {pipeline_mode = #tpu.pipeline_mode<synchronous>, transform_indices = @transform_2, window_bounds = array<i64: 1, 256>}, {pipeline_mode = #tpu.pipeline_mode<synchronous>, transform_indices = @transform_3, window_bounds = array<i64: 1, 256>}, {transform_indices = @transform_4, window_bounds = array<i64: 16, 256>}]} {
    %c0 = arith.constant 0 : index
    %c0_0 = arith.constant 0 : index
    %c0_1 = arith.constant 0 : index
    %c0_2 = arith.constant 0 : index
    %c0_3 = arith.constant 0 : index
    %0 = vector.load %arg2[%c0, %c0_0, %c0_1, %c0_2, %c0_3] : memref<1x1x3x9x512xbf16, #tpu.memory_space<vmem>>, vector<1x1x2x8x512xbf16>
    %1 = vector.shape_cast %0 : vector<1x1x2x8x512xbf16> to vector<2x8x512xbf16>
    %2 = vector.shape_cast %1 : vector<2x8x512xbf16> to vector<16x512xbf16>
    %c0_4 = arith.constant 0 : index
    %c0_5 = arith.constant 0 : index
    %3 = vector.load %arg3[%c0_4, %c0_5] : memref<2048x256xbf16, #tpu.memory_space<vmem>>, vector<512x256xbf16>
    %cst = arith.constant dense<0.000000e+00> : vector<16x256xf32>
    %4 = tpu.matmul %2, %3, %cst {dimension_numbers = #tpu.dot_dimension_numbers<[1], [0], [0], [1], [0, 0, 1, 1], [], []>} : vector<16x512xbf16>, vector<512x256xbf16>, vector<16x256xf32> -> vector<16x256xf32>
    %c0_6 = arith.constant 0 : index
    %c0_7 = arith.constant 0 : index
    %c0_8 = arith.constant 0 : index
    %c1 = arith.constant 1 : index
    %c0_9 = arith.constant 0 : index
    %5 = vector.load %arg2[%c0_6, %c0_7, %c0_8, %c1, %c0_9] : memref<1x1x3x9x512xbf16, #tpu.memory_space<vmem>>, vector<1x1x2x8x512xbf16>
    %6 = vector.shape_cast %5 : vector<1x1x2x8x512xbf16> to vector<2x8x512xbf16>
    %7 = vector.shape_cast %6 : vector<2x8x512xbf16> to vector<16x512xbf16>
    %c512 = arith.constant 512 : index
    %c0_10 = arith.constant 0 : index
    %8 = vector.load %arg3[%c512, %c0_10] : memref<2048x256xbf16, #tpu.memory_space<vmem>>, vector<512x256xbf16>
    %cst_11 = arith.constant dense<0.000000e+00> : vector<16x256xf32>
    %9 = tpu.matmul %7, %8, %cst_11 {dimension_numbers = #tpu.dot_dimension_numbers<[1], [0], [0], [1], [0, 0, 1, 1], [], []>} : vector<16x512xbf16>, vector<512x256xbf16>, vector<16x256xf32> -> vector<16x256xf32>
    %10 = arith.addf %4, %9 : vector<16x256xf32>
    %c0_12 = arith.constant 0 : index
    %c0_13 = arith.constant 0 : index
    %c1_14 = arith.constant 1 : index
    %c0_15 = arith.constant 0 : index
    %c0_16 = arith.constant 0 : index
    %11 = vector.load %arg2[%c0_12, %c0_13, %c1_14, %c0_15, %c0_16] : memref<1x1x3x9x512xbf16, #tpu.memory_space<vmem>>, vector<1x1x2x8x512xbf16>
    %12 = vector.shape_cast %11 : vector<1x1x2x8x512xbf16> to vector<2x8x512xbf16>
    %13 = vector.shape_cast %12 : vector<2x8x512xbf16> to vector<16x512xbf16>
    %c1024 = arith.constant 1024 : index
    %c0_17 = arith.constant 0 : index
    %14 = vector.load %arg3[%c1024, %c0_17] : memref<2048x256xbf16, #tpu.memory_space<vmem>>, vector<512x256xbf16>
    %cst_18 = arith.constant dense<0.000000e+00> : vector<16x256xf32>
    %15 = tpu.matmul %13, %14, %cst_18 {dimension_numbers = #tpu.dot_dimension_numbers<[1], [0], [0], [1], [0, 0, 1, 1], [], []>} : vector<16x512xbf16>, vector<512x256xbf16>, vector<16x256xf32> -> vector<16x256xf32>
    %16 = arith.addf %10, %15 : vector<16x256xf32>
    %c0_19 = arith.constant 0 : index
    %c0_20 = arith.constant 0 : index
    %c1_21 = arith.constant 1 : index
    %c1_22 = arith.constant 1 : index
    %c0_23 = arith.constant 0 : index
    %17 = vector.load %arg2[%c0_19, %c0_20, %c1_21, %c1_22, %c0_23] : memref<1x1x3x9x512xbf16, #tpu.memory_space<vmem>>, vector<1x1x2x8x512xbf16>
    %18 = vector.shape_cast %17 : vector<1x1x2x8x512xbf16> to vector<2x8x512xbf16>
    %19 = vector.shape_cast %18 : vector<2x8x512xbf16> to vector<16x512xbf16>
    %c1536 = arith.constant 1536 : index
    %c0_24 = arith.constant 0 : index
    %20 = vector.load %arg3[%c1536, %c0_24] : memref<2048x256xbf16, #tpu.memory_space<vmem>>, vector<512x256xbf16>
    %cst_25 = arith.constant dense<0.000000e+00> : vector<16x256xf32>
    %21 = tpu.matmul %19, %20, %cst_25 {dimension_numbers = #tpu.dot_dimension_numbers<[1], [0], [0], [1], [0, 0, 1, 1], [], []>} : vector<16x512xbf16>, vector<512x256xbf16>, vector<16x256xf32> -> vector<16x256xf32>
    %22 = arith.addf %16, %21 : vector<16x256xf32>
    %c0_26 = arith.constant 0 : index
    %c0_27 = arith.constant 0 : index
    %23 = vector.load %arg4[%c0_26, %c0_27] : memref<1x256xf32, #tpu.memory_space<vmem>>, vector<1x256xf32>
    %24 = vector.broadcast %23 : vector<1x256xf32> to vector<16x256xf32>
    %25 = arith.mulf %22, %24 : vector<16x256xf32>
    %c0_28 = arith.constant 0 : index
    %c0_29 = arith.constant 0 : index
    %26 = vector.load %arg5[%c0_28, %c0_29] : memref<1x256xf32, #tpu.memory_space<vmem>>, vector<1x256xf32>
    %27 = vector.broadcast %26 : vector<1x256xf32> to vector<16x256xf32>
    %28 = arith.addf %25, %27 : vector<16x256xf32>
    %cst_30 = arith.constant 0.000000e+00 : f32
    %29 = vector.broadcast %cst_30 : f32 to vector<16x256xf32>
    %30 = arith.cmpf oge, %28, %29 : vector<16x256xf32>
    %cst_31 = arith.constant 2.000000e-01 : f32
    %31 = vector.broadcast %cst_31 : f32 to vector<16x256xf32>
    %32 = arith.mulf %31, %28 : vector<16x256xf32>
    %33 = arith.select %30, %28, %32 : vector<16x256xi1>, vector<16x256xf32>
    %34 = arith.truncf %33 : vector<16x256xf32> to vector<16x256xbf16>
    %c0_32 = arith.constant 0 : index
    %c0_33 = arith.constant 0 : index
    %35 = vector.load %arg6[%c0_32, %c0_33] : memref<16x256xbf16, #tpu.memory_space<vmem>>, vector<16x256xbf16>
    tpu.vector_store %arg6[%c0_32, %c0_33], %34 {strides = array<i32>} : memref<16x256xbf16, #tpu.memory_space<vmem>>, vector<16x256xbf16>,
    return
  }
  func.func @transform_0(%arg0: i32, %arg1: i32) -> (i32, i32, i32, i32, i32) {
    %c0_i32 = arith.constant 0 : i32
    %c0_i32_0 = arith.constant 0 : i32
    %c0_i32_1 = arith.constant 0 : i32
    %c0_i32_2 = arith.constant 0 : i32
    return %arg0, %arg1, %c0_i32, %c0_i32_0, %c0_i32_1 : i32, i32, i32, i32, i32
  }
  func.func @transform_1(%arg0: i32, %arg1: i32) -> (i32, i32) {
    %c0_i32 = arith.constant 0 : i32
    %c0_i32_0 = arith.constant 0 : i32
    %c0_i32_1 = arith.constant 0 : i32
    return %c0_i32, %c0_i32_0 : i32, i32
  }
  func.func @transform_2(%arg0: i32, %arg1: i32) -> (i32, i32) {
    %c0_i32 = arith.constant 0 : i32
    %c0_i32_0 = arith.constant 0 : i32
    %c0_i32_1 = arith.constant 0 : i32
    return %c0_i32, %c0_i32_0 : i32, i32
  }
  func.func @transform_3(%arg0: i32, %arg1: i32) -> (i32, i32) {
    %c0_i32 = arith.constant 0 : i32
    %c0_i32_0 = arith.constant 0 : i32
    %c0_i32_1 = arith.constant 0 : i32
    return %c0_i32, %c0_i32_0 : i32, i32
  }
  func.func @transform_4(%arg0: i32, %arg1: i32) -> (i32, i32) {
    %c1_i32 = arith.constant 1 : i32
    %0 = arith.muli %arg0, %c1_i32 : i32
    %1 = arith.addi %0, %arg1 : i32
    %c0_i32 = arith.constant 0 : i32
    %c0_i32_0 = arith.constant 0 : i32
    return %1, %c0_i32 : i32, i32
  }
}

module attributes {stable_mosaic.version = 11 : i64} {
  func.func @_head_kernel(%arg0: i32, %arg1: i32, %arg2: memref<2x1024xbf16, #tpu.memory_space<vmem>>, %arg3: memref<1024x256xbf16, #tpu.memory_space<vmem>>, %arg4: memref<1x256xf32, #tpu.memory_space<vmem>>, %arg5: memref<1x256xf32, #tpu.memory_space<vmem>>, %arg6: memref<2x256xf32, #tpu.memory_space<vmem>>, %arg7: memref<2x256xf32, #tpu.memory_space<vmem>>) attributes {dimension_semantics = [#tpu.dimension_semantics<parallel>, #tpu.dimension_semantics<arbitrary>], iteration_bounds = array<i64: 2, 1>, scalar_prefetch = 0 : i64, scratch_operands = 1 : i64, tpu.core_type = #tpu.core_type<tc>, window_params = [{transform_indices = @transform_0, window_bounds = array<i64: 2, 1024>}, {transform_indices = @transform_1, window_bounds = array<i64: 1024, 256>}, {transform_indices = @transform_2, window_bounds = array<i64: 1, 256>}, {transform_indices = @transform_3, window_bounds = array<i64: 1, 256>}, {transform_indices = @transform_4, window_bounds = array<i64: 2, 256>}]} {
    %c0_i32 = arith.constant 0 : i32
    %0 = arith.cmpi eq, %arg1, %c0_i32 : i32
    %1 = arith.extui %0 : i1 to i32
    %c0_i32_0 = arith.constant 0 : i32
    %2 = arith.cmpi ne, %1, %c0_i32_0 : i32
    scf.if %2 {
      %cst_10 = arith.constant 0.000000e+00 : f32
      %12 = vector.broadcast %cst_10 : f32 to vector<2x256xf32>
      %c0_11 = arith.constant 0 : index
      %c0_12 = arith.constant 0 : index
      %13 = vector.load %arg7[%c0_11, %c0_12] : memref<2x256xf32, #tpu.memory_space<vmem>>, vector<2x256xf32>
      tpu.vector_store %arg7[%c0_11, %c0_12], %12 {strides = array<i32>} : memref<2x256xf32, #tpu.memory_space<vmem>>, vector<2x256xf32>,
    } else {
    }
    %c0 = arith.constant 0 : index
    %c0_1 = arith.constant 0 : index
    %3 = vector.load %arg7[%c0, %c0_1] : memref<2x256xf32, #tpu.memory_space<vmem>>, vector<2x256xf32>
    %c0_2 = arith.constant 0 : index
    %c0_3 = arith.constant 0 : index
    %4 = vector.load %arg2[%c0_2, %c0_3] : memref<2x1024xbf16, #tpu.memory_space<vmem>>, vector<2x1024xbf16>
    %c0_4 = arith.constant 0 : index
    %c0_5 = arith.constant 0 : index
    %5 = vector.load %arg3[%c0_4, %c0_5] : memref<1024x256xbf16, #tpu.memory_space<vmem>>, vector<1024x256xbf16>
    %cst = arith.constant dense<0.000000e+00> : vector<2x256xf32>
    %6 = tpu.matmul %4, %5, %cst {dimension_numbers = #tpu.dot_dimension_numbers<[1], [0], [0], [1], [0, 0, 1, 1], [], []>} : vector<2x1024xbf16>, vector<1024x256xbf16>, vector<2x256xf32> -> vector<2x256xf32>
    %7 = arith.addf %3, %6 : vector<2x256xf32>
    %c0_6 = arith.constant 0 : index
    %c0_7 = arith.constant 0 : index
    %8 = vector.load %arg7[%c0_6, %c0_7] : memref<2x256xf32, #tpu.memory_space<vmem>>, vector<2x256xf32>
    tpu.vector_store %arg7[%c0_6, %c0_7], %7 {strides = array<i32>} : memref<2x256xf32, #tpu.memory_space<vmem>>, vector<2x256xf32>,
    %c0_i32_8 = arith.constant 0 : i32
    %9 = arith.cmpi eq, %arg1, %c0_i32_8 : i32
    %10 = arith.extui %9 : i1 to i32
    %c0_i32_9 = arith.constant 0 : i32
    %11 = arith.cmpi ne, %10, %c0_i32_9 : i32
    scf.if %11 {
      %c0_10 = arith.constant 0 : index
      %c0_11 = arith.constant 0 : index
      %12 = vector.load %arg7[%c0_10, %c0_11] : memref<2x256xf32, #tpu.memory_space<vmem>>, vector<2x256xf32>
      %c0_12 = arith.constant 0 : index
      %c0_13 = arith.constant 0 : index
      %13 = vector.load %arg4[%c0_12, %c0_13] : memref<1x256xf32, #tpu.memory_space<vmem>>, vector<1x256xf32>
      %14 = vector.broadcast %13 : vector<1x256xf32> to vector<2x256xf32>
      %15 = arith.addf %12, %14 : vector<2x256xf32>
      %cst_14 = arith.constant 0.000000e+00 : f32
      %16 = vector.broadcast %cst_14 : f32 to vector<2x256xf32>
      %17 = arith.cmpf oge, %15, %16 : vector<2x256xf32>
      %cst_15 = arith.constant 2.000000e-01 : f32
      %18 = vector.broadcast %cst_15 : f32 to vector<2x256xf32>
      %19 = arith.mulf %18, %15 : vector<2x256xf32>
      %20 = arith.select %17, %15, %19 : vector<2x256xi1>, vector<2x256xf32>
      %c0_16 = arith.constant 0 : index
      %c0_17 = arith.constant 0 : index
      %21 = vector.load %arg5[%c0_16, %c0_17] : memref<1x256xf32, #tpu.memory_space<vmem>>, vector<1x256xf32>
      %22 = vector.broadcast %21 : vector<1x256xf32> to vector<2x256xf32>
      %23 = arith.mulf %20, %22 : vector<2x256xf32>
      %c0_18 = arith.constant 0 : index
      %c0_19 = arith.constant 0 : index
      %24 = vector.load %arg6[%c0_18, %c0_19] : memref<2x256xf32, #tpu.memory_space<vmem>>, vector<2x256xf32>
      tpu.vector_store %arg6[%c0_18, %c0_19], %23 {strides = array<i32>} : memref<2x256xf32, #tpu.memory_space<vmem>>, vector<2x256xf32>,
    } else {
    }
    return
  }
  func.func @transform_0(%arg0: i32, %arg1: i32) -> (i32, i32) {
    %c0_i32 = arith.constant 0 : i32
    %c0_i32_0 = arith.constant 0 : i32
    return %c0_i32, %arg1 : i32, i32
  }
  func.func @transform_1(%arg0: i32, %arg1: i32) -> (i32, i32) {
    %c0_i32 = arith.constant 0 : i32
    return %arg1, %arg0 : i32, i32
  }
  func.func @transform_2(%arg0: i32, %arg1: i32) -> (i32, i32) {
    %c0_i32 = arith.constant 0 : i32
    %c0_i32_0 = arith.constant 0 : i32
    return %c0_i32, %arg0 : i32, i32
  }
  func.func @transform_3(%arg0: i32, %arg1: i32) -> (i32, i32) {
    %c0_i32 = arith.constant 0 : i32
    %c0_i32_0 = arith.constant 0 : i32
    return %c0_i32, %arg0 : i32, i32
  }
  func.func @transform_4(%arg0: i32, %arg1: i32) -> (i32, i32) {
    %c0_i32 = arith.constant 0 : i32
    %c0_i32_0 = arith.constant 0 : i32
    return %c0_i32, %arg0 : i32, i32
  }
}

</mosaic_0001>

<bundles_post_ra>
// kernel: discriminator_forward.5
= control target key start
LH: loop header
LB: loop body
LE: loop exit
PB: predicated region body
PF: predicated region fallthrough
CT: control target
= control target key end

     0   :  { %s3386_s15 = smov 0   ;;  %s3388_s16 = smov 0   ;;  %s4060_s0 = inlined_call_operand.vmem [shape: bf16[2,1,17,17,32], index: 0, kind: input, shape index: {}]   ;;  %s4061_s1 = inlined_call_operand.vmem [shape: bf16[128,32], index: 1, kind: input, shape index: {}]   ;;  %s4062_s2 = inlined_call_operand.vmem [shape: f32[1,32], index: 2, kind: input, shape index: {}]   ;;  %s4063_s3 = inlined_call_operand.vmem [shape: f32[1,32], index: 3, kind: input, shape index: {}]   ;;  %s4064_s4 = inlined_call_operand.vmem [shape: bf16[512,32], index: 4, kind: output, shape index: {}]  }
   0x1   :  { %s3390_s17 = smov 0  }
   0x2 LB: > { %s26_s18 = sadd.s32 1, %s3355_s16  ;;  %p2768_p0 = scmp.ge.s32.totalorder %s3359_s17, 1  ;;  %s3359_s17 = sphi %s3390_s17, %s14_s17   ;;  %s3355_s16 = sphi %s3388_s16, %s4068_s16   ;;  %s3351_s15 = sphi %s3386_s15, %s4067_s15  }
   0x3   : > { %p28_p1 = scmp.ge.s32.totalorder %s26_s18, 2  ;;  %p182_p2 = scmp.lt.s32.totalorder %s3359_s17, 3 }
   0x5   : > { %s4070_s18 = smov (%p28_p1, %s26_s18), 0  ;;  %p183_p3 = pnand %p2768_p0, %p182_p2 }
   0x6   : > { %p213_p4 = scmp.lt.s32.totalorder (!%p183_p3), %s3351_s15, 1  ;;  %s2770_s14 = sshll.u32 (!%p183_p3), %s3351_s15, 5 }
   0x7   : > { %186 = sbr.rel (%p183_p3) target bundleno = 376 (0x178), region = 36  ;;  %p224_p5 = scmp.lt.s32.totalorder (!%p183_p3), %s2770_s14, 63 }
   0xc   : > { %v3297_v0 = vld [vmem:[%s4061_s1 + $0x8] sm:$0xff]   ;;  %v3298_v1 = vld [vmem:[%s4061_s1 + $0x18] sm:$0xff]   ;;  %v3299_v2 = vld [vmem:[%s4061_s1] sm:$0xff]   ;;  %s214_s25 = scalar_select %p213_p4, %s3351_s15, 1  ;;  %vm283_vm0 = vsmask.f32 3328 }
   0xd   : > { %3164 = vmatprep.subr.bf16.mxu1 %v3297_v0  ;;  %3128 = vmatprep.subr.bf16.mxu0 %v3298_v1  ;;  %v3300_v3 = vld [vmem:[%s4061_s1 + $0x10] sm:$0xff]   ;;  %vm284_vm1 = vsmask.f32 7440  ;;  %v3423_v4 = vld [vmem:[%s4061_s1 + $0x28] sm:$0xff]   ;;  %vm734_vm2 = vcmask 261120   ;;  %v3304_v5 = vld [vmem:[%s4061_s1 + $0x38] sm:$0xff]  }
   0xe   : > { %3165 = vmatpush3.bf16.msra.mxu1 %v3297_v0  ;;  %3129 = vmatpush3.bf16.msra.mxu0 %v3298_v1  ;;  %s3272_s28 = smul.u32 204, %s214_s25  ;;  %v3314_v33 = vld [vmem:[%s4061_s1 + $0x30] sm:$0xff]   ;;  %vm3447_vm3 = vmor %vm283_vm0, %vm284_vm1  ;;  %s4072_s14 = smov (!%p224_p5, %s2770_s14), 63  ;;  %vm2654_vm4 = vcmask 257024  }
   0xf   : > { %3166 = vmatprep.subr.bf16.mxu1 %v3299_v2  ;;  %3130 = vmatprep.subr.bf16.mxu0 %v3300_v3  ;;  %s2771_s22 = sshll.u32 %s4072_s14, 2 }
  0x10   : > { %s3428_s7 = scalar_lea.vmem %s4060_s0, %s3272_s28  ;;  %s3891_s25 = scalar_lea.vmem %s4064_s4, %s2771_s22 }
  0x11   : > { %v231_v6 = vld [vmem:[%s3428_s7] sm:$0xf]  ;;  %v232_v7 = vld [vmem:[%s3428_s7 + $0x4] sm:$0xf]  ;;  %v233_v8 = vld [vmem:[%s3428_s7 + $0xc] sm:$0xf] }
  0x12   : > { %3167 = vmatpush3.bf16.msra.mxu1 %v3299_v2  ;;  %v287_v9 = vshrl.u32 %v231_v6, 16  ;;  %v290_v10 = vshll.u32 %v231_v6, 16  ;;  %v296_v11 = vshll.u32 %v232_v7, 16  ;;  %v300_v12 = vshrl.u32 %v232_v7, 16  ;;  %3131 = vmatpush3.bf16.msra.mxu0 %v3300_v3  ;;  %v234_v13 = vld [vmem:[%s3428_s7 + $0x10] sm:$0xf] }
  0x13   : > { %3236 = vmatprep.subr.bf16.mxu1 %v3304_v5  ;;  %v2806_v14 = vcombine.low %v231_v6, %v232_v7  ;;  %v311_v15 = vshrl.u32 %v233_v8, 16  ;;  %v314_v16 = vshll.u32 %v233_v8, 16  ;;  %v320_v17 = vshll.u32 %v234_v13, 16  ;;  %v267_v18 = vld [vmem:[%s3428_s7 + $0x8] sm:$0x1]  ;;  %3200 = vmatprep.subr.bf16.mxu0 %v3423_v4 }
  0x14   : > { %v289_v19 = vrot.slane %v287_v9, 4  ;;  %v292_v20 = vrot.slane %v290_v10, 5  ;;  %v298_v21 = vrot.slane %v296_v11, 5  ;;  %v302_v22 = vrot.slane %v300_v12, 4  ;;  %v268_v23 = vld [vmem:[%s3428_s7 + $0x14] sm:$0x1] }
  0x15   : > { %3168 = vmatprep.mubr.msk.bf16.mxu1 %vm734_vm2, %v2806_v14  ;;  %v313_v24 = vrot.slane %v311_v15, 4  ;;  %v316_v25 = vrot.slane %v314_v16, 5  ;;  %v322_v26 = vrot.slane %v320_v17, 5  ;;  %v324_v27 = vshrl.u32 %v234_v13, 16  ;;  %v235_v28 = vld [vmem:[%s3428_s7 + $0x18] sm:$0xf] }
  0x16   : > { %v2807_v29 = vcombine.low %v233_v8, %v234_v13  ;;  %v293_v30 = vor.u32 %v292_v20, %v289_v19  ;;  %v303_v31 = vor.u32 %v302_v22, %v298_v21  ;;  %v306_v32 = vshll.u32 %v267_v18, 16  ;;  %v236_v38 = vld [vmem:[%s3428_s7 + $0x1c] sm:$0xf]  ;;  %v237_v48 = vld [vmem:[%s3428_s7 + $0x24] sm:$0xf] }
  0x17   : > { %v326_v34 = vrot.slane %v324_v27, 4  ;;  %v317_v36 = vor.u32 %v316_v25, %v313_v24  ;;  %v330_v37 = vshll.u32 %v268_v23, 16  ;;  %v335_v39 = vshrl.u32 %v235_v28, 16  ;;  %v238_v53 = vld [vmem:[%s3428_s7 + $0x28] sm:$0xf]  ;;  %v3313_v10 = vld [vmem:[%s4061_s1 + $0x20] sm:$0xff]  }
  0x18   : > { %3169 = vmatmul.mubr.msk.bf16.vlgmr.msra.gmra.mxu1 %vm734_vm2, %v2807_v29  ;;  %v294_v40 = vrot.slane %v293_v30, 4  ;;  %v304_v41 = vrot.slane %v303_v31, 4  ;;  %v308_v42 = vrot.slane %v306_v32, 5  ;;  %v338_v43 = vshll.u32 %v235_v28, 16  ;;  %v269_v58 = vld [vmem:[%s3428_s7 + $0x20] sm:$0x1] }
  0x19   : > { %v318_v44 = vrot.slane %v317_v36, 4  ;;  %v327_v45 = vor.u32 %v326_v34, %v322_v26  ;;  %v332_v46 = vrot.slane %v330_v37, 5  ;;  %3237 = vmatpush3.bf16.msra.mxu1 %v3304_v5  ;;  %v337_v47 = vrot.slane %v335_v39, 4  ;;  %v270_v63 = vld [vmem:[%s3428_s7 + $0x2c] sm:$0x1] }
  0x1a   : > { %v299_v49 = vsel %vm3447_vm3, %v294_v40, %v298_v21  ;;  %v309_v50 = vsel %vm3447_vm3, %v304_v41, %v308_v42  ;;  %v340_v51 = vrot.slane %v338_v43, 5  ;;  %v344_v52 = vshll.u32 %v236_v38, 16  ;;  %3238 = vmatprep.subr.bf16.mxu1 %v3314_v33  ;;  %v239_v5 = vld [vmem:[%s3428_s7 + $0x30] sm:$0xf]  ;;  %v240_v18 = vld [vmem:[%s3428_s7 + $0x34] sm:$0xf] }
  0x1b   : > { %v2772_v54 = vcombine.low %v299_v49, %v309_v50  ;;  %v323_v55 = vsel %vm3447_vm3, %v318_v44, %v322_v26  ;;  %v328_v56 = vrot.slane %v327_v45, 4  ;;  %v348_v57 = vshrl.u32 %v236_v38, 16  ;;  %v272_v39 = vld [vmem:[%s3428_s7 + $0x44] sm:$0x1]  ;;  %v243_v44 = vld [vmem:[%s3428_s7 + $0x48] sm:$0xf] }
  0x1c   : > { %v346_v59 = vrot.slane %v344_v52, 5  ;;  %v2808_v60 = vcombine.low %v235_v28, %v236_v38  ;;  %v359_v61 = vshrl.u32 %v237_v48, 16  ;;  %v362_v62 = vshll.u32 %v237_v48, 16  ;;  %v241_v28 = vld [vmem:[%s3428_s7 + $0x3c] sm:$0xf] }
  0x1d   : > { %3132 = vmatprep.mubr.msk.bf16.mxu0 %vm734_vm2, %v2772_v54  ;;  %v333_v0 = vsel %vm3447_vm3, %v328_v56, %v332_v46  ;;  %v350_v1 = vrot.slane %v348_v57, 4  ;;  %v368_v2 = vshll.u32 %v238_v53, 16  ;;  %v372_v3 = vshrl.u32 %v238_v53, 16  ;;  %3239 = vmatpush3.bf16.msra.mxu1 %v3314_v33  ;;  %v271_v38 = vld [vmem:[%s3428_s7 + $0x38] sm:$0x1] }
  0x1e   : > { %v2773_v6 = vcombine.low %v323_v55, %v333_v0  ;;  %3172 = vmatprep.mubr.msk.bf16.mxu1 %vm734_vm2, %v2808_v60  ;;  %v361_v7 = vrot.slane %v359_v61, 4  ;;  %v364_v8 = vrot.slane %v362_v62, 5  ;;  %v2809_v9 = vcombine.low %v237_v48, %v238_v53  ;;  %v244_v60 = vld [vmem:[%s3428_s7 + $0x4c] sm:$0xf] }
  0x1f   : > { %v370_v11 = vrot.slane %v368_v2, 5  ;;  %v374_v12 = vrot.slane %v372_v3, 4  ;;  %v341_v13 = vor.u32 %v340_v51, %v337_v47  ;;  %v351_v14 = vor.u32 %v350_v1, %v346_v59 }
  0x20   : > { %3133 = vmatmul.mubr.msk.bf16.vlgmr.msra.gmra.mxu0 %vm734_vm2, %v2773_v6  ;;  %3173 = vmatmul.mubr.msk.bf16.gmra.mxu1 %vm734_vm2, %v2809_v9  ;;  %v354_v15 = vshll.u32 %v269_v58, 16  ;;  %v365_v16 = vor.u32 %v364_v8, %v361_v7  ;;  %v378_v17 = vshll.u32 %v270_v63, 16  ;;  %v383_v19 = vshrl.u32 %v239_v5, 16  ;;  %v245_v7 = vld [vmem:[%s3428_s7 + $0x54] sm:$0xf] }
  0x21   : > { %3201 = vmatpush3.bf16.msra.mxu0 %v3423_v4  ;;  %v342_v20 = vrot.slane %v341_v13, 4  ;;  %v352_v21 = vrot.slane %v351_v14, 4  ;;  %v375_v22 = vor.u32 %v374_v12, %v370_v11  ;;  %v386_v23 = vshll.u32 %v239_v5, 16  ;;  %v242_v4 = vld [vmem:[%s3428_s7 + $0x40] sm:$0xf] }
  0x22   : > { %v356_v24 = vrot.slane %v354_v15, 5  ;;  %v366_v25 = vrot.slane %v365_v16, 4  ;;  %v380_v26 = vrot.slane %v378_v17, 5  ;;  %v385_v27 = vrot.slane %v383_v19, 4  ;;  %3202 = vmatprep.subr.bf16.mxu0 %v3313_v10  ;;  %v246_v12 = vld [vmem:[%s3428_s7 + $0x58] sm:$0xf] }
  0x23   : > { %v347_v29 = vsel %vm3447_vm3, %v342_v20, %v346_v59  ;;  %v376_v30 = vrot.slane %v375_v22, 4  ;;  %v388_v31 = vrot.slane %v386_v23, 5  ;;  %v392_v32 = vshll.u32 %v240_v18, 16  ;;  %v273_v17 = vld [vmem:[%s3428_s7 + $0x50] sm:$0x1] }
  0x24   : > { %v357_v33 = vsel %vm3447_vm3, %v352_v21, %v356_v24  ;;  %v371_v34 = vsel %vm3447_vm3, %v366_v25, %v370_v11  ;;  %v396_v36 = vshrl.u32 %v240_v18, 16  ;;  %v2810_v37 = vcombine.low %v239_v5, %v240_v18  ;;  %v274_v22 = vld [vmem:[%s3428_s7 + $0x5c] sm:$0x1] }
  0x25   : > { %v2774_v40 = vcombine.low %v347_v29, %v357_v33  ;;  %v381_v41 = vsel %vm3447_vm3, %v376_v30, %v380_v26  ;;  %v394_v42 = vrot.slane %v392_v32, 5  ;;  %v407_v43 = vshrl.u32 %v241_v28, 16  ;;  %3203 = vmatpush3.bf16.msra.mxu0 %v3313_v10 }
  0x26   : > { %v2775_v45 = vcombine.low %v371_v34, %v381_v41  ;;  %v398_v46 = vrot.slane %v396_v36, 4  ;;  %3176 = vmatprep.mubr.msk.bf16.mxu1 %vm734_vm2, %v2810_v37  ;;  %v410_v47 = vshll.u32 %v241_v28, 16  ;;  %v416_v48 = vshll.u32 %v242_v4, 16 }
  0x27   : > { %3136 = vmatprep.mubr.msk.bf16.mxu0 %vm734_vm2, %v2774_v40  ;;  %v409_v49 = vrot.slane %v407_v43, 4  ;;  %v420_v50 = vshrl.u32 %v242_v4, 16  ;;  %v2811_v51 = vcombine.low %v241_v28, %v242_v4  ;;  %v389_v52 = vor.u32 %v388_v31, %v385_v27  ;;  %v247_v27 = vld [vmem:[%s3428_s7 + $0x60] sm:$0xf] }
  0x28   : > { %3137 = vmatmul.mubr.msk.bf16.gmra.mxu0 %vm734_vm2, %v2775_v45  ;;  %v412_v53 = vrot.slane %v410_v47, 5  ;;  %v418_v54 = vrot.slane %v416_v48, 5  ;;  %v399_v55 = vor.u32 %v398_v46, %v394_v42  ;;  %v402_v56 = vshll.u32 %v271_v38, 16 }
  0x29   : > { %v422_v57 = vrot.slane %v420_v50, 4  ;;  %3177 = vmatmul.mubr.msk.bf16.gmra.mxu1 %vm734_vm2, %v2811_v51  ;;  %v390_v58 = vrot.slane %v389_v52, 4  ;;  %v426_v59 = vshll.u32 %v272_v39, 16  ;;  %v431_v61 = vshrl.u32 %v243_v44, 16  ;;  %v248_v39 = vld [vmem:[%s3428_s7 + $0x64] sm:$0xf] }
  0x2a   : > { %v400_v62 = vrot.slane %v399_v55, 4  ;;  %v404_v63 = vrot.slane %v402_v56, 5  ;;  %v413_v0 = vor.u32 %v412_v53, %v409_v49  ;;  %v434_v1 = vshll.u32 %v243_v44, 16  ;;  %v249_v49 = vld [vmem:[%s3428_s7 + $0x6c] sm:$0xf] }
  0x2b   : > { %v395_v2 = vsel %vm3447_vm3, %v390_v58, %v394_v42  ;;  %v423_v3 = vor.u32 %v422_v57, %v418_v54  ;;  %v428_v5 = vrot.slane %v426_v59, 5  ;;  %v433_v6 = vrot.slane %v431_v61, 4 }
  0x2c   : > { %v405_v8 = vsel %vm3447_vm3, %v400_v62, %v404_v63  ;;  %v414_v9 = vrot.slane %v413_v0, 4  ;;  %v436_v10 = vrot.slane %v434_v1, 5  ;;  %v440_v11 = vshll.u32 %v244_v60, 16  ;;  %v275_v63 = vld [vmem:[%s3428_s7 + $0x68] sm:$0x1] }
  0x2d   : > { %v2776_v13 = vcombine.low %v395_v2, %v405_v8  ;;  %v424_v14 = vrot.slane %v423_v3, 4  ;;  %v444_v15 = vshrl.u32 %v244_v60, 16  ;;  %v2812_v16 = vcombine.low %v243_v44, %v244_v60  ;;  %v276_v0 = vld [vmem:[%s3428_s7 + $0x74] sm:$0x1] }
  0x2e   : > { %v419_v18 = vsel %vm3447_vm3, %v414_v9, %v418_v54  ;;  %v442_v19 = vrot.slane %v440_v11, 5  ;;  %v455_v20 = vshrl.u32 %v245_v7, 16  ;;  %v458_v21 = vshll.u32 %v245_v7, 16  ;;  %v250_v54 = vld [vmem:[%s3428_s7 + $0x70] sm:$0xf] }
  0x2f   : > { %3140 = vmatprep.mubr.msk.bf16.mxu0 %vm734_vm2, %v2776_v13  ;;  %v429_v23 = vsel %vm3447_vm3, %v424_v14, %v428_v5  ;;  %v446_v24 = vrot.slane %v444_v15, 4  ;;  %3180 = vmatprep.mubr.msk.bf16.mxu1 %vm734_vm2, %v2812_v16  ;;  %v464_v25 = vshll.u32 %v246_v12, 16  ;;  %v468_v26 = vshrl.u32 %v246_v12, 16  ;;  %v252_v11 = vld [vmem:[%s3428_s7 + $0x7c] sm:$0xf] }
  0x30   : > { %v2777_v28 = vcombine.low %v419_v18, %v429_v23  ;;  %v457_v29 = vrot.slane %v455_v20, 4  ;;  %v460_v30 = vrot.slane %v458_v21, 5  ;;  %v2813_v31 = vcombine.low %v245_v7, %v246_v12 }
  0x31   : > { %v466_v32 = vrot.slane %v464_v25, 5  ;;  %v470_v4 = vrot.slane %v468_v26, 4  ;;  %v437_v33 = vor.u32 %v436_v10, %v433_v6  ;;  %v447_v34 = vor.u32 %v446_v24, %v442_v19  ;;  %v251_v6 = vld [vmem:[%s3428_s7 + $0x78] sm:$0xf] }
  0x32   : > { %3141 = vmatmul.mubr.msk.bf16.gmra.mxu0 %vm734_vm2, %v2777_v28  ;;  %3181 = vmatmul.mubr.msk.bf16.gmra.mxu1 %vm734_vm2, %v2813_v31  ;;  %v450_v36 = vshll.u32 %v273_v17, 16  ;;  %v461_v37 = vor.u32 %v460_v30, %v457_v29  ;;  %v474_v38 = vshll.u32 %v274_v22, 16  ;;  %v479_v40 = vshrl.u32 %v247_v27, 16  ;;  %v253_v28 = vld [vmem:[%s3428_s7 + $0x84] sm:$0xf] }
  0x33   : > { %v438_v41 = vrot.slane %v437_v33, 4  ;;  %v448_v42 = vrot.slane %v447_v34, 4  ;;  %v471_v43 = vor.u32 %v470_v4, %v466_v32  ;;  %v482_v44 = vshll.u32 %v247_v27, 16  ;;  %v254_v4 = vld [vmem:[%s3428_s7 + $0x88] sm:$0xf] }
  0x34   : > { %v452_v45 = vrot.slane %v450_v36, 5  ;;  %v462_v46 = vrot.slane %v461_v37, 4  ;;  %v476_v47 = vrot.slane %v474_v38, 5  ;;  %v481_v48 = vrot.slane %v479_v40, 4  ;;  %v277_v38 = vld [vmem:[%s3428_s7 + $0x80] sm:$0x1] }
  0x35   : > { %v443_v50 = vsel %vm3447_vm3, %v438_v41, %v442_v19  ;;  %v472_v51 = vrot.slane %v471_v43, 4  ;;  %v484_v52 = vrot.slane %v482_v44, 5  ;;  %v488_v53 = vshll.u32 %v248_v39, 16  ;;  %v278_v43 = vld [vmem:[%s3428_s7 + $0x8c] sm:$0x1] }
  0x36   : > { %v453_v55 = vsel %vm3447_vm3, %v448_v42, %v452_v45  ;;  %v467_v56 = vsel %vm3447_vm3, %v462_v46, %v466_v32  ;;  %v492_v57 = vshrl.u32 %v248_v39, 16  ;;  %v2814_v58 = vcombine.low %v247_v27, %v248_v39 }
  0x37   : > { %v2778_v59 = vcombine.low %v443_v50, %v453_v55  ;;  %v477_v60 = vsel %vm3447_vm3, %v472_v51, %v476_v47  ;;  %v490_v61 = vrot.slane %v488_v53, 5  ;;  %v503_v62 = vshrl.u32 %v249_v49, 16 }
  0x38   : > { %v2779_v1 = vcombine.low %v467_v56, %v477_v60  ;;  %v494_v2 = vrot.slane %v492_v57, 4  ;;  %3184 = vmatprep.mubr.msk.bf16.mxu1 %vm734_vm2, %v2814_v58  ;;  %v506_v3 = vshll.u32 %v249_v49, 16  ;;  %v512_v5 = vshll.u32 %v250_v54, 16  ;;  %v256_v60 = vld [vmem:[%s3428_s7 + $0x94] sm:$0xf] }
  0x39   : > { %3144 = vmatprep.mubr.msk.bf16.mxu0 %vm734_vm2, %v2778_v59  ;;  %v505_v7 = vrot.slane %v503_v62, 4  ;;  %v516_v8 = vshrl.u32 %v250_v54, 16  ;;  %v2815_v9 = vcombine.low %v249_v49, %v250_v54  ;;  %v485_v10 = vor.u32 %v484_v52, %v481_v48  ;;  %v255_v48 = vld [vmem:[%s3428_s7 + $0x90] sm:$0xf] }
  0x3a   : > { %3145 = vmatmul.mubr.msk.bf16.gmra.mxu0 %vm734_vm2, %v2779_v1  ;;  %v508_v12 = vrot.slane %v506_v3, 5  ;;  %v514_v13 = vrot.slane %v512_v5, 5  ;;  %v495_v14 = vor.u32 %v494_v2, %v490_v61  ;;  %v498_v15 = vshll.u32 %v275_v63, 16  ;;  %v257_v2 = vld [vmem:[%s3428_s7 + $0x9c] sm:$0xf] }
  0x3b   : > { %v518_v16 = vrot.slane %v516_v8, 4  ;;  %3185 = vmatmul.mubr.msk.bf16.gmra.mxu1 %vm734_vm2, %v2815_v9  ;;  %v486_v17 = vrot.slane %v485_v10, 4  ;;  %v522_v18 = vshll.u32 %v276_v0, 16  ;;  %v527_v19 = vshrl.u32 %v251_v6, 16  ;;  %v258_v8 = vld [vmem:[%s3428_s7 + $0xa0] sm:$0xf] }
  0x3c   : > { %v496_v20 = vrot.slane %v495_v14, 4  ;;  %v500_v21 = vrot.slane %v498_v15, 5  ;;  %v509_v22 = vor.u32 %v508_v12, %v505_v7  ;;  %v530_v23 = vshll.u32 %v251_v6, 16 }
  0x3d   : > { %v491_v24 = vsel %vm3447_vm3, %v486_v17, %v490_v61  ;;  %v519_v25 = vor.u32 %v518_v16, %v514_v13  ;;  %v524_v26 = vrot.slane %v522_v18, 5  ;;  %v529_v27 = vrot.slane %v527_v19, 4  ;;  %v280_v18 = vld [vmem:[%s3428_s7 + $0xa4] sm:$0x1]  ;;  %v259_v19 = vld [vmem:[%s3428_s7 + $0xa8] sm:$0xf] }
  0x3e   : > { %v501_v29 = vsel %vm3447_vm3, %v496_v20, %v500_v21  ;;  %v510_v30 = vrot.slane %v509_v22, 4  ;;  %v532_v31 = vrot.slane %v530_v23, 5  ;;  %v536_v32 = vshll.u32 %v252_v11, 16 }
  0x3f   : > { %v2780_v33 = vcombine.low %v491_v24, %v501_v29  ;;  %v520_v34 = vrot.slane %v519_v25, 4  ;;  %v540_v36 = vshrl.u32 %v252_v11, 16  ;;  %v2816_v37 = vcombine.low %v251_v6, %v252_v11 }
  0x40   : > { %v515_v39 = vsel %vm3447_vm3, %v510_v30, %v514_v13  ;;  %v538_v40 = vrot.slane %v536_v32, 5  ;;  %v551_v41 = vshrl.u32 %v253_v28, 16  ;;  %v554_v42 = vshll.u32 %v253_v28, 16  ;;  %v279_v13 = vld [vmem:[%s3428_s7 + $0x98] sm:$0x1] }
  0x41   : > { %3148 = vmatprep.mubr.msk.bf16.mxu0 %vm734_vm2, %v2780_v33  ;;  %v525_v44 = vsel %vm3447_vm3, %v520_v34, %v524_v26  ;;  %v542_v45 = vrot.slane %v540_v36, 4  ;;  %3188 = vmatprep.mubr.msk.bf16.mxu1 %vm734_vm2, %v2816_v37  ;;  %v560_v46 = vshll.u32 %v254_v4, 16  ;;  %v564_v47 = vshrl.u32 %v254_v4, 16 }
  0x42   : > { %v2781_v49 = vcombine.low %v515_v39, %v525_v44  ;;  %v553_v50 = vrot.slane %v551_v41, 4  ;;  %v556_v51 = vrot.slane %v554_v42, 5  ;;  %v2817_v52 = vcombine.low %v253_v28, %v254_v4  ;;  %v260_v39 = vld [vmem:[%s3428_s7 + $0xac] sm:$0xf] }
  0x43   : > { %v562_v53 = vrot.slane %v560_v46, 5  ;;  %v566_v54 = vrot.slane %v564_v47, 4  ;;  %v533_v55 = vor.u32 %v532_v31, %v529_v27  ;;  %v543_v56 = vor.u32 %v542_v45, %v538_v40 }
  0x44   : > { %3149 = vmatmul.mubr.msk.bf16.gmra.mxu0 %vm734_vm2, %v2781_v49  ;;  %3189 = vmatmul.mubr.msk.bf16.gmra.mxu1 %vm734_vm2, %v2817_v52  ;;  %v546_v57 = vshll.u32 %v277_v38, 16  ;;  %v557_v58 = vor.u32 %v556_v51, %v553_v50  ;;  %v570_v59 = vshll.u32 %v278_v43, 16  ;;  %v575_v61 = vshrl.u32 %v255_v48, 16  ;;  %v261_v49 = vld [vmem:[%s3428_s7 + $0xb4] sm:$0xf] }
  0x45   : > { %v534_v62 = vrot.slane %v533_v55, 4  ;;  %v544_v63 = vrot.slane %v543_v56, 4  ;;  %v567_v0 = vor.u32 %v566_v54, %v562_v53  ;;  %v578_v1 = vshll.u32 %v255_v48, 16  ;;  %v262_v50 = vld [vmem:[%s3428_s7 + $0xb8] sm:$0xf] }
  0x46   : > { %v548_v3 = vrot.slane %v546_v57, 5  ;;  %v558_v5 = vrot.slane %v557_v58, 4  ;;  %v572_v6 = vrot.slane %v570_v59, 5  ;;  %v577_v7 = vrot.slane %v575_v61, 4  ;;  %v281_v59 = vld [vmem:[%s3428_s7 + $0xb0] sm:$0x1] }
  0x47   : > { %v539_v9 = vsel %vm3447_vm3, %v534_v62, %v538_v40  ;;  %v568_v10 = vrot.slane %v567_v0, 4  ;;  %v580_v11 = vrot.slane %v578_v1, 5  ;;  %v584_v12 = vshll.u32 %v256_v60, 16 }
  0x48   : > { %v549_v14 = vsel %vm3447_vm3, %v544_v63, %v548_v3  ;;  %v563_v15 = vsel %vm3447_vm3, %v558_v5, %v562_v53  ;;  %v588_v16 = vshrl.u32 %v256_v60, 16  ;;  %v2818_v17 = vcombine.low %v255_v48, %v256_v60  ;;  %v282_v60 = vld [vmem:[%s3428_s7 + $0xbc] sm:$0x1] }
  0x49   : > { %v2782_v20 = vcombine.low %v539_v9, %v549_v14  ;;  %v573_v21 = vsel %vm3447_vm3, %v568_v10, %v572_v6  ;;  %v586_v22 = vrot.slane %v584_v12, 5  ;;  %v599_v23 = vshrl.u32 %v257_v2, 16  ;;  %v2906_v6 = vld [vmem:[%s3428_s7 + $0xc] sm:$0xf] }
  0x4a   : > { %v2783_v24 = vcombine.low %v563_v15, %v573_v21  ;;  %v590_v25 = vrot.slane %v588_v16, 4  ;;  %3192 = vmatprep.mubr.msk.bf16.mxu1 %vm734_vm2, %v2818_v17  ;;  %v602_v26 = vshll.u32 %v257_v2, 16  ;;  %v608_v27 = vshll.u32 %v258_v8, 16  ;;  %v2907_v15 = vld [vmem:[%s3428_s7 + $0x10] sm:$0xf] }
  0x4b   : > { %3152 = vmatprep.mubr.msk.bf16.mxu0 %vm734_vm2, %v2782_v20  ;;  %v601_v28 = vrot.slane %v599_v23, 4  ;;  %v612_v29 = vshrl.u32 %v258_v8, 16  ;;  %v2819_v30 = vcombine.low %v257_v2, %v258_v8  ;;  %v581_v31 = vor.u32 %v580_v11, %v577_v7 }
  0x4c   : > { %3153 = vmatmul.mubr.msk.bf16.gmra.mxu0 %vm734_vm2, %v2783_v24  ;;  %v604_v32 = vrot.slane %v602_v26, 5  ;;  %v610_v4 = vrot.slane %v608_v27, 5  ;;  %v591_v33 = vor.u32 %v590_v25, %v586_v22  ;;  %v594_v34 = vshll.u32 %v279_v13, 16  ;;  %v2909_v25 = vld [vmem:[%s3428_s7 + $0x18] sm:$0xf] }
  0x4d   : > { %v614_v36 = vrot.slane %v612_v29, 4  ;;  %3193 = vmatmul.mubr.msk.bf16.gmra.mxu1 %vm734_vm2, %v2819_v30  ;;  %v582_v37 = vrot.slane %v581_v31, 4  ;;  %v618_v38 = vshll.u32 %v280_v18, 16  ;;  %v623_v40 = vshrl.u32 %v259_v19, 16 }
  0x4e   : > { %v592_v41 = vrot.slane %v591_v33, 4  ;;  %v596_v42 = vrot.slane %v594_v34, 5  ;;  %v605_v43 = vor.u32 %v604_v32, %v601_v28  ;;  %v626_v44 = vshll.u32 %v259_v19, 16 }
  0x4f   : > { %v587_v45 = vsel %vm3447_vm3, %v582_v37, %v586_v22  ;;  %v615_v46 = vor.u32 %v614_v36, %v610_v4  ;;  %v620_v47 = vrot.slane %v618_v38, 5  ;;  %v625_v48 = vrot.slane %v623_v40, 4  ;;  %v2910_v38 = vld [vmem:[%s3428_s7 + $0x1c] sm:$0xf] }
  0x50   : > { %v597_v51 = vsel %vm3447_vm3, %v592_v41, %v596_v42  ;;  %v606_v52 = vrot.slane %v605_v43, 4  ;;  %v628_v53 = vrot.slane %v626_v44, 5  ;;  %v632_v54 = vshll.u32 %v260_v39, 16  ;;  %v2911_v43 = vld [vmem:[%s3428_s7 + $0x20] sm:$0x1]  ;;  %v3321_v44 = vld [vmem:[%s3428_s7 + $0xc] sm:$0xff]  }
  0x51   : > { %v2784_v55 = vcombine.low %v587_v45, %v597_v51  ;;  %v616_v56 = vrot.slane %v615_v46, 4  ;;  %v636_v57 = vshrl.u32 %v260_v39, 16  ;;  %v2820_v58 = vcombine.low %v259_v19, %v260_v39  ;;  %v2908_v19 = vld [vmem:[%s3428_s7 + $0x14] sm:$0x1]  ;;  %v2912_v45 = vld [vmem:[%s3428_s7 + $0x24] sm:$0xf] }
  0x52   : > { %v611_v61 = vsel %vm3447_vm3, %v606_v52, %v610_v4  ;;  %v634_v62 = vrot.slane %v632_v54, 5  ;;  %v647_v63 = vshrl.u32 %v261_v49, 16  ;;  %v650_v0 = vshll.u32 %v261_v49, 16 }
  0x53   : > { %3156 = vmatprep.mubr.msk.bf16.mxu0 %vm734_vm2, %v2784_v55  ;;  %v621_v1 = vsel %vm3447_vm3, %v616_v56, %v620_v47  ;;  %v638_v2 = vrot.slane %v636_v57, 4  ;;  %3196 = vmatprep.mubr.msk.bf16.mxu1 %vm734_vm2, %v2820_v58  ;;  %v656_v3 = vshll.u32 %v262_v50, 16  ;;  %v660_v5 = vshrl.u32 %v262_v50, 16  ;;  %v2914_v55 = vld [vmem:[%s3428_s7 + $0x2c] sm:$0x1] }
  0x54   : > { %v2785_v7 = vcombine.low %v611_v61, %v621_v1  ;;  %v649_v8 = vrot.slane %v647_v63, 4  ;;  %v652_v9 = vrot.slane %v650_v0, 5  ;;  %v2821_v10 = vcombine.low %v261_v49, %v262_v50  ;;  %v2913_v50 = vld [vmem:[%s3428_s7 + $0x28] sm:$0xf] }
  0x55   : > { %v658_v11 = vrot.slane %v656_v3, 5  ;;  %v662_v12 = vrot.slane %v660_v5, 4  ;;  %v629_v13 = vor.u32 %v628_v53, %v625_v48  ;;  %v639_v14 = vor.u32 %v638_v2, %v634_v62 }
  0x56   : > { %3157 = vmatmul.mubr.msk.bf16.gmra.mxu0 %vm734_vm2, %v2785_v7  ;;  %3197 = vmatmul.mubr.msk.bf16.gmra.mxu1 %vm734_vm2, %v2821_v10  ;;  %v642_v16 = vshll.u32 %v281_v59, 16  ;;  %v653_v17 = vor.u32 %v652_v9, %v649_v8  ;;  %v666_v18 = vshll.u32 %v282_v60, 16  ;;  %v1664_v20 = vshrl.u32 %v2906_v6, 16  ;;  %v2915_v60 = vld [vmem:[%s3428_s7 + $0x30] sm:$0xf] }
  0x57   : > { %v630_v21 = vrot.slane %v629_v13, 4  ;;  %v640_v22 = vrot.slane %v639_v14, 4  ;;  %v663_v23 = vor.u32 %v662_v12, %v658_v11  ;;  %v1667_v24 = vshll.u32 %v2906_v6, 16  ;;  %v2916_v14 = vld [vmem:[%s3428_s7 + $0x34] sm:$0xf] }
  0x58   : > { %v644_v26 = vrot.slane %v642_v16, 5  ;;  %v654_v27 = vrot.slane %v653_v17, 4  ;;  %v668_v28 = vrot.slane %v666_v18, 5  ;;  %v1666_v29 = vrot.slane %v1664_v20, 4  ;;  %v2917_v20 = vld [vmem:[%s3428_s7 + $0x38] sm:$0x1] }
  0x59   : > { %v635_v30 = vsel %vm3447_vm3, %v630_v21, %v634_v62  ;;  %v664_v31 = vrot.slane %v663_v23, 4  ;;  %v1669_v32 = vrot.slane %v1667_v24, 5  ;;  %v1673_v4 = vshll.u32 %v2907_v15, 16  ;;  %v3323_v21 = vld [vmem:[%s3428_s7 + $0x24] sm:$0xff]  }
  0x5a   : > { %v645_v33 = vsel %vm3447_vm3, %v640_v22, %v644_v26  ;;  %v659_v34 = vsel %vm3447_vm3, %v654_v27, %v658_v11  ;;  %v1677_v36 = vshrl.u32 %v2907_v15, 16  ;;  %v1683_v37 = vshll.u32 %v2908_v19, 16  ;;  %v3322_v11 = vld [vmem:[%s3428_s7 + $0x18] sm:$0xff]  }
  0x5b   : > { %v2786_v39 = vcombine.low %v635_v30, %v645_v33  ;;  %v669_v40 = vsel %vm3447_vm3, %v664_v31, %v668_v28  ;;  %v1670_v41 = vor.u32 %v1669_v32, %v1666_v29  ;;  %v1675_v42 = vrot.slane %v1673_v4, 5  ;;  %v2918_v26 = vld [vmem:[%s3428_s7 + $0x3c] sm:$0xf]  ;;  %v2919_v31 = vld [vmem:[%s3428_s7 + $0x40] sm:$0xf] }
  0x5c   : > { %v2787_v46 = vcombine.low %v659_v34, %v669_v40  ;;  %v1679_v47 = vrot.slane %v1677_v36, 4  ;;  %v1685_v48 = vrot.slane %v1683_v37, 5  ;;  %v1688_v49 = vshrl.u32 %v2909_v25, 16  ;;  %v2920_v36 = vld [vmem:[%s3428_s7 + $0x44] sm:$0x1] }
  0x5d   : > { %3160 = vmatprep.mubr.msk.bf16.mxu0 %vm734_vm2, %v2786_v39  ;;  %v1671_v51 = vrot.slane %v1670_v41, 4  ;;  %v1691_v52 = vshll.u32 %v2909_v25, 16  ;;  %v1697_v53 = vshll.u32 %v2910_v38, 16  ;;  %v1701_v54 = vshrl.u32 %v2910_v38, 16  ;;  %v2921_v41 = vld [vmem:[%s3428_s7 + $0x48] sm:$0xf] }
  0x5e   : > { %3161 = vmatmul.mubr.msk.bf16.gmra.mxu0 %vm734_vm2, %v2787_v46  ;;  %v1680_v56 = vor.u32 %v1679_v47, %v1675_v42  ;;  %v1690_v57 = vrot.slane %v1688_v49, 4  ;;  %v1707_v58 = vshll.u32 %v2911_v43, 16  ;;  %v1712_v59 = vshrl.u32 %v2912_v45, 16 }
  0x5f   : > { %v1676_v61 = vsel %vm3447_vm3, %v1671_v51, %v1675_v42  ;;  %v1693_v62 = vrot.slane %v1691_v52, 5  ;;  %v1699_v63 = vrot.slane %v1697_v53, 5  ;;  %v1703_v0 = vrot.slane %v1701_v54, 4  ;;  %3204 = vmatprep.mubr.msk.bf16.mxu0 %vm734_vm2, %v3321_v44  ;;  %v3324_v52 = vld [vmem:[%s3428_s7 + $0x30] sm:$0xff]  }
  0x60   : > { %v1681_v1 = vrot.slane %v1680_v56, 4  ;;  %v1709_v2 = vrot.slane %v1707_v58, 5  ;;  %v1714_v3 = vrot.slane %v1712_v59, 4  ;;  %v1715_v5 = vshll.u32 %v2912_v45, 16 }
  0x61   : > { %v1694_v6 = vor.u32 %v1693_v62, %v1690_v57  ;;  %v1704_v7 = vor.u32 %v1703_v0, %v1699_v63  ;;  %v1721_v8 = vshll.u32 %v2913_v50, 16  ;;  %v1725_v9 = vshrl.u32 %v2913_v50, 16  ;;  %v2923_v0 = vld [vmem:[%s3428_s7 + $0x50] sm:$0x1] }
  0x62   : > { %v1686_v10 = vsel %vm3447_vm3, %v1681_v1, %v1685_v48  ;;  %v1717_v12 = vrot.slane %v1715_v5, 5  ;;  %v1731_v13 = vshll.u32 %v2914_v55, 16  ;;  %v1736_v15 = vshrl.u32 %v2915_v60, 16  ;;  %v2922_v55 = vld [vmem:[%s3428_s7 + $0x4c] sm:$0xf] }
  0x63   : > { %v2954_v16 = vcombine.low %v1676_v61, %v1686_v10  ;;  %v1695_v17 = vrot.slane %v1694_v6, 4  ;;  %v1705_v18 = vrot.slane %v1704_v7, 4  ;;  %v1723_v19 = vrot.slane %v1721_v8, 5  ;;  %v2924_v7 = vld [vmem:[%s3428_s7 + $0x54] sm:$0xf] }
  0x64   : > { %v1718_v22 = vor.u32 %v1717_v12, %v1714_v3  ;;  %v1727_v23 = vrot.slane %v1725_v9, 4  ;;  %v1733_v24 = vrot.slane %v1731_v13, 5  ;;  %v1738_v25 = vrot.slane %v1736_v15, 4  ;;  %v2925_v12 = vld [vmem:[%s3428_s7 + $0x58] sm:$0xf] }
  0x65   : > { %3240 = vmatprep.mubr.msk.bf16.mxu1 %vm734_vm2, %v2954_v16  ;;  %v1700_v27 = vsel %vm3447_vm3, %v1695_v17, %v1699_v63  ;;  %v1710_v28 = vsel %vm3447_vm3, %v1705_v18, %v1709_v2  ;;  %v1739_v29 = vshll.u32 %v2915_v60, 16  ;;  %v1745_v30 = vshll.u32 %v2916_v14, 16  ;;  %v3325_v60 = vld [vmem:[%s3428_s7 + $0x3c] sm:$0xff]  }
  0x66   : > { %v2955_v32 = vcombine.low %v1700_v27, %v1710_v28  ;;  %3205 = vmatmul.mubr.msk.bf16.vlgmr.msra.gmra.mxu0 %vm734_vm2, %v3322_v11  ;;  %v1719_v4 = vrot.slane %v1718_v22, 4  ;;  %v1728_v33 = vor.u32 %v1727_v23, %v1723_v19  ;;  %v1749_v34 = vshrl.u32 %v2916_v14, 16  ;;  %v2926_v17 = vld [vmem:[%s3428_s7 + $0x5c] sm:$0x1]  ;;  %v2927_v18 = vld [vmem:[%s3428_s7 + $0x60] sm:$0xf] }
  0x67   : > { %v1741_v37 = vrot.slane %v1739_v29, 5  ;;  %v1747_v38 = vrot.slane %v1745_v30, 5  ;;  %v1755_v39 = vshll.u32 %v2917_v20, 16  ;;  %3208 = vmatprep.mubr.msk.bf16.mxu0 %vm734_vm2, %v3323_v21  ;;  %v1760_v40 = vshrl.u32 %v2918_v26, 16  ;;  %v3326_v29 = vld [vmem:[%s3428_s7 + $0x48] sm:$0xff]  }
  0x68   : > { %3241 = vmatmul.mubr.msk.bf16.vlgmr.msra.gmra.mxu1 %vm734_vm2, %v2955_v32  ;;  %v1724_v42 = vsel %vm3447_vm3, %v1719_v4, %v1723_v19  ;;  %v1729_v43 = vrot.slane %v1728_v33, 4  ;;  %v1751_v44 = vrot.slane %v1749_v34, 4  ;;  %v1763_v45 = vshll.u32 %v2918_v26, 16 }
  0x69   : > { %v1742_v46 = vor.u32 %v1741_v37, %v1738_v25  ;;  %v1757_v47 = vrot.slane %v1755_v39, 5  ;;  %v1762_v48 = vrot.slane %v1760_v40, 4  ;;  %v1769_v49 = vshll.u32 %v2919_v31, 16  ;;  %v3327_v37 = vld [vmem:[%s3428_s7 + $0x54] sm:$0xff]  }
  0x6a   : > { %v1734_v50 = vsel %vm3447_vm3, %v1729_v43, %v1733_v24  ;;  %v1752_v51 = vor.u32 %v1751_v44, %v1747_v38  ;;  %v1765_v53 = vrot.slane %v1763_v45, 5  ;;  %v1773_v54 = vshrl.u32 %v2919_v31, 16  ;;  %v2929_v45 = vld [vmem:[%s3428_s7 + $0x68] sm:$0x1] }
  0x6b   : > { %v2956_v56 = vcombine.low %v1724_v42, %v1734_v50  ;;  %v1743_v57 = vrot.slane %v1742_v46, 4  ;;  %v1771_v58 = vrot.slane %v1769_v49, 5  ;;  %v1779_v59 = vshll.u32 %v2920_v36, 16  ;;  %v2928_v36 = vld [vmem:[%s3428_s7 + $0x64] sm:$0xf] }
  0x6c   : > { %v1753_v61 = vrot.slane %v1752_v51, 4  ;;  %v1766_v62 = vor.u32 %v1765_v53, %v1762_v48  ;;  %v1775_v63 = vrot.slane %v1773_v54, 4  ;;  %v1784_v1 = vshrl.u32 %v2921_v41, 16  ;;  %v2930_v51 = vld [vmem:[%s3428_s7 + $0x6c] sm:$0xf] }
  0x6d   : > { %3244 = vmatprep.mubr.msk.bf16.mxu1 %vm734_vm2, %v2956_v56  ;;  %v1748_v2 = vsel %vm3447_vm3, %v1743_v57, %v1747_v38  ;;  %v1781_v3 = vrot.slane %v1779_v59, 5  ;;  %v1787_v5 = vshll.u32 %v2921_v41, 16  ;;  %v1793_v6 = vshll.u32 %v2922_v55, 16  ;;  %v2931_v56 = vld [vmem:[%s3428_s7 + $0x70] sm:$0xf] }
  0x6e   : > { %v1758_v8 = vsel %vm3447_vm3, %v1753_v61, %v1757_v47  ;;  %3209 = vmatmul.mubr.msk.bf16.gmra.mxu0 %vm734_vm2, %v3324_v52  ;;  %v1767_v9 = vrot.slane %v1766_v62, 4  ;;  %v1776_v10 = vor.u32 %v1775_v63, %v1771_v58  ;;  %v1786_v11 = vrot.slane %v1784_v1, 4 }
  0x6f   : > { %v2957_v13 = vcombine.low %v1748_v2, %v1758_v8  ;;  %v1789_v14 = vrot.slane %v1787_v5, 5  ;;  %v1795_v15 = vrot.slane %v1793_v6, 5  ;;  %v1797_v16 = vshrl.u32 %v2922_v55, 16  ;;  %3212 = vmatprep.mubr.msk.bf16.mxu0 %vm734_vm2, %v3325_v60  ;;  %v3328_v5 = vld [vmem:[%s3428_s7 + $0x60] sm:$0xff]   ;;  %v2933_v8 = vld [vmem:[%s3428_s7 + $0x78] sm:$0xf] }
  0x70   : > { %v1772_v19 = vsel %vm3447_vm3, %v1767_v9, %v1771_v58  ;;  %v1777_v20 = vrot.slane %v1776_v10, 4  ;;  %v1803_v21 = vshll.u32 %v2923_v0, 16  ;;  %v1808_v22 = vshrl.u32 %v2924_v7, 16  ;;  %v2932_v0 = vld [vmem:[%s3428_s7 + $0x74] sm:$0x1] }
  0x71   : > { %3245 = vmatmul.mubr.msk.bf16.gmra.mxu1 %vm734_vm2, %v2957_v13  ;;  %v1790_v23 = vor.u32 %v1789_v14, %v1786_v11  ;;  %v1799_v24 = vrot.slane %v1797_v16, 4  ;;  %v1811_v25 = vshll.u32 %v2924_v7, 16  ;;  %v1817_v26 = vshll.u32 %v2925_v12, 16  ;;  %v2934_v13 = vld [vmem:[%s3428_s7 + $0x7c] sm:$0xf]  ;;  %v3329_v14 = vld [vmem:[%s3428_s7 + $0x6c] sm:$0xff]  }
  0x72   : > { %v1782_v27 = vsel %vm3447_vm3, %v1777_v20, %v1781_v3  ;;  %v1805_v28 = vrot.slane %v1803_v21, 5  ;;  %v1810_v30 = vrot.slane %v1808_v22, 4  ;;  %v1821_v31 = vshrl.u32 %v2925_v12, 16  ;;  %v2935_v21 = vld [vmem:[%s3428_s7 + $0x80] sm:$0x1] }
  0x73   : > { %v2958_v32 = vcombine.low %v1772_v19, %v1782_v27  ;;  %v1791_v4 = vrot.slane %v1790_v23, 4  ;;  %v1800_v33 = vor.u32 %v1799_v24, %v1795_v15  ;;  %v1813_v34 = vrot.slane %v1811_v25, 5 }
  0x74   : > { %v1819_v38 = vrot.slane %v1817_v26, 5  ;;  %v1823_v39 = vrot.slane %v1821_v31, 4  ;;  %v1827_v40 = vshll.u32 %v2926_v17, 16  ;;  %v1832_v41 = vshrl.u32 %v2927_v18, 16 }
  0x75   : > { %3248 = vmatprep.mubr.msk.bf16.mxu1 %vm734_vm2, %v2958_v32  ;;  %v1796_v42 = vsel %vm3447_vm3, %v1791_v4, %v1795_v15  ;;  %v1801_v43 = vrot.slane %v1800_v33, 4  ;;  %v1814_v44 = vor.u32 %v1813_v34, %v1810_v30  ;;  %v1835_v46 = vshll.u32 %v2927_v18, 16  ;;  %v2937_v4 = vld [vmem:[%s3428_s7 + $0x88] sm:$0xf] }
  0x76   : > { %3213 = vmatmul.mubr.msk.bf16.gmra.mxu0 %vm734_vm2, %v3326_v29  ;;  %v1824_v47 = vor.u32 %v1823_v39, %v1819_v38  ;;  %v1829_v48 = vrot.slane %v1827_v40, 5  ;;  %v1834_v49 = vrot.slane %v1832_v41, 4  ;;  %v1841_v50 = vshll.u32 %v2928_v36, 16 }
  0x77   : > { %v1806_v52 = vsel %vm3447_vm3, %v1801_v43, %v1805_v28  ;;  %v1815_v53 = vrot.slane %v1814_v44, 4  ;;  %v1837_v54 = vrot.slane %v1835_v46, 5  ;;  %v1845_v55 = vshrl.u32 %v2928_v36, 16  ;;  %3216 = vmatprep.mubr.msk.bf16.mxu0 %vm734_vm2, %v3327_v37  ;;  %v2936_v28 = vld [vmem:[%s3428_s7 + $0x84] sm:$0xf]  ;;  %v3330_v44 = vld [vmem:[%s3428_s7 + $0x78] sm:$0xff]  }
  0x78   : > { %v2959_v57 = vcombine.low %v1796_v42, %v1806_v52  ;;  %v1825_v58 = vrot.slane %v1824_v47, 4  ;;  %v1843_v59 = vrot.slane %v1841_v50, 5  ;;  %v1851_v60 = vshll.u32 %v2929_v45, 16  ;;  %v2938_v45 = vld [vmem:[%s3428_s7 + $0x8c] sm:$0x1] }
  0x79   : > { %v1820_v61 = vsel %vm3447_vm3, %v1815_v53, %v1819_v38  ;;  %v1838_v62 = vor.u32 %v1837_v54, %v1834_v49  ;;  %v1847_v63 = vrot.slane %v1845_v55, 4  ;;  %v1856_v1 = vshrl.u32 %v2930_v51, 16  ;;  %v2939_v52 = vld [vmem:[%s3428_s7 + $0x90] sm:$0xf]  ;;  %v3331_v53 = vld [vmem:[%s3428_s7 + $0x84] sm:$0xff]  }
  0x7a   : > { %3249 = vmatmul.mubr.msk.bf16.gmra.mxu1 %vm734_vm2, %v2959_v57  ;;  %v1830_v2 = vsel %vm3447_vm3, %v1825_v58, %v1829_v48  ;;  %v1853_v3 = vrot.slane %v1851_v60, 5  ;;  %v1859_v6 = vshll.u32 %v2930_v51, 16  ;;  %v1865_v7 = vshll.u32 %v2931_v56, 16  ;;  %v2940_v58 = vld [vmem:[%s3428_s7 + $0x94] sm:$0xf] }
  0x7b   : > { %v2960_v9 = vcombine.low %v1820_v61, %v1830_v2  ;;  %v1839_v10 = vrot.slane %v1838_v62, 4  ;;  %v1848_v11 = vor.u32 %v1847_v63, %v1843_v59  ;;  %v1858_v12 = vrot.slane %v1856_v1, 4  ;;  %v2941_v1 = vld [vmem:[%s3428_s7 + $0x98] sm:$0x1] }
  0x7c   : > { %v1861_v15 = vrot.slane %v1859_v6, 5  ;;  %v1867_v16 = vrot.slane %v1865_v7, 5  ;;  %v1869_v17 = vshrl.u32 %v2931_v56, 16  ;;  %v1875_v18 = vshll.u32 %v2932_v0, 16 }
  0x7d   : > { %3252 = vmatprep.mubr.msk.bf16.mxu1 %vm734_vm2, %v2960_v9  ;;  %v1844_v19 = vsel %vm3447_vm3, %v1839_v10, %v1843_v59  ;;  %v1849_v20 = vrot.slane %v1848_v11, 4  ;;  %v1880_v22 = vshrl.u32 %v2933_v8, 16  ;;  %v1883_v23 = vshll.u32 %v2933_v8, 16  ;;  %v2942_v9 = vld [vmem:[%s3428_s7 + $0x9c] sm:$0xf] }
  0x7e   : > { %3217 = vmatmul.mubr.msk.bf16.gmra.mxu0 %vm734_vm2, %v3328_v5  ;;  %v1862_v24 = vor.u32 %v1861_v15, %v1858_v12  ;;  %v1871_v25 = vrot.slane %v1869_v17, 4  ;;  %v1877_v26 = vrot.slane %v1875_v18, 5  ;;  %v1889_v27 = vshll.u32 %v2934_v13, 16 }
  0x7f   : > { %v1854_v29 = vsel %vm3447_vm3, %v1849_v20, %v1853_v3  ;;  %v1882_v30 = vrot.slane %v1880_v22, 4  ;;  %v1885_v31 = vrot.slane %v1883_v23, 5  ;;  %v1893_v32 = vshrl.u32 %v2934_v13, 16  ;;  %3220 = vmatprep.mubr.msk.bf16.mxu0 %vm734_vm2, %v3329_v14  ;;  %v2943_v14 = vld [vmem:[%s3428_s7 + $0xa0] sm:$0xf] }
  0x80   : > { %v2961_v33 = vcombine.low %v1844_v19, %v1854_v29  ;;  %v1863_v34 = vrot.slane %v1862_v24, 4  ;;  %v1872_v36 = vor.u32 %v1871_v25, %v1867_v16  ;;  %v1891_v37 = vrot.slane %v1889_v27, 5  ;;  %v3333_v24 = vld [vmem:[%s3428_s7 + $0x9c] sm:$0xff]  }
  0x81   : > { %v1886_v38 = vor.u32 %v1885_v31, %v1882_v30  ;;  %v1895_v39 = vrot.slane %v1893_v32, 4  ;;  %v1899_v40 = vshll.u32 %v2935_v21, 16  ;;  %v1904_v41 = vshrl.u32 %v2936_v28, 16  ;;  %v3332_v21 = vld [vmem:[%s3428_s7 + $0x90] sm:$0xff]   ;;  %v2945_v30 = vld [vmem:[%s3428_s7 + $0xa8] sm:$0xf] }
  0x82   : > { %3253 = vmatmul.mubr.msk.bf16.gmra.mxu1 %vm734_vm2, %v2961_v33  ;;  %v1868_v42 = vsel %vm3447_vm3, %v1863_v34, %v1867_v16  ;;  %v1873_v43 = vrot.slane %v1872_v36, 4  ;;  %v1907_v46 = vshll.u32 %v2936_v28, 16  ;;  %v1913_v47 = vshll.u32 %v2937_v4, 16  ;;  %v2944_v28 = vld [vmem:[%s3428_s7 + $0xa4] sm:$0x1] }
  0x83   : > { %v1887_v48 = vrot.slane %v1886_v38, 4  ;;  %v1896_v49 = vor.u32 %v1895_v39, %v1891_v37  ;;  %v1901_v50 = vrot.slane %v1899_v40, 5  ;;  %v1906_v51 = vrot.slane %v1904_v41, 4  ;;  %v2946_v34 = vld [vmem:[%s3428_s7 + $0xac] sm:$0xf] }
  0x84   : > { %v1878_v54 = vsel %vm3447_vm3, %v1873_v43, %v1877_v26  ;;  %v1909_v55 = vrot.slane %v1907_v46, 5  ;;  %v1915_v56 = vrot.slane %v1913_v47, 5  ;;  %v1917_v57 = vshrl.u32 %v2937_v4, 16  ;;  %v2947_v46 = vld [vmem:[%s3428_s7 + $0xb0] sm:$0x1] }
  0x85   : > { %v2962_v59 = vcombine.low %v1868_v42, %v1878_v54  ;;  %v1892_v60 = vsel %vm3447_vm3, %v1887_v48, %v1891_v37  ;;  %v1897_v61 = vrot.slane %v1896_v49, 4  ;;  %v1923_v62 = vshll.u32 %v2938_v45, 16  ;;  %v2948_v49 = vld [vmem:[%s3428_s7 + $0xb4] sm:$0xf]  ;;  %v2949_v54 = vld [vmem:[%s3428_s7 + $0xb8] sm:$0xf] }
  0x86   : > { %3221 = vmatmul.mubr.msk.bf16.gmra.mxu0 %vm734_vm2, %v3330_v44  ;;  %v1910_v63 = vor.u32 %v1909_v55, %v1906_v51  ;;  %v1919_v0 = vrot.slane %v1917_v57, 4  ;;  %v1928_v2 = vshrl.u32 %v2939_v52, 16  ;;  %v1931_v3 = vshll.u32 %v2939_v52, 16 }
  0x87   : > { %3256 = vmatprep.mubr.msk.bf16.mxu1 %vm734_vm2, %v2962_v59  ;;  %v1902_v5 = vsel %vm3447_vm3, %v1897_v61, %v1901_v50  ;;  %v1925_v6 = vrot.slane %v1923_v62, 5  ;;  %v1937_v7 = vshll.u32 %v2940_v58, 16  ;;  %v1941_v8 = vshrl.u32 %v2940_v58, 16  ;;  %3224 = vmatprep.mubr.msk.bf16.mxu0 %vm734_vm2, %v3331_v53  ;;  %v3334_v62 = vld [vmem:[%s3428_s7 + $0xa8] sm:$0xff]  }
  0x88   : > { %v2963_v10 = vcombine.low %v1892_v60, %v1902_v5  ;;  %v1911_v11 = vrot.slane %v1910_v63, 4  ;;  %v1920_v12 = vor.u32 %v1919_v0, %v1915_v56  ;;  %v1930_v13 = vrot.slane %v1928_v2, 4  ;;  %v2950_v63 = vld [vmem:[%s3428_s7 + $0xbc] sm:$0x1] }
  0x89   : > { %v1933_v15 = vrot.slane %v1931_v3, 5  ;;  %v1939_v16 = vrot.slane %v1937_v7, 5  ;;  %v1943_v17 = vrot.slane %v1941_v8, 4  ;;  %v1947_v18 = vshll.u32 %v2941_v1, 16  ;;  %v3335_v7 = vld [vmem:[%s3428_s7 + $0xb4] sm:$0xff]  }
  0x8a   : > { %3257 = vmatmul.mubr.msk.bf16.gmra.mxu1 %vm734_vm2, %v2963_v10  ;;  %v1916_v19 = vsel %vm3447_vm3, %v1911_v11, %v1915_v56  ;;  %v1921_v20 = vrot.slane %v1920_v12, 4  ;;  %v1952_v22 = vshrl.u32 %v2942_v9, 16  ;;  %v1955_v23 = vshll.u32 %v2942_v9, 16 }
  0x8b   : > { %v1934_v25 = vor.u32 %v1933_v15, %v1930_v13  ;;  %v1944_v26 = vor.u32 %v1943_v17, %v1939_v16  ;;  %v1949_v27 = vrot.slane %v1947_v18, 5  ;;  %v1961_v29 = vshll.u32 %v2943_v14, 16 }
  0x8c   : > { %v1926_v31 = vsel %vm3447_vm3, %v1921_v20, %v1925_v6  ;;  %v1954_v32 = vrot.slane %v1952_v22, 4  ;;  %v1957_v4 = vrot.slane %v1955_v23, 5  ;;  %v1965_v33 = vshrl.u32 %v2943_v14, 16  ;;  %v2951_v6 = vld [vmem:[%s3428_s7 + $0xc0] sm:$0xf] }
  0x8d   : > { %v2964_v36 = vcombine.low %v1916_v19, %v1926_v31  ;;  %v1935_v37 = vrot.slane %v1934_v25, 4  ;;  %v1945_v38 = vrot.slane %v1944_v26, 4  ;;  %v1963_v39 = vrot.slane %v1961_v29, 5 }
  0x8e   : > { %3225 = vmatmul.mubr.msk.bf16.gmra.mxu0 %vm734_vm2, %v3332_v21  ;;  %v1958_v40 = vor.u32 %v1957_v4, %v1954_v32  ;;  %v1967_v41 = vrot.slane %v1965_v33, 4  ;;  %v1971_v42 = vshll.u32 %v2944_v28, 16  ;;  %v1976_v43 = vshrl.u32 %v2945_v30, 16 }
  0x8f   : > { %3260 = vmatprep.mubr.msk.bf16.mxu1 %vm734_vm2, %v2964_v36  ;;  %v1940_v44 = vsel %vm3447_vm3, %v1935_v37, %v1939_v16  ;;  %v1950_v45 = vsel %vm3447_vm3, %v1945_v38, %v1949_v27  ;;  %v1979_v47 = vshll.u32 %v2945_v30, 16  ;;  %v1985_v48 = vshll.u32 %v2946_v34, 16  ;;  %3228 = vmatprep.mubr.msk.bf16.mxu0 %vm734_vm2, %v3333_v24  ;;  %v2952_v16 = vld [vmem:[%s3428_s7 + $0xc4] sm:$0xf]  ;;  %v2953_v24 = vld [vmem:[%s3428_s7 + $0xc8] sm:$0x1] }
  0x90   : > { %v2965_v50 = vcombine.low %v1940_v44, %v1950_v45  ;;  %v1959_v51 = vrot.slane %v1958_v40, 4  ;;  %v1968_v52 = vor.u32 %v1967_v41, %v1963_v39  ;;  %v1973_v53 = vrot.slane %v1971_v42, 5  ;;  %v3336_v38 = vld [vmem:[%s3428_s7 + $0xc0] sm:$0xff]  }
  0x91   : > { %v1978_v55 = vrot.slane %v1976_v43, 4  ;;  %v1981_v56 = vrot.slane %v1979_v47, 5  ;;  %v1987_v57 = vrot.slane %v1985_v48, 5  ;;  %v1989_v58 = vshrl.u32 %v2946_v34, 16 }
  0x92   : > { %3261 = vmatmul.mubr.msk.bf16.gmra.mxu1 %vm734_vm2, %v2965_v50  ;;  %v1964_v59 = vsel %vm3447_vm3, %v1959_v51, %v1963_v39  ;;  %v1969_v60 = vrot.slane %v1968_v52, 4  ;;  %v1995_v61 = vshll.u32 %v2947_v46, 16  ;;  %v2000_v0 = vshrl.u32 %v2948_v49, 16 }
  0x93   : > { %v1982_v1 = vor.u32 %v1981_v56, %v1978_v55  ;;  %v1991_v2 = vrot.slane %v1989_v58, 4  ;;  %v2003_v3 = vshll.u32 %v2948_v49, 16  ;;  %v2009_v5 = vshll.u32 %v2949_v54, 16 }
  0x94   : > { %v1974_v8 = vsel %vm3447_vm3, %v1969_v60, %v1973_v53  ;;  %v1997_v9 = vrot.slane %v1995_v61, 5  ;;  %v2002_v10 = vrot.slane %v2000_v0, 4  ;;  %v2013_v11 = vshrl.u32 %v2949_v54, 16 }
  0x95   : > { %v2966_v12 = vcombine.low %v1964_v59, %v1974_v8  ;;  %v1983_v13 = vrot.slane %v1982_v1, 4  ;;  %v1992_v14 = vor.u32 %v1991_v2, %v1987_v57  ;;  %v2005_v15 = vrot.slane %v2003_v3, 5 }
  0x96   : > { %3229 = vmatmul.mubr.msk.bf16.gmra.mxu0 %vm734_vm2, %v3334_v62  ;;  %v2011_v17 = vrot.slane %v2009_v5, 5  ;;  %v2015_v18 = vrot.slane %v2013_v11, 4  ;;  %v2019_v19 = vshll.u32 %v2950_v63, 16  ;;  %v2024_v20 = vshrl.u32 %v2951_v6, 16 }
  0x97   : > { %3264 = vmatprep.mubr.msk.bf16.mxu1 %vm734_vm2, %v2966_v12  ;;  %v1988_v21 = vsel %vm3447_vm3, %v1983_v13, %v1987_v57  ;;  %v1993_v22 = vrot.slane %v1992_v14, 4  ;;  %v2006_v23 = vor.u32 %v2005_v15, %v2002_v10  ;;  %v2027_v25 = vshll.u32 %v2951_v6, 16  ;;  %3232 = vmatprep.mubr.msk.bf16.mxu0 %vm734_vm2, %v3335_v7 }
  0x98   : > { %v2016_v26 = vor.u32 %v2015_v18, %v2011_v17  ;;  %v2021_v27 = vrot.slane %v2019_v19, 5  ;;  %v2026_v28 = vrot.slane %v2024_v20, 4  ;;  %v2033_v29 = vshll.u32 %v2952_v16, 16 }
  0x99   : > { %v1998_v30 = vsel %vm3447_vm3, %v1993_v22, %v1997_v9  ;;  %v2007_v31 = vrot.slane %v2006_v23, 4  ;;  %v2029_v32 = vrot.slane %v2027_v25, 5  ;;  %v2037_v4 = vshrl.u32 %v2952_v16, 16 }
  0x9a   : > { %v2967_v33 = vcombine.low %v1988_v21, %v1998_v30  ;;  %v2017_v34 = vrot.slane %v2016_v26, 4  ;;  %v2035_v36 = vrot.slane %v2033_v29, 5  ;;  %v2043_v37 = vshll.u32 %v2953_v24, 16 }
  0x9b   : > { %v2012_v39 = vsel %vm3447_vm3, %v2007_v31, %v2011_v17  ;;  %v2030_v40 = vor.u32 %v2029_v32, %v2026_v28  ;;  %v2039_v41 = vrot.slane %v2037_v4, 4 }
  0x9c   : > { %3265 = vmatmul.mubr.msk.bf16.gmra.mxu1 %vm734_vm2, %v2967_v33  ;;  %v2022_v42 = vsel %vm3447_vm3, %v2017_v34, %v2021_v27  ;;  %v2045_v46 = vrot.slane %v2043_v37, 5 }
  0x9d   : > { %v2968_v43 = vcombine.low %v2012_v39, %v2022_v42  ;;  %v2031_v44 = vrot.slane %v2030_v40, 4  ;;  %v2040_v45 = vor.u32 %v2039_v41, %v2035_v36 }
  0x9e   : > { %3233 = vmatmul.mubr.msk.bf16.gmra.mxu0 %vm734_vm2, %v3336_v38 }
  0x9f   : > { %3268 = vmatprep.mubr.msk.bf16.mxu1 %vm734_vm2, %v2968_v43  ;;  %v2036_v47 = vsel %vm3447_vm3, %v2031_v44, %v2035_v36  ;;  %v2041_v48 = vrot.slane %v2040_v45, 4 }
  0xa1   : > { %v2046_v49 = vsel %vm3447_vm3, %v2041_v48, %v2045_v46 }
  0xa2   : > { %v2969_v50 = vcombine.low %v2036_v47, %v2046_v49 }
  0xa4   : > { %3269 = vmatmul.mubr.msk.bf16.gmra.mxu1 %vm734_vm2, %v2969_v50 }
  0xd8   : > { %v3751_v51 = vpop.f32.mrf.mxu1 }
  0xda   : > { %v3753_v52 = vpop.f32.mrf.mxu1 }
  0xdc   : > { %v3755_v53 = vpop.f32.mrf.mxu1 }
  0xde   : > { %v3757_v54 = vpop.f32.mrf.mxu1 }
  0xe0   : > { %v3759_v55 = vpop.f32.mrf.mxu0  ;;  %v3761_v56 = vpop.f32.mrf.mxu1 }
  0xe2   : > { %v3763_v57 = vpop.f32.mrf.mxu0  ;;  %v3765_v58 = vpop.f32.mrf.mxu1 }
  0xe4   : > { %v3767_v35 = vpop.f32.mrf.mxu0  ;;  %v3769_v59 = vpop.f32.mrf.mxu1 }
  0xe6   : > { %v3771_v60 = vpop.f32.mrf.mxu0  ;;  %v3773_v61 = vpop.f32.mrf.mxu1 }
  0xe8   : > { %v3775_v62 = vpop.f32.mrf.mxu0 }
  0xe9   : > { %v3777_v63 = vpop.f32.mrf.mxu1 }
  0xea   : > { %v3779_v0 = vpop.f32.mrf.mxu0 }
  0xeb   : > { %v3781_v1 = vpop.f32.mrf.mxu1 }
  0xec   : > { %v3783_v2 = vpop.f32.mrf.mxu0 }
  0xed   : > { %v3785_v3 = vpop.f32.mrf.mxu1 }
  0xee   : > { %v3787_v5 = vpop.f32.mrf.mxu0 }
  0xef   : > { %v3789_v6 = vpop.f32.mrf.mxu1 }
  0xf2   : > { %v3791_v7 = vpop.f32.mrf.mxu0  ;;  %v3793_v8 = vpop.f32.mrf.mxu1 }
  0xf4   : > { %v3795_v9 = vpop.f32.mrf.mxu0  ;;  %v1166_v10 = vpop.f32.mrf.mxu1 }
  0xf6   : > { %v3797_v11 = vpop.f32.mrf.mxu0  ;;  %v3799_v12 = vpop.f32.mrf.mxu1 }
  0xf8   : > { %v3801_v13 = vpop.f32.mrf.mxu0  ;;  %v3803_v14 = vpop.f32.mrf.mxu1 }
  0xfa   : > { %v3805_v15 = vpop.f32.mrf.mxu0 }
  0xfb   : > { %v3186_v16 = vpop.f32.mrf.mxu1 }
  0xfc   : > { %v865_v17 = vpop.f32.mrf.mxu0 }
  0xfd   : > { %v3807_v18 = vadd.f32 %v1166_v10, %v865_v17  ;;  %v1182_v19 = vpop.f32.mrf.mxu1 }
  0xfe   : > { %v3809_v20 = vpop.f32.mrf.mxu0 }
  0xff   : > { %v3811_v21 = vpop.f32.mrf.mxu1 }
 0x100   : > { %v3813_v22 = vpop.f32.mrf.mxu0 }
 0x101   : > { %v3815_v23 = vpop.f32.mrf.mxu1 }
 0x104   : > { %v3150_v24 = vpop.f32.mrf.mxu0  ;;  %v3190_v25 = vpop.f32.mrf.mxu1 }
 0x105   : > { %v3817_v26 = vadd.f32 %v3186_v16, %v3150_v24 }
 0x106   : > { %v881_v27 = vpop.f32.mrf.mxu0  ;;  %v3819_v28 = vpop.f32.mrf.mxu1 }
 0x107   : > { %v3821_v29 = vadd.f32 %v1182_v19, %v881_v27 }
 0x108   : > { %v3823_v30 = vpop.f32.mrf.mxu0  ;;  %v3825_v31 = vpop.f32.mrf.mxu1 }
 0x10a   : > { %v3827_v32 = vpop.f32.mrf.mxu0  ;;  %v1201_v4 = vpop.f32.mrf.mxu1 }
 0x10c   : > { %v3154_v33 = vpop.f32.mrf.mxu0 }
 0x10d   : > { %v3829_v34 = vadd.f32 %v3190_v25, %v3154_v33  ;;  %v3194_v36 = vpop.f32.mrf.mxu1 }
 0x10e   : > { %v3831_v37 = vpop.f32.mrf.mxu0 }
 0x10f   : > { %v1214_v38 = vpop.f32.mrf.mxu1 }
 0x110   : > { %v3833_v39 = vpop.f32.mrf.mxu0 }
 0x111   : > { %v3195_v40 = vpop.f32.mrf.mxu1 }
 0x112   : > { %v900_v41 = vpop.f32.mrf.mxu0 }
 0x113   : > { %v3835_v42 = vadd.f32 %v1201_v4, %v900_v41  ;;  %v1217_v43 = vpop.f32.mrf.mxu1 }
 0x116   : > { %v3158_v44 = vpop.f32.mrf.mxu0  ;;  %v3198_v47 = vpop.f32.mrf.mxu1 }
 0x117   : > { %v3837_v45 = vadd.f32 %v3194_v36, %v3158_v44 }
 0x118   : > { %v913_v46 = vpop.f32.mrf.mxu0  ;;  %v1230_v16 = vpop.f32.mrf.mxu1 }
 0x119   : > { %v3839_v48 = vadd.f32 %v1214_v38, %v913_v46  ;;  %v1119_v46 = vadd.f32 %v3753_v52, %v3763_v57  ;;  %v3870_v52 = vld [vmem:[%s4063_s3] ss:$0 sm:$0xff] }
 0x11a   : > { %v3159_v49 = vpop.f32.mrf.mxu0  ;;  %v3199_v25 = vpop.f32.mrf.mxu1 }
 0x11b   : > { %v3841_v50 = vadd.f32 %v3195_v40, %v3159_v49  ;;  %v1127_v40 = vadd.f32 %v3751_v51, %v3759_v55 }
 0x11c   : > { %v916_v10 = vpop.f32.mrf.mxu0  ;;  %v1233_v38 = vpop.f32.mrf.mxu1 }
 0x11d   : > { %v3843_v17 = vadd.f32 %v1217_v43, %v916_v10  ;;  %v3861_v10 = vld [vmem:[%s4062_s2] ss:$0 sm:$0xff] }
 0x11e   : > { %v3162_v19 = vpop.f32.mrf.mxu0 }
 0x11f   : > { %v3845_v24 = vadd.f32 %v3198_v47, %v3162_v19  ;;  %v1130_v19 = vadd.f32 %v3755_v53, %v3767_v35 }
 0x120   : > { %v929_v27 = vpop.f32.mrf.mxu0 }
 0x121   : > { %v3847_v4 = vadd.f32 %v1230_v16, %v929_v27  ;;  %v1122_v27 = vadd.f32 %v3757_v54, %v3771_v60 }
 0x122   : > { %v3163_v33 = vpop.f32.mrf.mxu0 }
 0x123   : > { %v3849_v36 = vadd.f32 %v3199_v25, %v3163_v33 }
 0x124   : > { %v932_v41 = vpop.f32.mrf.mxu0 }
 0x125   : > { %v3854_v44 = vadd.f32 %v1233_v38, %v932_v41 }
 0x126   : > { %v3206_v43 = vpop.f32.mrf.mxu0 }
 0x127   : > { %v1585_v47 = vadd.f32 %v3206_v43, %v1127_v40 }
 0x128   : > { %v3242_v49 = vpop.f32.mrf.mxu1  ;;  %v1456_v16 = vpop.f32.mrf.mxu0 }
 0x129   : > { %v2322_v25 = vadd.f32 %v3242_v49, %v1585_v47  ;;  %v1583_v51 = vadd.f32 %v1456_v16, %v1119_v46  ;;  %v1143_v49 = vadd.f32 %v3761_v56, %v3775_v62  ;;  %v1135_v16 = vadd.f32 %v3765_v58, %v3779_v0 }
 0x12a   : > { %v2193_v55 = vpop.f32.mrf.mxu1  ;;  %v3207_v57 = vpop.f32.mrf.mxu0 }
 0x12b   : > { %v2361_v33 = vmul.f32 %v3861_v10, %v2322_v25  ;;  %v2320_v38 = vadd.f32 %v2193_v55, %v1583_v51  ;;  %v1586_v41 = vadd.f32 %v3207_v57, %v1130_v19  ;;  %v1146_v55 = vadd.f32 %v3769_v59, %v3783_v2 }
 0x12c   : > { %v3243_v53 = vpop.f32.mrf.mxu1  ;;  %v1459_v35 = vpop.f32.mrf.mxu0  ;;  %v1138_v57 = vadd.f32 %v3773_v61, %v3787_v5 }
 0x12d   : > { %v2400_v40 = vadd.f32 %v3870_v52, %v2361_v33  ;;  %v2359_v43 = vmul.f32 %v3861_v10, %v2320_v38  ;;  %v2323_v46 = vadd.f32 %v3243_v53, %v1586_v41  ;;  %v1584_v47 = vadd.f32 %v1459_v35, %v1122_v27 }
 0x12e   : > { %v2196_v54 = vpop.f32.mrf.mxu1  ;;  %v3210_v60 = vpop.f32.mrf.mxu0 }
 0x12f   : > { %vm2432_vm5 = vcmp.ge.f32.partialorder %v2400_v40, 0.0  ;;  %v2464_v19 = vmul.f32 0.2, %v2400_v40  ;;  %v2398_v25 = vadd.f32 %v3870_v52, %v2359_v43  ;;  %v2362_v51 = vmul.f32 %v3861_v10, %v2323_v46 }
 0x130   : > { %v2321_v56 = vadd.f32 %v2196_v54, %v1584_v47  ;;  %v1589_v62 = vadd.f32 %v3210_v60, %v1143_v49  ;;  %v1472_v27 = vpop.f32.mrf.mxu0 }
 0x131   : > { %v2496_v58 = vsel %vm2432_vm5, %v2400_v40, %v2464_v19  ;;  %vm2430_vm6 = vcmp.ge.f32.partialorder %v2398_v25, 0.0  ;;  %v2462_v0 = vmul.f32 0.2, %v2398_v25  ;;  %v2401_v33 = vadd.f32 %v3870_v52, %v2362_v51  ;;  %v3246_v38 = vpop.f32.mrf.mxu1 }
 0x132   : > { %v3026_v41 = vpack.c.bf16 %v2496_v58, %v2496_v58  ;;  %v2360_v59 = vmul.f32 %v3861_v10, %v2321_v56  ;;  %v2326_v2 = vadd.f32 %v3246_v38, %v1589_v62  ;;  %v1587_v61 = vadd.f32 %v1472_v27, %v1135_v16  ;;  %v3211_v5 = vpop.f32.mrf.mxu0 }
 0x133   : > { %v2494_v53 = vsel %vm2430_vm6, %v2398_v25, %v2462_v0  ;;  %vm2433_vm7 = vcmp.ge.f32.partialorder %v2401_v33, 0.0  ;;  %v2465_v35 = vmul.f32 0.2, %v2401_v33  ;;  %v2209_v43 = vpop.f32.mrf.mxu1  ;;  %v1590_v46 = vadd.f32 %v3211_v5, %v1146_v55 }
 0x134   : > { %2657 = vst.msk [vmem:[%s3891_s25 + $0x8] sm:$0xf] %vm2654_vm4, %v3026_v41  ;;  %v3024_v40 = vpack.c.bf16 %v2494_v53, %v2494_v53  ;;  %v2399_v47 = vadd.f32 %v3870_v52, %v2360_v59  ;;  %v2365_v49 = vmul.f32 %v3861_v10, %v2326_v2  ;;  %v2324_v54 = vadd.f32 %v2209_v43, %v1587_v61  ;;  %v1475_v60 = vpop.f32.mrf.mxu0 }
 0x135   : > { %v1159_v19 = vadd.f32 %v3777_v63, %v3791_v7  ;;  %v1151_v16 = vadd.f32 %v3781_v1, %v3795_v9  ;;  %v2497_v25 = vsel %vm2433_vm7, %v2401_v33, %v2465_v35  ;;  %v3247_v51 = vpop.f32.mrf.mxu1  ;;  %v1588_v56 = vadd.f32 %v1475_v60, %v1138_v57 }
 0x136   : > { %2655 = vst.msk [vmem:[%s3891_s25] sm:$0xf] %vm2654_vm4, %v3024_v40  ;;  %v3027_v55 = vpack.c.bf16 %v2497_v25, %v2497_v25  ;;  %vm2431_vm8 = vcmp.ge.f32.partialorder %v2399_v47, 0.0  ;;  %v2463_v62 = vmul.f32 0.2, %v2399_v47  ;;  %v2404_v27 = vadd.f32 %v3870_v52, %v2365_v49  ;;  %v3214_v58 = vpop.f32.mrf.mxu0 }
 0x137   : > { %v1162_v0 = vadd.f32 %v3785_v3, %v3797_v11  ;;  %v2363_v63 = vmul.f32 %v3861_v10, %v2324_v54  ;;  %v2212_v7 = vpop.f32.mrf.mxu1  ;;  %v2327_v38 = vadd.f32 %v3247_v51, %v1590_v46  ;;  %v1593_v41 = vadd.f32 %v3214_v58, %v1159_v19 }
 0x138   : > { %2658 = vst.msk [vmem:[%s3891_s25 + $0xc] sm:$0xf] %vm2654_vm4, %v3027_v55  ;;  %v2495_v1 = vsel %vm2431_vm8, %v2399_v47, %v2463_v62  ;;  %vm2436_vm9 = vcmp.ge.f32.partialorder %v2404_v27, 0.0  ;;  %v2468_v9 = vmul.f32 0.2, %v2404_v27  ;;  %v2325_v57 = vadd.f32 %v2212_v7, %v1588_v56  ;;  %v1488_v33 = vpop.f32.mrf.mxu0 }
 0x139   : > { %v3025_v59 = vpack.c.bf16 %v2495_v1, %v2495_v1  ;;  %v2402_v2 = vadd.f32 %v3870_v52, %v2363_v63  ;;  %v2366_v61 = vmul.f32 %v3861_v10, %v2327_v38  ;;  %v1591_v5 = vadd.f32 %v1488_v33, %v1151_v16 }
 0x13a   : > { %v1154_v3 = vadd.f32 %v3789_v6, %v3801_v13  ;;  %v1175_v11 = vadd.f32 %v3793_v8, %v3805_v15  ;;  %v2500_v53 = vsel %vm2436_vm9, %v2404_v27, %v2468_v9  ;;  %v3250_v35 = vpop.f32.mrf.mxu1  ;;  %v2364_v43 = vmul.f32 %v3861_v10, %v2325_v57  ;;  %v3215_v46 = vpop.f32.mrf.mxu0 }
 0x13b   : > { %2656 = vst.msk [vmem:[%s3891_s25 + $0x4] sm:$0xf] %vm2654_vm4, %v3025_v59  ;;  %v3030_v40 = vpack.c.bf16 %v2500_v53, %v2500_v53  ;;  %vm2434_vm10 = vcmp.ge.f32.partialorder %v2402_v2, 0.0  ;;  %v2466_v47 = vmul.f32 0.2, %v2402_v2  ;;  %v2405_v49 = vadd.f32 %v3870_v52, %v2366_v61 }
 0x13c   : > { %v1178_v54 = vadd.f32 %v3799_v12, %v3809_v20  ;;  %v2403_v6 = vadd.f32 %v3870_v52, %v2364_v43  ;;  %v2225_v13 = vpop.f32.mrf.mxu1  ;;  %v2330_v8 = vadd.f32 %v3250_v35, %v1593_v41  ;;  %v1594_v15 = vadd.f32 %v3215_v46, %v1162_v0  ;;  %v1491_v60 = vpop.f32.mrf.mxu0 }
 0x13d   : > { %2661 = vst.msk [vmem:[%s3891_s25 + $0x18] sm:$0xf] %vm2654_vm4, %v3030_v40  ;;  %v2498_v19 = vsel %vm2434_vm10, %v2402_v2, %v2466_v47  ;;  %vm2437_vm11 = vcmp.ge.f32.partialorder %v2405_v49, 0.0  ;;  %v2469_v16 = vmul.f32 0.2, %v2405_v49  ;;  %v2328_v25 = vadd.f32 %v2225_v13, %v1591_v5 }
 0x13e   : > { %v3028_v51 = vpack.c.bf16 %v2498_v19, %v2498_v19  ;;  %vm2435_vm12 = vcmp.ge.f32.partialorder %v2403_v6, 0.0  ;;  %v2467_v56 = vmul.f32 0.2, %v2403_v6  ;;  %v2369_v55 = vmul.f32 %v3861_v10, %v2330_v8  ;;  %v3251_v62 = vpop.f32.mrf.mxu1  ;;  %v3218_v12 = vpop.f32.mrf.mxu0 }
 0x13f   : > { %v2501_v20 = vsel %vm2437_vm11, %v2405_v49, %v2469_v16  ;;  %v2367_v27 = vmul.f32 %v3861_v10, %v2328_v25  ;;  %v2331_v58 = vadd.f32 %v3251_v62, %v1594_v15  ;;  %v1592_v0 = vadd.f32 %v1491_v60, %v1154_v3 }
 0x140   : > { %2659 = vst.msk [vmem:[%s3891_s25 + $0x10] sm:$0xf] %vm2654_vm4, %v3028_v51  ;;  %v3031_v63 = vpack.c.bf16 %v2501_v20, %v2501_v20  ;;  %v2499_v7 = vsel %vm2435_vm12, %v2403_v6, %v2467_v56  ;;  %v2408_v38 = vadd.f32 %v3870_v52, %v2369_v55  ;;  %v2228_v41 = vpop.f32.mrf.mxu1  ;;  %v1597_v1 = vadd.f32 %v3218_v12, %v1175_v11  ;;  %v1504_v9 = vpop.f32.mrf.mxu0 }
 0x141   : > { %v3029_v57 = vpack.c.bf16 %v2499_v7, %v2499_v7  ;;  %v2406_v33 = vadd.f32 %v3870_v52, %v2367_v27  ;;  %v2370_v59 = vmul.f32 %v3861_v10, %v2331_v58  ;;  %v2329_v2 = vadd.f32 %v2228_v41, %v1592_v0 }
 0x142   : > { %v1170_v61 = vadd.f32 %v3803_v14, %v3813_v22  ;;  %2662 = vst.msk [vmem:[%s3891_s25 + $0x1c] sm:$0xf] %vm2654_vm4, %v3031_v63  ;;  %vm2440_vm13 = vcmp.ge.f32.partialorder %v2408_v38, 0.0  ;;  %v2472_v5 = vmul.f32 0.2, %v2408_v38  ;;  %v3254_v3 = vpop.f32.mrf.mxu1  ;;  %v1595_v53 = vadd.f32 %v1504_v9, %v3807_v18  ;;  %v3219_v35 = vpop.f32.mrf.mxu0 }
 0x143   : > { %2660 = vst.msk [vmem:[%s3891_s25 + $0x14] sm:$0xf] %vm2654_vm4, %v3029_v57  ;;  %vm2438_vm14 = vcmp.ge.f32.partialorder %v2406_v33, 0.0  ;;  %v2470_v11 = vmul.f32 0.2, %v2406_v33  ;;  %v2409_v43 = vadd.f32 %v3870_v52, %v2370_v59  ;;  %v2368_v46 = vmul.f32 %v3861_v10, %v2329_v2 }
 0x144   : > { %v1194_v40 = vadd.f32 %v3811_v21, %v3823_v30  ;;  %v2504_v14 = vsel %vm2440_vm13, %v2408_v38, %v2472_v5  ;;  %v2241_v22 = vpop.f32.mrf.mxu1  ;;  %v2334_v47 = vadd.f32 %v3254_v3, %v1597_v1  ;;  %v1598_v49 = vadd.f32 %v3219_v35, %v1178_v54  ;;  %v1507_v6 = vpop.f32.mrf.mxu0 }
 0x145   : > { %v3034_v18 = vpack.c.bf16 %v2504_v14, %v2504_v14  ;;  %v2502_v13 = vsel %vm2438_vm14, %v2406_v33, %v2470_v11  ;;  %vm2441_vm15 = vcmp.ge.f32.partialorder %v2409_v43, 0.0  ;;  %v2473_v8 = vmul.f32 0.2, %v2409_v43 }
 0x146   : > { %v3032_v15 = vpack.c.bf16 %v2502_v13, %v2502_v13  ;;  %v2407_v60 = vadd.f32 %v3870_v52, %v2368_v46  ;;  %v2373_v19 = vmul.f32 %v3861_v10, %v2334_v47  ;;  %v3255_v16 = vpop.f32.mrf.mxu1  ;;  %v2332_v25 = vadd.f32 %v2241_v22, %v1595_v53  ;;  %v3222_v51 = vpop.f32.mrf.mxu0 }
 0x147   : > { %2665 = vst.msk [vmem:[%s3891_s25 + $0x28] sm:$0xf] %vm2654_vm4, %v3034_v18  ;;  %v2505_v21 = vsel %vm2441_vm15, %v2409_v43, %v2473_v8  ;;  %v2335_v30 = vadd.f32 %v3255_v16, %v1598_v49  ;;  %v1596_v54 = vadd.f32 %v1507_v6, %v1170_v61  ;;  %v1601_v56 = vadd.f32 %v3222_v51, %v3817_v26 }
 0x148   : > { %2663 = vst.msk [vmem:[%s3891_s25 + $0x20] sm:$0xf] %vm2654_vm4, %v3032_v15  ;;  %v3035_v55 = vpack.c.bf16 %v2505_v21, %v2505_v21  ;;  %vm2439_vm0 = vcmp.ge.f32.partialorder %v2407_v60, 0.0  ;;  %v2471_v62 = vmul.f32 0.2, %v2407_v60  ;;  %v2412_v12 = vadd.f32 %v3870_v52, %v2373_v19  ;;  %v2244_v20 = vpop.f32.mrf.mxu1  ;;  %v1520_v27 = vpop.f32.mrf.mxu0 }
 0x149   : > { %v1186_v58 = vadd.f32 %v3815_v23, %v3827_v32  ;;  %v2371_v0 = vmul.f32 %v3861_v10, %v2332_v25  ;;  %v2374_v63 = vmul.f32 %v3861_v10, %v2335_v30  ;;  %v2333_v7 = vadd.f32 %v2244_v20, %v1596_v54 }
 0x14a   : > { %2666 = vst.msk [vmem:[%s3891_s25 + $0x2c] sm:$0xf] %vm2654_vm4, %v3035_v55  ;;  %v2503_v26 = vsel %vm2439_vm0, %v2407_v60, %v2471_v62  ;;  %vm2444_vm1 = vcmp.ge.f32.partialorder %v2412_v12, 0.0  ;;  %v2476_v38 = vmul.f32 0.2, %v2412_v12  ;;  %v3258_v41 = vpop.f32.mrf.mxu1  ;;  %v1599_v1 = vadd.f32 %v1520_v27, %v3821_v29  ;;  %v3223_v9 = vpop.f32.mrf.mxu0 }
 0x14b   : > { %v3033_v57 = vpack.c.bf16 %v2503_v26, %v2503_v26  ;;  %v2410_v33 = vadd.f32 %v3870_v52, %v2371_v0  ;;  %v2413_v23 = vadd.f32 %v3870_v52, %v2374_v63  ;;  %v2372_v32 = vmul.f32 %v3861_v10, %v2333_v7 }
 0x14c   : > { %v1199_v59 = vadd.f32 %v3819_v28, %v3831_v37  ;;  %v2508_v2 = vsel %vm2444_vm1, %v2412_v12, %v2476_v38  ;;  %v2257_v61 = vpop.f32.mrf.mxu1  ;;  %v2338_v5 = vadd.f32 %v3258_v41, %v1601_v56  ;;  %v1602_v3 = vadd.f32 %v3223_v9, %v1194_v40  ;;  %v1523_v53 = vpop.f32.mrf.mxu0 }
 0x14d   : > { %2664 = vst.msk [vmem:[%s3891_s25 + $0x24] sm:$0xf] %vm2654_vm4, %v3033_v57  ;;  %v3038_v29 = vpack.c.bf16 %v2508_v2, %v2508_v2  ;;  %vm2442_vm2 = vcmp.ge.f32.partialorder %v2410_v33, 0.0  ;;  %v2474_v35 = vmul.f32 0.2, %v2410_v33  ;;  %vm2445_vm3 = vcmp.ge.f32.partialorder %v2413_v23, 0.0 }
 0x14e   : > { %v2477_v11 = vmul.f32 0.2, %v2413_v23  ;;  %v2411_v43 = vadd.f32 %v3870_v52, %v2372_v32  ;;  %v2377_v46 = vmul.f32 %v3861_v10, %v2338_v5  ;;  %v3259_v14 = vpop.f32.mrf.mxu1  ;;  %v2336_v22 = vadd.f32 %v2257_v61, %v1599_v1  ;;  %v3226_v28 = vpop.f32.mrf.mxu0 }
 0x14f   : > { %2669 = vst.msk [vmem:[%s3891_s25 + $0x38] sm:$0xf] %vm2654_vm4, %v3038_v29  ;;  %v2506_v37 = vsel %vm2442_vm2, %v2410_v33, %v2474_v35  ;;  %v2339_v40 = vadd.f32 %v3259_v14, %v1602_v3  ;;  %v1600_v47 = vadd.f32 %v1523_v53, %v1186_v58  ;;  %v1605_v49 = vadd.f32 %v3226_v28, %v3829_v34 }
 0x150   : > { %v3036_v6 = vpack.c.bf16 %v2506_v37, %v2506_v37  ;;  %v2509_v18 = vsel %vm2445_vm3, %v2413_v23, %v2477_v11  ;;  %vm2443_vm5 = vcmp.ge.f32.partialorder %v2411_v43, 0.0  ;;  %v2475_v13 = vmul.f32 0.2, %v2411_v43  ;;  %v2260_v8 = vpop.f32.mrf.mxu1  ;;  %v1536_v15 = vpop.f32.mrf.mxu0 }
 0x151   : > { %v3039_v60 = vpack.c.bf16 %v2509_v18, %v2509_v18  ;;  %v2416_v19 = vadd.f32 %v3870_v52, %v2377_v46  ;;  %v2375_v16 = vmul.f32 %v3861_v10, %v2336_v22  ;;  %v2378_v25 = vmul.f32 %v3861_v10, %v2339_v40 }
 0x152   : > { %v1210_v51 = vadd.f32 %v3825_v31, %v3833_v39  ;;  %2667 = vst.msk [vmem:[%s3891_s25 + $0x30] sm:$0xf] %vm2654_vm4, %v3036_v6  ;;  %v2507_v34 = vsel %vm2443_vm5, %v2411_v43, %v2475_v13  ;;  %v3262_v21 = vpop.f32.mrf.mxu1  ;;  %v2337_v30 = vadd.f32 %v2260_v8, %v1600_v47  ;;  %v1603_v54 = vadd.f32 %v1536_v15, %v1199_v59  ;;  %v3227_v56 = vpop.f32.mrf.mxu0 }
 0x153   : > { %2670 = vst.msk [vmem:[%s3891_s25 + $0x3c] sm:$0xf] %vm2654_vm4, %v3039_v60  ;;  %v3037_v55 = vpack.c.bf16 %v2507_v34, %v2507_v34  ;;  %vm2448_vm6 = vcmp.ge.f32.partialorder %v2416_v19, 0.0  ;;  %v2480_v62 = vmul.f32 0.2, %v2416_v19  ;;  %v2414_v12 = vadd.f32 %v3870_v52, %v2375_v16 }
 0x154   : > { %v2417_v20 = vadd.f32 %v3870_v52, %v2378_v25  ;;  %v2376_v27 = vmul.f32 %v3861_v10, %v2337_v30  ;;  %v2273_v31 = vpop.f32.mrf.mxu1  ;;  %v2342_v39 = vadd.f32 %v3262_v21, %v1605_v49  ;;  %v1606_v58 = vadd.f32 %v3227_v56, %v1210_v51  ;;  %v1539_v0 = vpop.f32.mrf.mxu0 }
 0x155   : > { %2668 = vst.msk [vmem:[%s3891_s25 + $0x34] sm:$0xf] %vm2654_vm4, %v3037_v55  ;;  %v2512_v63 = vsel %vm2448_vm6, %v2416_v19, %v2480_v62  ;;  %vm2446_vm7 = vcmp.ge.f32.partialorder %v2414_v12, 0.0  ;;  %v2478_v7 = vmul.f32 0.2, %v2414_v12  ;;  %v2340_v26 = vadd.f32 %v2273_v31, %v1603_v54 }
 0x156   : > { %v3042_v38 = vpack.c.bf16 %v2512_v63, %v2512_v63  ;;  %vm2449_vm8 = vcmp.ge.f32.partialorder %v2417_v20, 0.0  ;;  %v2481_v41 = vmul.f32 0.2, %v2417_v20  ;;  %v2415_v1 = vadd.f32 %v3870_v52, %v2376_v27  ;;  %v3263_v9 = vpop.f32.mrf.mxu1  ;;  %v3230_v57 = vpop.f32.mrf.mxu0 }
 0x157   : > { %v2510_v33 = vsel %vm2446_vm7, %v2414_v12, %v2478_v7  ;;  %v2381_v23 = vmul.f32 %v3861_v10, %v2342_v39  ;;  %v2379_v32 = vmul.f32 %v3861_v10, %v2340_v26  ;;  %v2343_v59 = vadd.f32 %v3263_v9, %v1606_v58 }
 0x158   : > { %2673 = vst.msk [vmem:[%s3891_s25 + $0x48] sm:$0xf] %vm2654_vm4, %v3042_v38  ;;  %v3040_v2 = vpack.c.bf16 %v2510_v33, %v2510_v33  ;;  %v2513_v61 = vsel %vm2449_vm8, %v2417_v20, %v2481_v41  ;;  %vm2447_vm9 = vcmp.ge.f32.partialorder %v2415_v1, 0.0  ;;  %v2479_v5 = vmul.f32 0.2, %v2415_v1  ;;  %v2276_v3 = vpop.f32.mrf.mxu1  ;;  %v1552_v53 = vpop.f32.mrf.mxu0 }
 0x159   : > { %v3043_v29 = vpack.c.bf16 %v2513_v61, %v2513_v61  ;;  %v2420_v35 = vadd.f32 %v3870_v52, %v2381_v23  ;;  %v2418_v11 = vadd.f32 %v3870_v52, %v2379_v32  ;;  %v2382_v43 = vmul.f32 %v3861_v10, %v2343_v59 }
 0x15a   : > { %2671 = vst.msk [vmem:[%s3891_s25 + $0x40] sm:$0xf] %vm2654_vm4, %v3040_v2  ;;  %v2511_v46 = vsel %vm2447_vm9, %v2415_v1, %v2479_v5  ;;  %v1604_v14 = vadd.f32 %v1539_v0, %v3835_v42  ;;  %v1609_v22 = vadd.f32 %v3230_v57, %v3837_v45  ;;  %v1607_v28 = vadd.f32 %v1552_v53, %v3839_v48  ;;  %v3231_v37 = vpop.f32.mrf.mxu0 }
 0x15b   : > { %2674 = vst.msk [vmem:[%s3891_s25 + $0x4c] sm:$0xf] %vm2654_vm4, %v3043_v29  ;;  %v3041_v40 = vpack.c.bf16 %v2511_v46, %v2511_v46  ;;  %vm2452_vm10 = vcmp.ge.f32.partialorder %v2420_v35, 0.0  ;;  %v2484_v47 = vmul.f32 0.2, %v2420_v35  ;;  %vm2450_vm11 = vcmp.ge.f32.partialorder %v2418_v11, 0.0 }
 0x15c   : > { %v2482_v49 = vmul.f32 0.2, %v2418_v11  ;;  %v2421_v6 = vadd.f32 %v3870_v52, %v2382_v43  ;;  %v3266_v18 = vpop.f32.mrf.mxu1  ;;  %v2341_v13 = vadd.f32 %v2276_v3, %v1604_v14  ;;  %v1555_v8 = vpop.f32.mrf.mxu0  ;;  %v1610_v48 = vadd.f32 %v3231_v37, %v3841_v50 }
 0x15d   : > { %2672 = vst.msk [vmem:[%s3891_s25 + $0x44] sm:$0xf] %vm2654_vm4, %v3041_v40  ;;  %v2516_v42 = vsel %vm2452_vm10, %v2420_v35, %v2484_v47  ;;  %v2346_v45 = vadd.f32 %v3266_v18, %v1609_v22  ;;  %v1608_v50 = vadd.f32 %v1555_v8, %v3843_v17 }
 0x15e   : > { %v3046_v15 = vpack.c.bf16 %v2516_v42, %v2516_v42  ;;  %v2514_v60 = vsel %vm2450_vm11, %v2418_v11, %v2482_v49  ;;  %vm2453_vm12 = vcmp.ge.f32.partialorder %v2421_v6, 0.0  ;;  %v2485_v19 = vmul.f32 0.2, %v2421_v6  ;;  %v2289_v16 = vpop.f32.mrf.mxu1  ;;  %v3234_v25 = vpop.f32.mrf.mxu0 }
 0x15f   : > { %v3044_v51 = vpack.c.bf16 %v2514_v60, %v2514_v60  ;;  %v2380_v34 = vmul.f32 %v3861_v10, %v2341_v13  ;;  %v2385_v21 = vmul.f32 %v3861_v10, %v2346_v45  ;;  %v2344_v30 = vadd.f32 %v2289_v16, %v1607_v28 }
 0x160   : > { %2677 = vst.msk [vmem:[%s3891_s25 + $0x58] sm:$0xf] %vm2654_vm4, %v3046_v15  ;;  %v2517_v54 = vsel %vm2453_vm12, %v2421_v6, %v2485_v19  ;;  %v3267_v56 = vpop.f32.mrf.mxu1  ;;  %v1613_v55 = vadd.f32 %v3234_v25, %v3845_v24  ;;  %v1568_v62 = vpop.f32.mrf.mxu0 }
 0x161   : > { %2675 = vst.msk [vmem:[%s3891_s25 + $0x50] sm:$0xf] %vm2654_vm4, %v3044_v51  ;;  %v3047_v12 = vpack.c.bf16 %v2517_v54, %v2517_v54  ;;  %v2419_v20 = vadd.f32 %v3870_v52, %v2380_v34  ;;  %v2424_v27 = vadd.f32 %v3870_v52, %v2385_v21  ;;  %v2383_v31 = vmul.f32 %v3861_v10, %v2344_v30 }
 0x162   : > { %v2292_v39 = vpop.f32.mrf.mxu1  ;;  %v2347_v58 = vadd.f32 %v3267_v56, %v1610_v48  ;;  %v1611_v0 = vadd.f32 %v1568_v62, %v3847_v4  ;;  %v3235_v63 = vpop.f32.mrf.mxu0 }
 0x163   : > { %2678 = vst.msk [vmem:[%s3891_s25 + $0x5c] sm:$0xf] %vm2654_vm4, %v3047_v12  ;;  %vm2451_vm13 = vcmp.ge.f32.partialorder %v2419_v20, 0.0  ;;  %v2483_v17 = vmul.f32 0.2, %v2419_v20  ;;  %vm2456_vm14 = vcmp.ge.f32.partialorder %v2424_v27, 0.0  ;;  %v2422_v7 = vadd.f32 %v3870_v52, %v2383_v31 }
 0x164   : > { %v2488_v24 = vmul.f32 0.2, %v2424_v27  ;;  %v2386_v26 = vmul.f32 %v3861_v10, %v2347_v58  ;;  %v3270_v38 = vpop.f32.mrf.mxu1  ;;  %v2345_v41 = vadd.f32 %v2292_v39, %v1608_v50  ;;  %v1614_v1 = vadd.f32 %v3235_v63, %v3849_v36  ;;  %v1571_v9 = vpop.f32.mrf.mxu0 }
 0x165   : > { %v2515_v57 = vsel %vm2451_vm13, %v2419_v20, %v2483_v17  ;;  %v2350_v33 = vadd.f32 %v3270_v38, %v1613_v55  ;;  %v1612_v23 = vadd.f32 %v1571_v9, %v3854_v44  ;;  %vm2454_vm15 = vcmp.ge.f32.partialorder %v2422_v7, 0.0 }
 0x166   : > { %v2520_v4 = vsel %vm2456_vm14, %v2424_v27, %v2488_v24  ;;  %v3045_v32 = vpack.c.bf16 %v2515_v57, %v2515_v57  ;;  %v2486_v2 = vmul.f32 0.2, %v2422_v7  ;;  %v2305_v61 = vpop.f32.mrf.mxu1  ;;  %v2425_v5 = vadd.f32 %v3870_v52, %v2386_v26 }
 0x167   : > { %v3050_v59 = vpack.c.bf16 %v2520_v4, %v2520_v4  ;;  %v2384_v3 = vmul.f32 %v3861_v10, %v2345_v41  ;;  %v2389_v53 = vmul.f32 %v3861_v10, %v2350_v33  ;;  %v2348_v36 = vadd.f32 %v2305_v61, %v1611_v0 }
 0x168   : > { %2676 = vst.msk [vmem:[%s3891_s25 + $0x54] sm:$0xf] %vm2654_vm4, %v3045_v32  ;;  %v2518_v29 = vsel %vm2454_vm15, %v2422_v7, %v2486_v2  ;;  %v3271_v35 = vpop.f32.mrf.mxu1  ;;  %vm2457_vm0 = vcmp.ge.f32.partialorder %v2425_v5, 0.0  ;;  %v2489_v11 = vmul.f32 0.2, %v2425_v5 }
 0x169   : > { %2681 = vst.msk [vmem:[%s3891_s25 + $0x68] sm:$0xf] %vm2654_vm4, %v3050_v59  ;;  %v3048_v44 = vpack.c.bf16 %v2518_v29, %v2518_v29  ;;  %v2423_v43 = vadd.f32 %v3870_v52, %v2384_v3  ;;  %v2428_v46 = vadd.f32 %v3870_v52, %v2389_v53  ;;  %v2387_v14 = vmul.f32 %v3861_v10, %v2348_v36 }
 0x16a   : > { %v2308_v22 = vpop.f32.mrf.mxu1  ;;  %v2351_v28 = vadd.f32 %v3271_v35, %v1614_v1  ;;  %v2521_v37 = vsel %vm2457_vm0, %v2425_v5, %v2489_v11 }
 0x16b   : > { %2679 = vst.msk [vmem:[%s3891_s25 + $0x60] sm:$0xf] %vm2654_vm4, %v3048_v44  ;;  %vm2455_vm1 = vcmp.ge.f32.partialorder %v2423_v43, 0.0  ;;  %v2487_v40 = vmul.f32 0.2, %v2423_v43  ;;  %v2349_v47 = vadd.f32 %v2308_v22, %v1612_v23  ;;  %v3051_v49 = vpack.c.bf16 %v2521_v37, %v2521_v37 }
 0x16c   : > { %vm2460_vm2 = vcmp.ge.f32.partialorder %v2428_v46, 0.0  ;;  %v2492_v6 = vmul.f32 0.2, %v2428_v46  ;;  %v2426_v18 = vadd.f32 %v3870_v52, %v2387_v14  ;;  %v2390_v8 = vmul.f32 %v3861_v10, %v2351_v28 }
 0x16d   : > { %v2519_v13 = vsel %vm2455_vm1, %v2423_v43, %v2487_v40  ;;  %v2388_v42 = vmul.f32 %v3861_v10, %v2349_v47  ;;  %2682 = vst.msk [vmem:[%s3891_s25 + $0x6c] sm:$0xf] %vm2654_vm4, %v3051_v49 }
 0x16e   : > { %v3049_v45 = vpack.c.bf16 %v2519_v13, %v2519_v13  ;;  %v2524_v48 = vsel %vm2460_vm2, %v2428_v46, %v2492_v6  ;;  %vm2458_vm3 = vcmp.ge.f32.partialorder %v2426_v18, 0.0  ;;  %v2490_v15 = vmul.f32 0.2, %v2426_v18 }
 0x16f   : > { %v3054_v60 = vpack.c.bf16 %v2524_v48, %v2524_v48  ;;  %v2429_v19 = vadd.f32 %v3870_v52, %v2390_v8  ;;  %v2427_v16 = vadd.f32 %v3870_v52, %v2388_v42 }
 0x170   : > { %2680 = vst.msk [vmem:[%s3891_s25 + $0x64] sm:$0xf] %vm2654_vm4, %v3049_v45  ;;  %v2522_v25 = vsel %vm2458_vm3, %v2426_v18, %v2490_v15 }
 0x171   : > { %2685 = vst.msk [vmem:[%s3891_s25 + $0x78] sm:$0xf] %vm2654_vm4, %v3054_v60  ;;  %v3052_v10 = vpack.c.bf16 %v2522_v25, %v2522_v25  ;;  %vm2461_vm5 = vcmp.ge.f32.partialorder %v2429_v19, 0.0  ;;  %v2493_v51 = vmul.f32 0.2, %v2429_v19  ;;  %vm2459_vm6 = vcmp.ge.f32.partialorder %v2427_v16, 0.0 }
 0x172   : > { %v2491_v34 = vmul.f32 0.2, %v2427_v16 }
 0x173   : > { %2683 = vst.msk [vmem:[%s3891_s25 + $0x70] sm:$0xf] %vm2654_vm4, %v3052_v10  ;;  %v2525_v21 = vsel %vm2461_vm5, %v2429_v19, %v2493_v51 }
 0x174   : > { %v3055_v30 = vpack.c.bf16 %v2525_v21, %v2525_v21  ;;  %v2523_v54 = vsel %vm2459_vm6, %v2427_v16, %v2491_v34 }
 0x175   : > { %v3053_v56 = vpack.c.bf16 %v2523_v54, %v2523_v54 }
 0x176   : > { %2686 = vst.msk [vmem:[%s3891_s25 + $0x7c] sm:$0xf] %vm2654_vm4, %v3055_v30 }
 0x177   : > { %2684 = vst.msk [vmem:[%s3891_s25 + $0x74] sm:$0xf] %vm2654_vm4, %v3053_v56 }
 0x178 PF: > { %s14_s17 = sadd.s32 1, %s3359_s17   ;;  %s4067_s15 = smov %s3355_s16 }
 0x179   : > { %p11_p6 = scmp.ge.s32.totalorder %s14_s17, 4   ;;  %s4068_s16 = smov %s4070_s18 }
 0x17b   :  { %13 = sbr.rel (!%p11_p6) target bundleno = 2 (0x2), region = 67 }

// kernel: discriminator_forward.6
= control target key start
LH: loop header
LB: loop body
LE: loop exit
PB: predicated region body
PF: predicated region fallthrough
CT: control target
= control target key end

     0   :  { %s1641_s15 = smov 0   ;;  %s1643_s16 = smov 0   ;;  %s1908_s0 = inlined_call_operand.vmem [shape: bf16[2,1,9,9,128], index: 0, kind: input, shape index: {}]   ;;  %s1909_s1 = inlined_call_operand.vmem [shape: bf16[512,64], index: 1, kind: input, shape index: {}]   ;;  %s1910_s2 = inlined_call_operand.vmem [shape: f32[1,64], index: 2, kind: input, shape index: {}]   ;;  %s1911_s3 = inlined_call_operand.vmem [shape: f32[1,64], index: 3, kind: input, shape index: {}]   ;;  %s1912_s4 = inlined_call_operand.vmem [shape: bf16[128,64], index: 4, kind: output, shape index: {}]  }
   0x1   :  { %s1645_s17 = smov 0  }
   0x2 LB: > { %s26_s18 = sadd.s32 1, %s1610_s16  ;;  %p1287_p0 = scmp.ge.s32.totalorder %s1614_s17, 1  ;;  %s1614_s17 = sphi %s1645_s17, %s14_s17   ;;  %s1610_s16 = sphi %s1643_s16, %s1916_s16   ;;  %s1606_s15 = sphi %s1641_s15, %s1915_s15  }
   0x3   : > { %p28_p1 = scmp.ge.s32.totalorder %s26_s18, 2  ;;  %p182_p2 = scmp.lt.s32.totalorder %s1614_s17, 3 }
   0x5   : > { %s1918_s18 = smov (%p28_p1, %s26_s18), 0  ;;  %p183_p3 = pnand %p1287_p0, %p182_p2 }
   0x6   : > { %p213_p4 = scmp.lt.s32.totalorder (!%p183_p3), %s1606_s15, 1 }
   0x7   : > { %186 = sbr.rel (%p183_p3) target bundleno = 299 (0x12b), region = 36 }
   0xc   : > { %v1552_v0 = vld [vmem:[%s1909_s1 + $0x78] sm:$0xff]   ;;  %v1554_v2 = vld [vmem:[%s1909_s1 + $0x70] sm:$0xff]   ;;  %v1556_v4 = vld [vmem:[%s1909_s1 + $0x68] sm:$0xff]   ;;  %s214_s5 = scalar_select %p213_p4, %s1606_s15, 1  ;;  %vm263_vm0 = vsmask.f32 3328 }
   0xd   : > { %v1553_v1 = vld [vmem:[%s1909_s1 + $0x38] sm:$0xff]   ;;  %1431 = vmatprep.subr.bf16.mxu0 %v1552_v0  ;;  %v1555_v3 = vld [vmem:[%s1909_s1 + $0x30] sm:$0xff]   ;;  %v1557_v5 = vld [vmem:[%s1909_s1 + $0x28] sm:$0xff]   ;;  %vm264_vm1 = vsmask.f32 7440  ;;  %vm1197_vm3 = vcmask 519168  }
   0xe   : > { %1455 = vmatprep.subr.bf16.mxu1 %v1553_v1  ;;  %1432 = vmatpush3.bf16.msra.mxu0 %v1552_v0  ;;  %v1558_v6 = vld [vmem:[%s1909_s1 + $0x60] sm:$0xff]   ;;  %s1527_s10 = smul.u32 72, %s214_s5  ;;  %v1560_v8 = vld [vmem:[%s1909_s1 + $0x58] sm:$0xff]   ;;  %v1562_v10 = vld [vmem:[%s1909_s1 + $0x50] sm:$0xff]  }
   0xf   : > { %1456 = vmatpush3.bf16.msra.mxu1 %v1553_v1  ;;  %1433 = vmatprep.subr.bf16.mxu0 %v1554_v2  ;;  %v1559_v7 = vld [vmem:[%s1909_s1 + $0x20] sm:$0xff]   ;;  %v1561_v9 = vld [vmem:[%s1909_s1 + $0x18] sm:$0xff]   ;;  %v1563_v11 = vld [vmem:[%s1909_s1 + $0x10] sm:$0xff]  }
  0x10   : > { %1457 = vmatprep.subr.bf16.mxu1 %v1555_v3  ;;  %s1696_s21 = scalar_lea.vmem %s1908_s0, %s1527_s10  ;;  %v1564_v17 = vld [vmem:[%s1909_s1 + $0x48] sm:$0xff]   ;;  %v1566_v41 = vld [vmem:[%s1909_s1 + $0x40] sm:$0xff]   ;;  %vm1731_vm2 = vmor %vm263_vm0, %vm264_vm1 }
  0x11   : > { %v231_v12 = vld [vmem:[%s1696_s21] sm:$0xf]  ;;  %v232_v13 = vld [vmem:[%s1696_s21 + $0x8] sm:$0xf]  ;;  %v255_v14 = vld [vmem:[%s1696_s21 + $0x4] sm:$0x1] }
  0x12   : > { %1434 = vmatpush3.bf16.msra.mxu0 %v1554_v2  ;;  %v256_v15 = vld [vmem:[%s1696_s21 + $0xc] sm:$0x1]  ;;  %v1303_v16 = vcombine.low %v231_v12, %v232_v13  ;;  %v267_v18 = vshrl.u32 %v231_v12, 16  ;;  %v270_v19 = vshll.u32 %v231_v12, 16  ;;  %v276_v20 = vshll.u32 %v255_v14, 16  ;;  %v1567_v47 = vld [vmem:[%s1909_s1] sm:$0xff]  }
  0x13   : > { %1458 = vmatpush3.bf16.msra.mxu1 %v1555_v3  ;;  %1435 = vmatprep.subr.bf16.mxu0 %v1556_v4  ;;  %v281_v21 = vshrl.u32 %v232_v13, 16  ;;  %v1712_v22 = vld [vmem:[%s1696_s21 + $0x10] sm:$0xf]  ;;  %v1565_v23 = vld [vmem:[%s1909_s1 + $0x8] sm:$0xff]   ;;  %v284_v24 = vshll.u32 %v232_v13, 16  ;;  %v290_v25 = vshll.u32 %v256_v15, 16 }
  0x14   : > { %1459 = vmatprep.subr.bf16.mxu1 %v1557_v5  ;;  %1471 = vmatprep.mubr.bf16.mxu1 %v1303_v16  ;;  %v1718_v26 = vld [vmem:[%s1696_s21 + $0x18] sm:$0xf]  ;;  %v257_v27 = vld [vmem:[%s1696_s21 + $0x14] sm:$0x1]  ;;  %v269_v28 = vrot.slane %v267_v18, 4  ;;  %v272_v29 = vrot.slane %v270_v19, 5 }
  0x15   : > { %v278_v30 = vrot.slane %v276_v20, 5  ;;  %v283_v31 = vrot.slane %v281_v21, 4  ;;  %v258_v32 = vld [vmem:[%s1696_s21 + $0x1c] sm:$0x1]  ;;  %v286_v33 = vrot.slane %v284_v24, 5  ;;  %v292_v34 = vrot.slane %v290_v25, 5 }
  0x16   : > { %1436 = vmatpush3.bf16.msra.mxu0 %v1556_v4  ;;  %v295_v35 = vshrl.u32 %v1712_v22, 16  ;;  %v298_v36 = vshll.u32 %v1712_v22, 16  ;;  %v273_v37 = vor.u32 %v272_v29, %v269_v28  ;;  %v304_v38 = vshll.u32 %v257_v27, 16  ;;  %v1570_v61 = vld [vmem:[%s1909_s1 + $0xb8] sm:$0xff]   ;;  %v1572_v3 = vld [vmem:[%s1909_s1 + $0xb0] sm:$0xff]   ;;  %v1575_v13 = vld [vmem:[%s1909_s1 + $0xe8] sm:$0xff]  }
  0x17   : > { %1460 = vmatpush3.bf16.msra.mxu1 %v1557_v5  ;;  %1437 = vmatprep.subr.bf16.mxu0 %v1558_v6  ;;  %v309_v39 = vshrl.u32 %v1718_v26, 16  ;;  %v312_v40 = vshll.u32 %v1718_v26, 16  ;;  %v287_v43 = vor.u32 %v286_v33, %v283_v31  ;;  %v318_v46 = vshll.u32 %v258_v32, 16  ;;  %v1571_v63 = vld [vmem:[%s1909_s1 + $0xf8] sm:$0xff]   ;;  %v1573_v4 = vld [vmem:[%s1909_s1 + $0xf0] sm:$0xff]  }
  0x18   : > { %1461 = vmatprep.subr.bf16.mxu1 %v1559_v7  ;;  %v297_v44 = vrot.slane %v295_v35, 4  ;;  %v300_v45 = vrot.slane %v298_v36, 5  ;;  %v274_v48 = vrot.slane %v273_v37, 4  ;;  %v306_v53 = vrot.slane %v304_v38, 5  ;;  %v235_v5 = vld [vmem:[%s1696_s21 + $0x20] sm:$0xf] }
  0x19   : > { %v311_v49 = vrot.slane %v309_v39, 4  ;;  %v314_v50 = vrot.slane %v312_v40, 5  ;;  %v288_v51 = vrot.slane %v287_v43, 4  ;;  %v320_v56 = vrot.slane %v318_v46, 5  ;;  %v237_v18 = vld [vmem:[%s1696_s21 + $0x30] sm:$0xf] }
  0x1a   : > { %1438 = vmatpush3.bf16.msra.mxu0 %v1558_v6  ;;  %v301_v52 = vor.u32 %v300_v45, %v297_v44  ;;  %v279_v54 = vsel %vm1731_vm2, %v274_v48, %v278_v30  ;;  %v1304_v2 = vcombine.low %v1712_v22, %v1718_v26  ;;  %v236_v6 = vld [vmem:[%s1696_s21 + $0x28] sm:$0xf]  ;;  %v238_v21 = vld [vmem:[%s1696_s21 + $0x38] sm:$0xf]  ;;  %v261_v22 = vld [vmem:[%s1696_s21 + $0x34] sm:$0x1] }
  0x1b   : > { %1462 = vmatpush3.bf16.msra.mxu1 %v1559_v7  ;;  %1439 = vmatprep.subr.bf16.mxu0 %v1560_v8  ;;  %v315_v55 = vor.u32 %v314_v50, %v311_v49  ;;  %v293_v57 = vsel %vm1731_vm2, %v288_v51, %v292_v34  ;;  %v1574_v7 = vld [vmem:[%s1909_s1 + $0xa8] sm:$0xff]   ;;  %v1305_v12 = vcombine.low %v235_v5, %v236_v6  ;;  %v337_v15 = vshrl.u32 %v236_v6, 16  ;;  %v262_v27 = vld [vmem:[%s1696_s21 + $0x3c] sm:$0x1]  ;;  %v1576_v36 = vld [vmem:[%s1909_s1 + $0xa0] sm:$0xff]  }
  0x1c   : > { %1463 = vmatprep.subr.bf16.mxu1 %v1561_v9  ;;  %v302_v58 = vrot.slane %v301_v52, 4  ;;  %v1291_v59 = vcombine.low %v279_v54, %v293_v57  ;;  %v340_v16 = vshll.u32 %v236_v6, 16  ;;  %v351_v29 = vshrl.u32 %v237_v18, 16  ;;  %v1577_v40 = vld [vmem:[%s1909_s1 + $0xe0] sm:$0xff]   ;;  %v1578_v52 = vld [vmem:[%s1909_s1 + $0x98] sm:$0xff]  }
  0x1d   : > { %v316_v60 = vrot.slane %v315_v55, 4  ;;  %v339_v24 = vrot.slane %v337_v15, 4  ;;  %v354_v30 = vshll.u32 %v237_v18, 16  ;;  %v360_v31 = vshll.u32 %v261_v22, 16  ;;  %v1579_v55 = vld [vmem:[%s1909_s1 + $0xd8] sm:$0xff]  }
  0x1e   : > { %1440 = vmatpush3.bf16.msra.mxu0 %v1560_v8  ;;  %v307_v62 = vsel %vm1731_vm2, %v302_v58, %v306_v53  ;;  %1447 = vmatprep.mubr.bf16.mxu0 %v1291_v59  ;;  %v259_v8 = vld [vmem:[%s1696_s21 + $0x24] sm:$0x1]  ;;  %v342_v25 = vrot.slane %v340_v16, 5  ;;  %v365_v33 = vshrl.u32 %v238_v21, 16  ;;  %v368_v34 = vshll.u32 %v238_v21, 16 }
  0x1f   : > { %1464 = vmatpush3.bf16.msra.mxu1 %v1561_v9  ;;  %1441 = vmatprep.subr.bf16.mxu0 %v1562_v10  ;;  %v321_v0 = vsel %vm1731_vm2, %v316_v60, %v320_v56  ;;  %v260_v9 = vld [vmem:[%s1696_s21 + $0x2c] sm:$0x1]  ;;  %v332_v14 = vshll.u32 %v259_v8, 16  ;;  %v374_v35 = vshll.u32 %v262_v27, 16  ;;  %v353_v38 = vrot.slane %v351_v29, 4 }
  0x20   : > { %1465 = vmatprep.subr.bf16.mxu1 %v1563_v11  ;;  %v1292_v1 = vcombine.low %v307_v62, %v321_v0  ;;  %v343_v32 = vor.u32 %v342_v25, %v339_v24  ;;  %v356_v39 = vrot.slane %v354_v30, 5  ;;  %v367_v43 = vrot.slane %v365_v33, 4  ;;  %v1588_v58 = vld [vmem:[%s1696_s21 + $0x8] ss:$8 sps:$4 sm:$0xff]   ;;  %v1342_v22 = vld [vmem:[%s1696_s21 + $0x24] sm:$0x1] }
  0x21   : > { %v370_v44 = vrot.slane %v368_v34, 5  ;;  %v1306_v48 = vcombine.low %v237_v18, %v238_v21  ;;  %v376_v51 = vrot.slane %v374_v35, 5  ;;  %v1335_v60 = vld [vmem:[%s1696_s21 + $0x8] sm:$0xf]  ;;  %v1337_v62 = vld [vmem:[%s1696_s21 + $0x10] sm:$0xf] }
  0x22   : > { %1442 = vmatpush3.bf16.msra.mxu0 %v1562_v10  ;;  %v323_v10 = vshrl.u32 %v235_v5, 16  ;;  %v357_v46 = vor.u32 %v356_v39, %v353_v38  ;;  %v1582_v0 = vld [vmem:[%s1909_s1 + $0x90] sm:$0xff]   ;;  %v861_v6 = vshrl.u32 %v1337_v62, 16  ;;  %v1340_v18 = vld [vmem:[%s1696_s21 + $0x1c] sm:$0x1]  ;;  %v898_v29 = vshll.u32 %v1342_v22, 16 }
  0x23   : > { %1466 = vmatpush3.bf16.msra.mxu1 %v1563_v11  ;;  %1443 = vmatprep.subr.bf16.mxu0 %v1564_v17  ;;  %v326_v11 = vshll.u32 %v235_v5, 16  ;;  %v371_v50 = vor.u32 %v370_v44, %v367_v43  ;;  %v1583_v5 = vld [vmem:[%s1909_s1 + $0xd0] sm:$0xff]   ;;  %v884_v25 = vshll.u32 %v1340_v18, 16  ;;  %v1586_v34 = vld [vmem:[%s1909_s1 + $0x80] sm:$0xff]   ;;  %v1343_v43 = vld [vmem:[%s1696_s21 + $0x28] sm:$0xf] }
  0x24   : > { %1467 = vmatprep.subr.bf16.mxu1 %v1565_v23  ;;  %v325_v19 = vrot.slane %v323_v10, 4  ;;  %v358_v54 = vrot.slane %v357_v46, 4  ;;  %v1587_v35 = vld [vmem:[%s1909_s1 + $0xc0] sm:$0xff]   ;;  %v900_v39 = vrot.slane %v898_v29, 5  ;;  %v1344_v44 = vld [vmem:[%s1696_s21 + $0x2c] sm:$0x1] }
  0x25   : > { %v328_v20 = vrot.slane %v326_v11, 5  ;;  %v372_v56 = vrot.slane %v371_v50, 4  ;;  %v1584_v11 = vld [vmem:[%s1909_s1 + $0x88] sm:$0xff]   ;;  %v886_v33 = vrot.slane %v884_v25, 5  ;;  %v906_v50 = vshll.u32 %v1343_v43, 16 }
  0x26   : > { %1444 = vmatpush3.bf16.msra.mxu0 %v1564_v17  ;;  %v346_v17 = vshll.u32 %v260_v9, 16 }
  0x27   : > { %1468 = vmatpush3.bf16.msra.mxu1 %v1565_v23  ;;  %1445 = vmatprep.subr.bf16.mxu0 %v1566_v41  ;;  %v334_v23 = vrot.slane %v332_v14, 5  ;;  %v329_v28 = vor.u32 %v328_v20, %v325_v19  ;;  %v377_v59 = vsel %vm1731_vm2, %v372_v56, %v376_v51  ;;  %v1341_v19 = vld [vmem:[%s1696_s21 + $0x20] sm:$0xf]  ;;  %v1585_v20 = vld [vmem:[%s1909_s1 + $0xc8] sm:$0xff]  }
  0x28   : > { %1469 = vmatprep.subr.bf16.mxu1 %v1567_v47  ;;  %v348_v26 = vrot.slane %v346_v17, 5  ;;  %v1339_v17 = vld [vmem:[%s1696_s21 + $0x18] sm:$0xf]  ;;  %v889_v27 = vshrl.u32 %v1341_v19, 16 }
  0x29   : > { %v330_v37 = vrot.slane %v329_v28, 4  ;;  %v878_v24 = vshll.u32 %v1339_v17, 16  ;;  %v892_v28 = vshll.u32 %v1341_v19, 16 }
  0x2a   : > { %1446 = vmatpush3.bf16.msra.mxu0 %v1566_v41  ;;  %v344_v41 = vrot.slane %v343_v32, 4 }
  0x2b   : > { %1470 = vmatpush3.bf16.msra.mxu1 %v1567_v47  ;;  %1479 = vmatprep.subr.bf16.mxu0 %v1570_v61  ;;  %v335_v45 = vsel %vm1731_vm2, %v330_v37, %v334_v23  ;;  %v362_v47 = vrot.slane %v360_v31, 5  ;;  %v875_v23 = vshrl.u32 %v1339_v17, 16  ;;  %v880_v32 = vrot.slane %v878_v24, 5 }
  0x2c   : > { %1503 = vmatprep.subr.bf16.mxu1 %v1571_v63  ;;  %v349_v49 = vsel %vm1731_vm2, %v344_v41, %v348_v26  ;;  %v891_v37 = vrot.slane %v889_v27, 4  ;;  %v894_v38 = vrot.slane %v892_v28, 5 }
  0x2d   : > { %1448 = vmatmul.mubr.bf16.vlgmr.msra.gmra.mxu0 %v1292_v1  ;;  %v1293_v53 = vcombine.low %v335_v45, %v349_v49  ;;  %v363_v57 = vsel %vm1731_vm2, %v358_v54, %v362_v47  ;;  %v1338_v1 = vld [vmem:[%s1696_s21 + $0x14] sm:$0x1]  ;;  %v877_v31 = vrot.slane %v875_v23, 4  ;;  %v1345_v45 = vld [vmem:[%s1696_s21 + $0x30] sm:$0xf]  ;;  %v903_v49 = vshrl.u32 %v1343_v43, 16 }
  0x2e   : > { %1472 = vmatmul.mubr.bf16.vlgmr.msra.gmra.mxu1 %v1304_v2  ;;  %1480 = vmatpush3.bf16.msra.mxu0 %v1570_v61  ;;  %v1336_v61 = vld [vmem:[%s1696_s21 + $0xc] sm:$0x1]  ;;  %v847_v2 = vshrl.u32 %v1335_v60, 16  ;;  %v870_v8 = vshll.u32 %v1338_v1, 16  ;;  %v895_v47 = vor.u32 %v894_v38, %v891_v37  ;;  %v920_v54 = vshll.u32 %v1345_v45, 16 }
  0x2f   : > { %1504 = vmatpush3.bf16.msra.mxu1 %v1571_v63  ;;  %1481 = vmatprep.subr.bf16.mxu0 %v1572_v3  ;;  %v1294_v63 = vcombine.low %v363_v57, %v377_v59  ;;  %v881_v41 = vor.u32 %v880_v32, %v877_v31  ;;  %v905_v57 = vrot.slane %v903_v49, 4 }
  0x30   : > { %1505 = vmatprep.subr.bf16.mxu1 %v1573_v4  ;;  %1475 = vmatprep.mubr.bf16.mxu1 %v1305_v12  ;;  %v849_v9 = vrot.slane %v847_v2, 4  ;;  %v872_v15 = vrot.slane %v870_v8, 5  ;;  %v896_v56 = vrot.slane %v895_v47, 4  ;;  %v1590_v8 = vld [vmem:[%s1696_s21 + $0x28] ss:$8 sps:$4 sm:$0xff]  }
  0x31   : > { %1451 = vmatprep.mubr.bf16.mxu0 %v1293_v53  ;;  %v882_v51 = vrot.slane %v881_v41, 4  ;;  %v917_v53 = vshrl.u32 %v1345_v45, 16 }
  0x32   : > { %1482 = vmatpush3.bf16.msra.mxu0 %v1572_v3  ;;  %v850_v3 = vshll.u32 %v1335_v60, 16  ;;  %v901_v1 = vsel %vm1731_vm2, %v896_v56, %v900_v39  ;;  %v1852_v56 = vld [vmem:[%s1910_s2] ss:$0 sm:$0xff] }
  0x33   : > { %1506 = vmatpush3.bf16.msra.mxu1 %v1573_v4  ;;  %1483 = vmatprep.subr.bf16.mxu0 %v1574_v7  ;;  %v856_v4 = vshll.u32 %v1336_v61, 16  ;;  %v887_v60 = vsel %vm1731_vm2, %v882_v51, %v886_v33 }
  0x34   : > { %1507 = vmatprep.subr.bf16.mxu1 %v1575_v13  ;;  %v852_v10 = vrot.slane %v850_v3, 5 }
  0x35   : > { %1452 = vmatmul.mubr.bf16.gmra.mxu0 %v1294_v63  ;;  %v858_v12 = vrot.slane %v856_v4, 5  ;;  %v922_v63 = vrot.slane %v920_v54, 5  ;;  %v1348_v4 = vld [vmem:[%s1696_s21 + $0x3c] sm:$0x1] }
  0x36   : > { %1484 = vmatpush3.bf16.msra.mxu0 %v1574_v7  ;;  %1476 = vmatmul.mubr.bf16.gmra.mxu1 %v1306_v48  ;;  %v864_v7 = vshll.u32 %v1337_v62, 16  ;;  %v853_v16 = vor.u32 %v852_v10, %v849_v9  ;;  %v1346_v48 = vld [vmem:[%s1696_s21 + $0x34] sm:$0x1]  ;;  %v919_v62 = vrot.slane %v917_v53, 4  ;;  %v1350_v10 = vld [vmem:[%s1696_s21 + $0x44] sm:$0x1] }
  0x37   : > { %1508 = vmatpush3.bf16.msra.mxu1 %v1575_v13  ;;  %1485 = vmatprep.subr.bf16.mxu0 %v1576_v36  ;;  %v863_v13 = vrot.slane %v861_v6, 4  ;;  %v926_v59 = vshll.u32 %v1346_v48, 16  ;;  %v954_v19 = vshll.u32 %v1350_v10, 16 }
  0x38   : > { %1509 = vmatprep.subr.bf16.mxu1 %v1577_v40  ;;  %1495 = vmatprep.mubr.bf16.mxu0 %v1588_v58  ;;  %v866_v14 = vrot.slane %v864_v7, 5  ;;  %v854_v26 = vrot.slane %v853_v16, 4  ;;  %v908_v58 = vrot.slane %v906_v50, 5  ;;  %v1352_v7 = vcombine.low %v887_v60, %v901_v1 }
  0x39   : > { %v928_v3 = vrot.slane %v926_v59, 5  ;;  %v923_v9 = vor.u32 %v922_v63, %v919_v62  ;;  %v956_v28 = vrot.slane %v954_v19, 5  ;;  %v1859_v62 = vld [vmem:[%s1911_s3] ss:$0 sm:$0xff] }
  0x3a   : > { %1486 = vmatpush3.bf16.msra.mxu0 %v1576_v36  ;;  %v867_v21 = vor.u32 %v866_v14, %v863_v13  ;;  %v859_v36 = vsel %vm1731_vm2, %v854_v26, %v858_v12  ;;  %v909_v2 = vor.u32 %v908_v58, %v905_v57  ;;  %v940_v12 = vshll.u32 %v1348_v4, 16 }
  0x3b   : > { %1510 = vmatpush3.bf16.msra.mxu1 %v1577_v40  ;;  %1487 = vmatprep.subr.bf16.mxu0 %v1578_v52  ;;  %v924_v17 = vrot.slane %v923_v9, 4 }
  0x3c   : > { %1511 = vmatprep.subr.bf16.mxu1 %v1579_v55  ;;  %v868_v30 = vrot.slane %v867_v21, 4  ;;  %v910_v13 = vrot.slane %v909_v2, 4  ;;  %v942_v25 = vrot.slane %v940_v12, 5 }
  0x3d   : > { %v929_v23 = vsel %vm1731_vm2, %v924_v17, %v928_v3 }
  0x3e   : > { %1488 = vmatpush3.bf16.msra.mxu0 %v1578_v52  ;;  %v873_v40 = vsel %vm1731_vm2, %v868_v30, %v872_v15  ;;  %v912_v52 = vshll.u32 %v1344_v44, 16  ;;  %v1591_v30 = vld [vmem:[%s1696_s21 + $0x38] ss:$8 sps:$4 sm:$0xff]  }
  0x3f   : > { %1512 = vmatpush3.bf16.msra.mxu1 %v1579_v55  ;;  %1489 = vmatprep.subr.bf16.mxu0 %v1582_v0  ;;  %v1351_v46 = vcombine.low %v859_v36, %v873_v40  ;;  %v1589_v55 = vld [vmem:[%s1696_s21 + $0x18] ss:$8 sps:$4 sm:$0xff]  }
  0x40   : > { %1513 = vmatprep.subr.bf16.mxu1 %v1583_v5  ;;  %v914_v61 = vrot.slane %v912_v52, 5 }
  0x41   : > { %1519 = vmatprep.mubr.bf16.mxu1 %v1351_v46 }
  0x42   : > { %1490 = vmatpush3.bf16.msra.mxu0 %v1582_v0  ;;  %v1347_v0 = vld [vmem:[%s1696_s21 + $0x38] sm:$0xf] }
  0x43   : > { %1514 = vmatpush3.bf16.msra.mxu1 %v1583_v5  ;;  %1491 = vmatprep.subr.bf16.mxu0 %v1584_v11  ;;  %v1349_v5 = vld [vmem:[%s1696_s21 + $0x40] sm:$0xf]  ;;  %v931_v6 = vshrl.u32 %v1347_v0, 16  ;;  %s1289_s21 = sshll.u32 %s1606_s15, 3 }
  0x44   : > { %1515 = vmatprep.subr.bf16.mxu1 %v1585_v20  ;;  %v945_v15 = vshrl.u32 %v1349_v5, 16  ;;  %v948_v16 = vshll.u32 %v1349_v5, 16  ;;  %p224_p5 = scmp.lt.s32.totalorder %s1289_s21, 15 }
  0x45   : > { %v933_v14 = vrot.slane %v931_v6, 4 }
  0x46   : > { %1492 = vmatpush3.bf16.msra.mxu0 %v1584_v11  ;;  %v934_v11 = vshll.u32 %v1347_v0, 16  ;;  %v947_v21 = vrot.slane %v945_v15, 4  ;;  %v950_v22 = vrot.slane %v948_v16, 5  ;;  %s1920_s21 = smov (!%p224_p5, %s1289_s21), 15 }
  0x47   : > { %1516 = vmatpush3.bf16.msra.mxu1 %v1585_v20  ;;  %1493 = vmatprep.subr.bf16.mxu0 %v1586_v34  ;;  %v915_v20 = vsel %vm1731_vm2, %v910_v13, %v914_v61  ;;  %s1290_s27 = sshll.u32 %s1920_s21, 2 }
  0x48   : > { %1517 = vmatprep.subr.bf16.mxu1 %v1587_v35  ;;  %v936_v18 = vrot.slane %v934_v11, 5  ;;  %v1353_v26 = vcombine.low %v915_v20, %v929_v23  ;;  %v951_v27 = vor.u32 %v950_v22, %v947_v21  ;;  %s1870_s30 = scalar_lea.vmem %s1912_s4, %s1290_s27 }
  0x4a   : > { %1494 = vmatpush3.bf16.msra.mxu0 %v1586_v34  ;;  %v937_v24 = vor.u32 %v936_v18, %v933_v14  ;;  %v952_v31 = vrot.slane %v951_v27, 4 }
  0x4b   : > { %1518 = vmatpush3.bf16.msra.mxu1 %v1587_v35 }
  0x4c   : > { %v938_v29 = vrot.slane %v937_v24, 4  ;;  %v957_v33 = vsel %vm1731_vm2, %v952_v31, %v956_v28 }
  0x4d   : > { %1496 = vmatmul.mubr.bf16.vlgmr.msra.gmra.mxu0 %v1589_v55 }
  0x4e   : > { %1520 = vmatmul.mubr.bf16.vlgmr.msra.gmra.mxu1 %v1352_v7  ;;  %1499 = vmatprep.mubr.bf16.mxu0 %v1590_v8  ;;  %v943_v32 = vsel %vm1731_vm2, %v938_v29, %v942_v25 }
  0x4f   : > { %1523 = vmatprep.mubr.bf16.mxu1 %v1353_v26  ;;  %v1354_v34 = vcombine.low %v943_v32, %v957_v33 }
  0x55   : > { %1500 = vmatmul.mubr.bf16.gmra.mxu0 %v1591_v30 }
  0x56   : > { %1524 = vmatmul.mubr.bf16.gmra.mxu1 %v1354_v34 }
  0xed   : > { %v1449_v35 = vpop.f32.mrf.mxu0 }
  0xee   : > { %v1473_v36 = vpop.f32.mrf.mxu1 }
  0xef   : > { %v492_v37 = vpop.f32.mrf.mxu0  ;;  %v638_v50 = vadd.f32 %v1473_v36, %v1449_v35 }
  0xf0   : > { %v629_v38 = vpop.f32.mrf.mxu1 }
  0xf1   : > { %v1450_v39 = vpop.f32.mrf.mxu0  ;;  %v630_v53 = vadd.f32 %v629_v38, %v492_v37 }
  0xf2   : > { %v1474_v40 = vpop.f32.mrf.mxu1 }
  0xf3   : > { %v495_v41 = vpop.f32.mrf.mxu0  ;;  %v641_v58 = vadd.f32 %v1474_v40, %v1450_v39 }
  0xf4   : > { %v632_v43 = vpop.f32.mrf.mxu1 }
  0xf5   : > { %v1453_v44 = vpop.f32.mrf.mxu0  ;;  %v633_v0 = vadd.f32 %v632_v43, %v495_v41 }
  0xf6   : > { %v1477_v45 = vpop.f32.mrf.mxu1 }
  0xf7   : > { %v508_v46 = vpop.f32.mrf.mxu0  ;;  %v654_v11 = vadd.f32 %v1477_v45, %v1453_v44 }
  0xf8   : > { %v645_v47 = vpop.f32.mrf.mxu1 }
  0xf9   : > { %v1454_v48 = vpop.f32.mrf.mxu0  ;;  %v646_v12 = vadd.f32 %v645_v47, %v508_v46 }
  0xfa   : > { %v1478_v49 = vpop.f32.mrf.mxu1 }
  0xfb   : > { %v511_v42 = vpop.f32.mrf.mxu0  ;;  %v657_v18 = vadd.f32 %v1478_v49, %v1454_v48 }
  0xfc   : > { %v648_v51 = vpop.f32.mrf.mxu1 }
  0xfd   : > { %v649_v19 = vadd.f32 %v648_v51, %v511_v42 }
 0x10d   : > { %v1497_v52 = vpop.f32.mrf.mxu0 }
 0x10e   : > { %v824_v54 = vadd.f32 %v1497_v52, %v638_v50  ;;  %v1521_v55 = vpop.f32.mrf.mxu1 }
 0x10f   : > { %v791_v57 = vpop.f32.mrf.mxu0 }
 0x110   : > { %v1105_v59 = vadd.f32 %v1521_v55, %v824_v54  ;;  %v822_v60 = vadd.f32 %v791_v57, %v630_v53  ;;  %v1072_v61 = vpop.f32.mrf.mxu1 }
 0x111   : > { %v1498_v63 = vpop.f32.mrf.mxu0 }
 0x112   : > { %v1120_v1 = vmul.f32 %v1852_v56, %v1105_v59  ;;  %v1103_v2 = vadd.f32 %v1072_v61, %v822_v60  ;;  %v825_v3 = vadd.f32 %v1498_v63, %v641_v58  ;;  %v1522_v4 = vpop.f32.mrf.mxu1 }
 0x113   : > { %v794_v5 = vpop.f32.mrf.mxu0 }
 0x114   : > { %v1135_v6 = vadd.f32 %v1859_v62, %v1120_v1  ;;  %v1118_v7 = vmul.f32 %v1852_v56, %v1103_v2  ;;  %v1106_v8 = vadd.f32 %v1522_v4, %v825_v3  ;;  %v823_v9 = vadd.f32 %v794_v5, %v633_v0  ;;  %v1075_v10 = vpop.f32.mrf.mxu1 }
 0x115   : > { %v1501_v13 = vpop.f32.mrf.mxu0 }
 0x116   : > { %vm1143_vm4 = vcmp.ge.f32.partialorder %v1135_v6, 0.0  ;;  %v1151_v14 = vmul.f32 0.2, %v1135_v6  ;;  %v1133_v15 = vadd.f32 %v1859_v62, %v1118_v7  ;;  %v1121_v16 = vmul.f32 %v1852_v56, %v1106_v8  ;;  %v1525_v17 = vpop.f32.mrf.mxu1 }
 0x117   : > { %v1104_v20 = vadd.f32 %v1075_v10, %v823_v9  ;;  %v828_v21 = vadd.f32 %v1501_v13, %v654_v11  ;;  %v807_v22 = vpop.f32.mrf.mxu0 }
 0x118   : > { %v1159_v23 = vsel %vm1143_vm4, %v1135_v6, %v1151_v14  ;;  %vm1141_vm5 = vcmp.ge.f32.partialorder %v1133_v15, 0.0  ;;  %v1149_v24 = vmul.f32 0.2, %v1133_v15  ;;  %v1136_v25 = vadd.f32 %v1859_v62, %v1121_v16  ;;  %v1088_v26 = vpop.f32.mrf.mxu1 }
 0x119   : > { %v1377_v27 = vpack.c.bf16 %v1159_v23, %v1159_v23  ;;  %v1119_v28 = vmul.f32 %v1852_v56, %v1104_v20  ;;  %v1109_v29 = vadd.f32 %v1525_v17, %v828_v21  ;;  %v826_v30 = vadd.f32 %v807_v22, %v646_v12  ;;  %v1502_v31 = vpop.f32.mrf.mxu0 }
 0x11a   : > { %v1157_v32 = vsel %vm1141_vm5, %v1133_v15, %v1149_v24  ;;  %vm1144_vm6 = vcmp.ge.f32.partialorder %v1136_v25, 0.0  ;;  %v1152_v33 = vmul.f32 0.2, %v1136_v25  ;;  %v829_v34 = vadd.f32 %v1502_v31, %v657_v18  ;;  %v1526_v35 = vpop.f32.mrf.mxu1 }
 0x11b   : > { %1200 = vst.msk [vmem:[%s1870_s30 + $0x8] sm:$0xf] %vm1197_vm3, %v1377_v27  ;;  %v1375_v36 = vpack.c.bf16 %v1157_v32, %v1157_v32  ;;  %v1134_v37 = vadd.f32 %v1859_v62, %v1119_v28  ;;  %v1124_v38 = vmul.f32 %v1852_v56, %v1109_v29  ;;  %v1107_v39 = vadd.f32 %v1088_v26, %v826_v30  ;;  %v810_v40 = vpop.f32.mrf.mxu0 }
 0x11c   : > { %v1160_v41 = vsel %vm1144_vm6, %v1136_v25, %v1152_v33  ;;  %v1110_v43 = vadd.f32 %v1526_v35, %v829_v34  ;;  %v827_v44 = vadd.f32 %v810_v40, %v649_v19  ;;  %v1091_v48 = vpop.f32.mrf.mxu1 }
 0x11d   : > { %1198 = vst.msk [vmem:[%s1870_s30] sm:$0xf] %vm1197_vm3, %v1375_v36  ;;  %v1378_v45 = vpack.c.bf16 %v1160_v41, %v1160_v41  ;;  %vm1142_vm7 = vcmp.ge.f32.partialorder %v1134_v37, 0.0  ;;  %v1150_v46 = vmul.f32 0.2, %v1134_v37  ;;  %v1139_v47 = vadd.f32 %v1859_v62, %v1124_v38 }
 0x11e   : > { %v1122_v49 = vmul.f32 %v1852_v56, %v1107_v39  ;;  %v1125_v42 = vmul.f32 %v1852_v56, %v1110_v43  ;;  %v1108_v50 = vadd.f32 %v1091_v48, %v827_v44 }
 0x11f   : > { %1201 = vst.msk [vmem:[%s1870_s30 + $0xc] sm:$0xf] %vm1197_vm3, %v1378_v45  ;;  %v1158_v51 = vsel %vm1142_vm7, %v1134_v37, %v1150_v46  ;;  %vm1147_vm8 = vcmp.ge.f32.partialorder %v1139_v47, 0.0  ;;  %v1155_v52 = vmul.f32 0.2, %v1139_v47 }
 0x120   : > { %v1376_v53 = vpack.c.bf16 %v1158_v51, %v1158_v51  ;;  %v1137_v54 = vadd.f32 %v1859_v62, %v1122_v49  ;;  %v1140_v55 = vadd.f32 %v1859_v62, %v1125_v42  ;;  %v1123_v57 = vmul.f32 %v1852_v56, %v1108_v50 }
 0x121   : > { %v1163_v58 = vsel %vm1147_vm8, %v1139_v47, %v1155_v52 }
 0x122   : > { %1199 = vst.msk [vmem:[%s1870_s30 + $0x4] sm:$0xf] %vm1197_vm3, %v1376_v53  ;;  %v1381_v59 = vpack.c.bf16 %v1163_v58, %v1163_v58  ;;  %vm1145_vm9 = vcmp.ge.f32.partialorder %v1137_v54, 0.0  ;;  %v1153_v60 = vmul.f32 0.2, %v1137_v54  ;;  %vm1148_vm10 = vcmp.ge.f32.partialorder %v1140_v55, 0.0 }
 0x123   : > { %v1156_v61 = vmul.f32 0.2, %v1140_v55  ;;  %v1138_v63 = vadd.f32 %v1859_v62, %v1123_v57 }
 0x124   : > { %1204 = vst.msk [vmem:[%s1870_s30 + $0x18] sm:$0xf] %vm1197_vm3, %v1381_v59  ;;  %v1161_v0 = vsel %vm1145_vm9, %v1137_v54, %v1153_v60 }
 0x125   : > { %v1379_v1 = vpack.c.bf16 %v1161_v0, %v1161_v0  ;;  %v1164_v2 = vsel %vm1148_vm10, %v1140_v55, %v1156_v61  ;;  %vm1146_vm11 = vcmp.ge.f32.partialorder %v1138_v63, 0.0  ;;  %v1154_v56 = vmul.f32 0.2, %v1138_v63 }
 0x126   : > { %v1382_v3 = vpack.c.bf16 %v1164_v2, %v1164_v2 }
 0x127   : > { %1202 = vst.msk [vmem:[%s1870_s30 + $0x10] sm:$0xf] %vm1197_vm3, %v1379_v1  ;;  %v1162_v4 = vsel %vm1146_vm11, %v1138_v63, %v1154_v56 }
 0x128   : > { %1205 = vst.msk [vmem:[%s1870_s30 + $0x1c] sm:$0xf] %vm1197_vm3, %v1382_v3  ;;  %v1380_v5 = vpack.c.bf16 %v1162_v4, %v1162_v4 }
 0x12a   : > { %1203 = vst.msk [vmem:[%s1870_s30 + $0x14] sm:$0xf] %vm1197_vm3, %v1380_v5 }
 0x12b PF: > { %s14_s17 = sadd.s32 1, %s1614_s17   ;;  %s1915_s15 = smov %s1610_s16 }
 0x12c   : > { %p11_p6 = scmp.ge.s32.totalorder %s14_s17, 4   ;;  %s1916_s16 = smov %s1918_s18 }
 0x12e   :  { %13 = sbr.rel (!%p11_p6) target bundleno = 2 (0x2), region = 67 }

// kernel: discriminator_forward.7
= control target key start
LH: loop header
LB: loop body
LE: loop exit
PB: predicated region body
PF: predicated region fallthrough
CT: control target
= control target key end

     0   :  { %s1667_s15 = smov 0   ;;  %s1669_s16 = smov 0   ;;  %s1974_s0 = inlined_call_operand.vmem [shape: bf16[2,1,5,9,256], index: 0, kind: input, shape index: {}]   ;;  %s1975_s1 = inlined_call_operand.vmem [shape: bf16[1024,128], index: 1, kind: input, shape index: {}]   ;;  %s1976_s2 = inlined_call_operand.vmem [shape: f32[1,128], index: 2, kind: input, shape index: {}]   ;;  %s1977_s3 = inlined_call_operand.vmem [shape: f32[1,128], index: 3, kind: input, shape index: {}]   ;;  %s1978_s4 = inlined_call_operand.vmem [shape: bf16[64,128], index: 4, kind: output, shape index: {}]  }
   0x1   :  { %s1671_s17 = smov 0  }
   0x2 LB: > { %s26_s18 = sadd.s32 1, %s1636_s16  ;;  %p1290_p0 = scmp.ge.s32.totalorder %s1640_s17, 1  ;;  %s1640_s17 = sphi %s1671_s17, %s14_s17   ;;  %s1636_s16 = sphi %s1669_s16, %s1983_s16   ;;  %s1632_s15 = sphi %s1667_s15, %s1982_s15  }
   0x3   : > { %p28_p1 = scmp.ge.s32.totalorder %s26_s18, 2  ;;  %p182_p2 = scmp.lt.s32.totalorder %s1640_s17, 3 }
   0x5   : > { %s1985_s18 = smov (%p28_p1, %s26_s18), 0  ;;  %p183_p3 = pnand %p1290_p0, %p182_p2 }
   0x6   : > { %p213_p4 = scmp.lt.s32.totalorder (!%p183_p3), %s1632_s15, 1 }
   0x7   : > { %186 = sbr.rel (%p183_p3) target bundleno = 301 (0x12d), region = 36 }
   0xc   : > { %v1546_v0 = vld [vmem:[%s1975_s1 + $0xf8] sm:$0xff]   ;;  %v1550_v4 = vld [vmem:[%s1975_s1 + $0xf0] sm:$0xff]   ;;  %v1554_v8 = vld [vmem:[%s1975_s1 + $0xe8] sm:$0xff]   ;;  %s214_s19 = scalar_select %p213_p4, %s1632_s15, 1  ;;  %vm271_vm0 = vsmask.f32 3328 }
   0xd   : > { %v1547_v1 = vld [vmem:[%s1975_s1 + $0x78] sm:$0xff]   ;;  %1409 = vmatprep.subr.bf16.mxu0 %v1546_v0  ;;  %v1551_v5 = vld [vmem:[%s1975_s1 + $0x70] sm:$0xff]   ;;  %v1555_v9 = vld [vmem:[%s1975_s1 + $0x68] sm:$0xff]   ;;  %vm272_vm1 = vsmask.f32 7440 }
   0xe   : > { %v1548_v2 = vld [vmem:[%s1975_s1 + $0xb8] sm:$0xff]   ;;  %1437 = vmatprep.subr.bf16.mxu1 %v1547_v1  ;;  %v1552_v6 = vld [vmem:[%s1975_s1 + $0xb0] sm:$0xff]   ;;  %v1556_v10 = vld [vmem:[%s1975_s1 + $0xa8] sm:$0xff]   ;;  %s1521_s28 = smul.u32 80, %s214_s19 }
   0xf   : > { %v1549_v3 = vld [vmem:[%s1975_s1 + $0x38] sm:$0xff]   ;;  %1410 = vmatpush3.bf16.msra.mxu0 %v1548_v2  ;;  %v1553_v7 = vld [vmem:[%s1975_s1 + $0x30] sm:$0xff]   ;;  %v1557_v11 = vld [vmem:[%s1975_s1 + $0x28] sm:$0xff]  }
  0x10   : > { %1438 = vmatpush3.bf16.msra.mxu1 %v1549_v3  ;;  %1411 = vmatprep.subr.bf16.mxu0 %v1550_v4  ;;  %v1558_v12 = vld [vmem:[%s1975_s1 + $0xe0] sm:$0xff]   ;;  %v1562_v16 = vld [vmem:[%s1975_s1 + $0xd8] sm:$0xff]   ;;  %v1566_v20 = vld [vmem:[%s1975_s1 + $0xd0] sm:$0xff]   ;;  %s1782_s13 = scalar_lea.vmem %s1974_s0, %s1521_s28 }
  0x11   : > { %1439 = vmatprep.subr.bf16.mxu1 %v1551_v5  ;;  %v1559_v13 = vld [vmem:[%s1975_s1 + $0x60] sm:$0xff]   ;;  %v1563_v17 = vld [vmem:[%s1975_s1 + $0x58] sm:$0xff]   ;;  %v1567_v21 = vld [vmem:[%s1975_s1 + $0x50] sm:$0xff]  }
  0x12   : > { %v1560_v14 = vld [vmem:[%s1975_s1 + $0xa0] sm:$0xff]   ;;  %v1564_v18 = vld [vmem:[%s1975_s1 + $0x98] sm:$0xff]   ;;  %v1568_v22 = vld [vmem:[%s1975_s1 + $0x90] sm:$0xff]  }
  0x13   : > { %1412 = vmatpush3.bf16.msra.mxu0 %v1552_v6  ;;  %v1561_v15 = vld [vmem:[%s1975_s1 + $0x20] sm:$0xff]   ;;  %v1565_v19 = vld [vmem:[%s1975_s1 + $0x18] sm:$0xff]   ;;  %v1569_v23 = vld [vmem:[%s1975_s1 + $0x10] sm:$0xff]  }
  0x14   : > { %1440 = vmatpush3.bf16.msra.mxu1 %v1553_v7  ;;  %1413 = vmatprep.subr.bf16.mxu0 %v1554_v8  ;;  %v1570_v24 = vld [vmem:[%s1975_s1 + $0xc8] sm:$0xff]   ;;  %v1574_v28 = vld [vmem:[%s1975_s1 + $0xc0] sm:$0xff]   ;;  %v1792_v33 = vld [vmem:[%s1782_s13 + $0x10] sm:$0xff] }
  0x15   : > { %1441 = vmatprep.subr.bf16.mxu1 %v1555_v9  ;;  %v1571_v25 = vld [vmem:[%s1975_s1 + $0x48] sm:$0xff]   ;;  %v1575_v29 = vld [vmem:[%s1975_s1 + $0x40] sm:$0xff]   ;;  %v268_v35 = vld [vmem:[%s1782_s13 + $0x18] sm:$0x11]  ;;  %v289_v40 = vshrl.u32 %v1792_v33, 16  ;;  %v292_v41 = vshll.u32 %v1792_v33, 16 }
  0x16   : > { %v1572_v26 = vld [vmem:[%s1975_s1 + $0x88] sm:$0xff]   ;;  %v1576_v30 = vld [vmem:[%s1975_s1 + $0x80] sm:$0xff]   ;;  %v298_v42 = vshll.u32 %v268_v35, 16  ;;  %v1580_v46 = vld [vmem:[%s1975_s1 + $0x178] sm:$0xff]  }
  0x17   : > { %1414 = vmatpush3.bf16.msra.mxu0 %v1556_v10  ;;  %v1573_v27 = vld [vmem:[%s1975_s1 + $0x8] sm:$0xff]   ;;  %v1577_v31 = vld [vmem:[%s1975_s1] sm:$0xff]   ;;  %v1581_v47 = vld [vmem:[%s1975_s1 + $0x1f8] sm:$0xff]   ;;  %v291_v49 = vrot.slane %v289_v40, 4  ;;  %v294_v50 = vrot.slane %v292_v41, 5 }
  0x18   : > { %1442 = vmatpush3.bf16.msra.mxu1 %v1557_v11  ;;  %1415 = vmatprep.subr.bf16.mxu0 %v1558_v12  ;;  %v231_v32 = vld [vmem:[%s1782_s13] sm:$0xff]  ;;  %v267_v34 = vld [vmem:[%s1782_s13 + $0x8] sm:$0x11]  ;;  %vm1808_vm2 = vmor %vm271_vm0, %vm272_vm1  ;;  %v300_v54 = vrot.slane %v298_v42, 5 }
  0x19   : > { %1443 = vmatprep.subr.bf16.mxu1 %v1559_v13  ;;  %v275_v36 = vshrl.u32 %v231_v32, 16  ;;  %v278_v37 = vshll.u32 %v231_v32, 16  ;;  %v1315_v38 = vcombine.high %v231_v32, %v1792_v33  ;;  %v284_v39 = vshll.u32 %v267_v34, 16  ;;  %v1583_v56 = vld [vmem:[%s1975_s1 + $0x1b8] sm:$0xff]   ;;  %v1585_v59 = vld [vmem:[%s1975_s1 + $0x1f0] sm:$0xff]   ;;  %v1589_v2 = vld [vmem:[%s1975_s1 + $0x1e8] sm:$0xff]  }
  0x1a   : > { %v1314_v45 = vcombine.low %v231_v32, %v1792_v33  ;;  %v295_v53 = vor.u32 %v294_v50, %v291_v49  ;;  %v1582_v61 = vld [vmem:[%s1975_s1 + $0x138] sm:$0xff]   ;;  %v1587_v0 = vld [vmem:[%s1975_s1 + $0x1b0] sm:$0xff]   ;;  %v1591_v4 = vld [vmem:[%s1975_s1 + $0x1a8] sm:$0xff]  }
  0x1b   : > { %1416 = vmatpush3.bf16.msra.mxu0 %v1560_v14  ;;  %v277_v43 = vrot.slane %v275_v36, 4  ;;  %v280_v44 = vrot.slane %v278_v37, 5  ;;  %671 = vmatprep.mubr.bf16.mxu1 %v1315_v38  ;;  %v286_v48 = vrot.slane %v284_v39, 5  ;;  %v1584_v1 = vld [vmem:[%s1975_s1 + $0x170] sm:$0xff]   ;;  %v1588_v5 = vld [vmem:[%s1975_s1 + $0x168] sm:$0xff]   ;;  %v1593_v6 = vld [vmem:[%s1975_s1 + $0x1e0] sm:$0xff]  }
  0x1c   : > { %1444 = vmatpush3.bf16.msra.mxu1 %v1561_v15  ;;  %1417 = vmatprep.subr.bf16.mxu0 %v1562_v16  ;;  %v1815_v57 = vrot.slane %v295_v53, 4  ;;  %v1586_v3 = vld [vmem:[%s1975_s1 + $0x130] sm:$0xff]   ;;  %v1590_v7 = vld [vmem:[%s1975_s1 + $0x128] sm:$0xff]   ;;  %v1595_v8 = vld [vmem:[%s1975_s1 + $0x1a0] sm:$0xff]  }
  0x1d   : > { %1445 = vmatprep.subr.bf16.mxu1 %v1563_v17  ;;  %v281_v51 = vor.u32 %v280_v44, %v277_v43  ;;  %v1592_v9 = vld [vmem:[%s1975_s1 + $0x160] sm:$0xff]   ;;  %v1597_v11 = vld [vmem:[%s1975_s1 + $0x1d8] sm:$0xff]   ;;  %v1868_v13 = vld [vmem:[%s1782_s13 + $0x30] sm:$0xff] }
  0x1e   : > { %v301_v60 = vsel %vm1808_vm2, %v1815_v57, %v300_v54  ;;  %v1594_v10 = vld [vmem:[%s1975_s1 + $0x120] sm:$0xff]   ;;  %v269_v14 = vld [vmem:[%s1782_s13 + $0x28] sm:$0x11]  ;;  %v270_v15 = vld [vmem:[%s1782_s13 + $0x38] sm:$0x11] }
  0x1f   : > { %1418 = vmatpush3.bf16.msra.mxu0 %v1564_v18  ;;  %v282_v55 = vrot.slane %v281_v51, 4  ;;  %v1865_v12 = vld [vmem:[%s1782_s13 + $0x20] sm:$0xff]  ;;  %v1602_v36 = vld [vmem:[%s1975_s1 + $0x150] sm:$0xff]   ;;  %v1609_v49 = vld [vmem:[%s1975_s1 + $0x188] sm:$0xff]  }
  0x20   : > { %1446 = vmatpush3.bf16.msra.mxu1 %v1565_v19  ;;  %1419 = vmatprep.subr.bf16.mxu0 %v1566_v20  ;;  %v303_v16 = vshrl.u32 %v1865_v12, 16  ;;  %v306_v17 = vshll.u32 %v1865_v12, 16  ;;  %v1317_v18 = vcombine.high %v1865_v12, %v1868_v13  ;;  %v1316_v19 = vcombine.low %v1865_v12, %v1868_v13  ;;  %v1603_v38 = vld [vmem:[%s1975_s1 + $0x1d0] sm:$0xff]   ;;  %v1608_v50 = vld [vmem:[%s1975_s1 + $0x108] sm:$0xff]   ;;  %v1611_v51 = vld [vmem:[%s1975_s1 + $0x1c0] sm:$0xff]  }
  0x21   : > { %1447 = vmatprep.subr.bf16.mxu1 %v1567_v21  ;;  %v287_v58 = vsel %vm1808_vm2, %v282_v55, %v286_v48  ;;  %v312_v20 = vshll.u32 %v269_v14, 16  ;;  %v317_v21 = vshrl.u32 %v1868_v13, 16  ;;  %v1605_v41 = vld [vmem:[%s1975_s1 + $0x190] sm:$0xff]   ;;  %v1339_v48 = vcombine.high %v1792_v33, %v1865_v12  ;;  %v1610_v53 = vld [vmem:[%s1975_s1 + $0x140] sm:$0xff]   ;;  %v1359_v55 = vld [vmem:[%s1782_s13 + $0x18] sm:$0x11] }
  0x22   : > { %v1294_v62 = vcombine.low %v287_v58, %v301_v60  ;;  %v1295_v63 = vcombine.high %v287_v58, %v301_v60  ;;  %v1604_v43 = vld [vmem:[%s1975_s1 + $0x110] sm:$0xff]   ;;  %v1613_v54 = vld [vmem:[%s1975_s1 + $0x180] sm:$0xff]   ;;  %v912_v58 = vshll.u32 %v1359_v55, 16 }
  0x23   : > { %1420 = vmatpush3.bf16.msra.mxu0 %v1568_v22  ;;  %v320_v22 = vshll.u32 %v1868_v13, 16  ;;  %v1337_v60 = vld [vmem:[%s1782_s13 + $0x40] sm:$0xff] }
  0x24   : > { %1448 = vmatpush3.bf16.msra.mxu1 %v1569_v23  ;;  %1421 = vmatprep.subr.bf16.mxu0 %v1570_v24  ;;  %v326_v23 = vshll.u32 %v270_v15, 16  ;;  %v1596_v24 = vld [vmem:[%s1975_s1 + $0x158] sm:$0xff]   ;;  %v1341_v14 = vcombine.high %v1868_v13, %v1337_v60 }
  0x25   : > { %1449 = vmatprep.subr.bf16.mxu1 %v1571_v25  ;;  %506 = vmatprep.mubr.bf16.mxu0 %v1295_v63  ;;  %v305_v25 = vrot.slane %v303_v16, 4  ;;  %v1365_v63 = vld [vmem:[%s1782_s13 + $0x48] sm:$0x11] }
  0x26   : > { %v328_v35 = vrot.slane %v326_v23, 5 }
  0x27   : > { %1422 = vmatpush3.bf16.msra.mxu0 %v1572_v26  ;;  %v308_v26 = vrot.slane %v306_v17, 5 }
  0x28   : > { %1450 = vmatpush3.bf16.msra.mxu1 %v1573_v27  ;;  %1423 = vmatprep.subr.bf16.mxu0 %v1574_v28  ;;  %v1600_v27 = vld [vmem:[%s1975_s1 + $0x198] sm:$0xff]   ;;  %v314_v28 = vrot.slane %v312_v20, 5 }
  0x29   : > { %1451 = vmatprep.subr.bf16.mxu1 %v1575_v29  ;;  %v319_v29 = vrot.slane %v317_v21, 4  ;;  %v309_v32 = vor.u32 %v308_v26, %v305_v25 }
  0x2b   : > { %1424 = vmatpush3.bf16.msra.mxu0 %v1576_v30  ;;  %v322_v30 = vrot.slane %v320_v22, 5  ;;  %v310_v37 = vrot.slane %v309_v32, 4 }
  0x2c   : > { %1452 = vmatpush3.bf16.msra.mxu1 %v1577_v31  ;;  %1465 = vmatprep.subr.bf16.mxu0 %v1580_v46  ;;  %v1599_v31 = vld [vmem:[%s1975_s1 + $0x118] sm:$0xff]   ;;  %v1607_v46 = vld [vmem:[%s1975_s1 + $0x1c8] sm:$0xff]  }
  0x2d   : > { %1493 = vmatprep.subr.bf16.mxu1 %v1581_v47  ;;  %v323_v34 = vor.u32 %v322_v30, %v319_v29  ;;  %v315_v40 = vsel %vm1808_vm2, %v310_v37, %v314_v28  ;;  %v1606_v47 = vld [vmem:[%s1975_s1 + $0x148] sm:$0xff]  }
  0x2e   : > { %507 = vmatmul.mubr.bf16.vlgmr.msra.gmra.mxu0 %v1294_v62  ;;  %v1612_v62 = vld [vmem:[%s1975_s1 + $0x100] sm:$0xff]  }
  0x2f   : > { %672 = vmatmul.mubr.bf16.vlgmr.msra.gmra.mxu1 %v1314_v45  ;;  %1466 = vmatpush3.bf16.msra.mxu0 %v1582_v61  ;;  %v324_v39 = vrot.slane %v323_v34, 4  ;;  %v1363_v61 = vld [vmem:[%s1782_s13 + $0x38] sm:$0x11] }
  0x30   : > { %1494 = vmatpush3.bf16.msra.mxu1 %v1583_v56  ;;  %1467 = vmatprep.subr.bf16.mxu0 %v1584_v1  ;;  %v1361_v56 = vld [vmem:[%s1782_s13 + $0x28] sm:$0x11]  ;;  %v945_v1 = vshrl.u32 %v1337_v60, 16  ;;  %s1292_s13 = sshll.u32 %s1632_s15, 2 }
  0x31   : > { %1495 = vmatprep.subr.bf16.mxu1 %v1585_v59  ;;  %679 = vmatprep.mubr.bf16.mxu1 %v1317_v18  ;;  %v329_v42 = vsel %vm1808_vm2, %v324_v39, %v328_v35  ;;  %v926_v59 = vshll.u32 %v1361_v56, 16  ;;  %p1956_p5 = scmp.lt.s32.totalorder %s1292_s13, 7 }
  0x32   : > { %v1297_v44 = vcombine.high %v315_v40, %v329_v42  ;;  %v1296_v45 = vcombine.low %v315_v40, %v329_v42 }
  0x33   : > { %1468 = vmatpush3.bf16.msra.mxu0 %v1586_v3  ;;  %v914_v3 = vrot.slane %v912_v58, 5  ;;  %s1987_s13 = smov (!%p1956_p5, %s1292_s13), 7 }
  0x34   : > { %1496 = vmatpush3.bf16.msra.mxu1 %v1587_v0  ;;  %1469 = vmatprep.subr.bf16.mxu0 %v1588_v5  ;;  %v940_v0 = vshll.u32 %v1363_v61, 16  ;;  %v954_v5 = vshll.u32 %v1365_v63, 16  ;;  %v1387_v61 = vld [vmem:[%s1977_s3] ss:$0 sm:$0xff]  ;;  %s1293_s15 = sshll.u32 %s1987_s13, 2 }
  0x35   : > { %1497 = vmatprep.subr.bf16.mxu1 %v1589_v2  ;;  %514 = vmatprep.mubr.bf16.mxu0 %v1297_v44  ;;  %v948_v2 = vshll.u32 %v1337_v60, 16  ;;  %s227_s30 = scalar_lea.vmem %s1978_s4, %s1293_s15 }
  0x36   : > { %515 = vmatmul.mubr.bf16.gmra.mxu0 %v1296_v45  ;;  %v956_v18 = vrot.slane %v954_v5, 5 }
  0x37   : > { %1470 = vmatpush3.bf16.msra.mxu0 %v1590_v7  ;;  %680 = vmatmul.mubr.bf16.gmra.mxu1 %v1316_v19  ;;  %v947_v7 = vrot.slane %v945_v1, 4 }
  0x38   : > { %1498 = vmatpush3.bf16.msra.mxu1 %v1591_v4  ;;  %1471 = vmatprep.subr.bf16.mxu0 %v1592_v9  ;;  %v928_v4 = vrot.slane %v926_v59, 5  ;;  %v1338_v9 = vcombine.low %v1792_v33, %v1865_v12  ;;  %v1340_v12 = vcombine.low %v1868_v13, %v1337_v60 }
  0x39   : > { %1499 = vmatprep.subr.bf16.mxu1 %v1593_v6  ;;  %873 = vmatprep.mubr.bf16.mxu0 %v1339_v48  ;;  %v942_v6 = vrot.slane %v940_v0, 5 }
  0x3b   : > { %1472 = vmatpush3.bf16.msra.mxu0 %v1594_v10  ;;  %v915_v10 = vsel %vm1808_vm2, %v1815_v57, %v914_v3  ;;  %v943_v19 = vsel %vm1808_vm2, %v324_v39, %v942_v6 }
  0x3c   : > { %1500 = vmatpush3.bf16.msra.mxu1 %v1595_v8  ;;  %1473 = vmatprep.subr.bf16.mxu0 %v1596_v24  ;;  %v950_v8 = vrot.slane %v948_v2, 5 }
  0x3d   : > { %1501 = vmatprep.subr.bf16.mxu1 %v1597_v11  ;;  %v929_v11 = vsel %vm1808_vm2, %v310_v37, %v928_v4 }
  0x3e   : > { %v1366_v15 = vcombine.low %v915_v10, %v929_v11  ;;  %v1367_v16 = vcombine.high %v915_v10, %v929_v11  ;;  %v951_v17 = vor.u32 %v950_v8, %v947_v7 }
  0x3f   : > { %1474 = vmatpush3.bf16.msra.mxu0 %v1599_v31 }
  0x40   : > { %1502 = vmatpush3.bf16.msra.mxu1 %v1600_v27  ;;  %1475 = vmatprep.subr.bf16.mxu0 %v1602_v36  ;;  %v952_v20 = vrot.slane %v951_v17, 4 }
  0x41   : > { %1503 = vmatprep.subr.bf16.mxu1 %v1603_v38  ;;  %1134 = vmatprep.mubr.bf16.mxu1 %v1367_v16 }
  0x42   : > { %v957_v33 = vsel %vm1808_vm2, %v952_v20, %v956_v18 }
  0x43   : > { %1476 = vmatpush3.bf16.msra.mxu0 %v1604_v43  ;;  %v1369_v57 = vcombine.high %v943_v19, %v957_v33  ;;  %v1368_v21 = vcombine.low %v943_v19, %v957_v33 }
  0x44   : > { %1504 = vmatpush3.bf16.msra.mxu1 %v1605_v41  ;;  %1477 = vmatprep.subr.bf16.mxu0 %v1606_v47 }
  0x45   : > { %1505 = vmatprep.subr.bf16.mxu1 %v1607_v46 }
  0x47   : > { %1478 = vmatpush3.bf16.msra.mxu0 %v1608_v50 }
  0x48   : > { %1506 = vmatpush3.bf16.msra.mxu1 %v1609_v49  ;;  %1479 = vmatprep.subr.bf16.mxu0 %v1610_v53  ;;  %v1386_v53 = vld [vmem:[%s1976_s2] ss:$0 sm:$0xff] }
  0x49   : > { %1507 = vmatprep.subr.bf16.mxu1 %v1611_v51 }
  0x4b   : > { %1480 = vmatpush3.bf16.msra.mxu0 %v1612_v62 }
  0x4c   : > { %1508 = vmatpush3.bf16.msra.mxu1 %v1613_v54 }
  0x4e   : > { %874 = vmatmul.mubr.bf16.vlgmr.msra.gmra.mxu0 %v1338_v9 }
  0x4f   : > { %1135 = vmatmul.mubr.bf16.vlgmr.msra.gmra.mxu1 %v1366_v15  ;;  %881 = vmatprep.mubr.bf16.mxu0 %v1341_v14 }
  0x50   : > { %1142 = vmatprep.mubr.bf16.mxu1 %v1369_v57 }
  0x56   : > { %882 = vmatmul.mubr.bf16.gmra.mxu0 %v1340_v12 }
  0x57   : > { %1143 = vmatmul.mubr.bf16.gmra.mxu1 %v1368_v21 }
  0xee   : > { %v1425_v23 = vpop.f32.mrf.mxu0 }
  0xef   : > { %v1453_v22 = vpop.f32.mrf.mxu1 }
  0xf0   : > { %v1426_v25 = vpop.f32.mrf.mxu0 }
  0xf1   : > { %v1454_v24 = vpop.f32.mrf.mxu1  ;;  %v1427_v37 = vadd.f32 %v1426_v25, %v1425_v23 }
  0xf2   : > { %v1428_v27 = vpop.f32.mrf.mxu0  ;;  %v1455_v38 = vadd.f32 %v1454_v24, %v1453_v22 }
  0xf3   : > { %v1456_v26 = vpop.f32.mrf.mxu1 }
  0xf4   : > { %v1429_v29 = vpop.f32.mrf.mxu0  ;;  %v674_v45 = vadd.f32 %v1455_v38, %v1427_v37 }
  0xf5   : > { %v1457_v28 = vpop.f32.mrf.mxu1  ;;  %v1430_v41 = vadd.f32 %v1429_v29, %v1428_v27 }
  0xf6   : > { %v1431_v31 = vpop.f32.mrf.mxu0  ;;  %v1458_v42 = vadd.f32 %v1457_v28, %v1456_v26 }
  0xf7   : > { %v1459_v30 = vpop.f32.mrf.mxu1 }
  0xf8   : > { %v1432_v32 = vpop.f32.mrf.mxu0  ;;  %v677_v51 = vadd.f32 %v1458_v42, %v1430_v41 }
  0xf9   : > { %v1460_v52 = vpop.f32.mrf.mxu1  ;;  %v1433_v56 = vadd.f32 %v1432_v32, %v1431_v31 }
  0xfa   : > { %v1434_v34 = vpop.f32.mrf.mxu0  ;;  %v1461_v58 = vadd.f32 %v1460_v52, %v1459_v30 }
  0xfb   : > { %v1462_v35 = vpop.f32.mrf.mxu1 }
  0xfc   : > { %v1435_v36 = vpop.f32.mrf.mxu0  ;;  %v682_v7 = vadd.f32 %v1461_v58, %v1433_v56 }
  0xfd   : > { %v1463_v13 = vpop.f32.mrf.mxu1  ;;  %v1436_v3 = vadd.f32 %v1435_v36, %v1434_v34 }
  0xfe   : > { %v1464_v4 = vadd.f32 %v1463_v13, %v1462_v35 }
 0x100   : > { %v685_v18 = vadd.f32 %v1464_v4, %v1436_v3 }
 0x10e   : > { %v1481_v39 = vpop.f32.mrf.mxu0 }
 0x10f   : > { %v1509_v40 = vpop.f32.mrf.mxu1 }
 0x110   : > { %v1482_v43 = vpop.f32.mrf.mxu0 }
 0x111   : > { %v1510_v44 = vpop.f32.mrf.mxu1  ;;  %v1483_v46 = vadd.f32 %v1482_v43, %v1481_v39 }
 0x112   : > { %v1484_v47 = vpop.f32.mrf.mxu0  ;;  %v1511_v50 = vadd.f32 %v1510_v44, %v1509_v40 }
 0x113   : > { %v1512_v48 = vpop.f32.mrf.mxu1  ;;  %v890_v49 = vadd.f32 %v1483_v46, %v674_v45 }
 0x114   : > { %v1485_v54 = vpop.f32.mrf.mxu0 }
 0x115   : > { %v1513_v55 = vpop.f32.mrf.mxu1  ;;  %v1151_v59 = vadd.f32 %v1511_v50, %v890_v49  ;;  %v1486_v60 = vadd.f32 %v1485_v54, %v1484_v47 }
 0x116   : > { %v1487_v62 = vpop.f32.mrf.mxu0  ;;  %v1514_v2 = vadd.f32 %v1513_v55, %v1512_v48 }
 0x117   : > { %v1515_v63 = vpop.f32.mrf.mxu1  ;;  %v1162_v0 = vmul.f32 %v1386_v53, %v1151_v59  ;;  %v891_v1 = vadd.f32 %v1486_v60, %v677_v51 }
 0x118   : > { %v1488_v5 = vpop.f32.mrf.mxu0 }
 0x119   : > { %v1516_v6 = vpop.f32.mrf.mxu1  ;;  %v1173_v8 = vadd.f32 %v1387_v61, %v1162_v0  ;;  %v1152_v9 = vadd.f32 %v1514_v2, %v891_v1  ;;  %v1489_v10 = vadd.f32 %v1488_v5, %v1487_v62 }
 0x11a   : > { %v1490_v11 = vpop.f32.mrf.mxu0  ;;  %v1517_v17 = vadd.f32 %v1516_v6, %v1515_v63 }
 0x11b   : > { %v1518_v14 = vpop.f32.mrf.mxu1  ;;  %v1163_v15 = vmul.f32 %v1386_v53, %v1152_v9  ;;  %v892_v16 = vadd.f32 %v1489_v10, %v682_v7  ;;  %v1181_v33 = vmul.f32 0.2, %v1173_v8  ;;  %vm1177_vm3 = vcmp.ge.f32.partialorder %v1173_v8, 0.0 }
 0x11c   : > { %v1491_v19 = vpop.f32.mrf.mxu0 }
 0x11d   : > { %v1519_v20 = vpop.f32.mrf.mxu1  ;;  %v1174_v57 = vadd.f32 %v1387_v61, %v1163_v15  ;;  %v1153_v12 = vadd.f32 %v1517_v17, %v892_v16  ;;  %v1492_v21 = vadd.f32 %v1491_v19, %v1490_v11  ;;  %v1185_v26 = vsel %vm1177_vm3, %v1173_v8, %v1181_v33 }
 0x11e   : > { %v1520_v22 = vadd.f32 %v1519_v20, %v1518_v14 }
 0x11f   : > { %vm1178_vm4 = vcmp.ge.f32.partialorder %v1174_v57, 0.0  ;;  %v1182_v23 = vmul.f32 0.2, %v1174_v57  ;;  %v1164_v24 = vmul.f32 %v1386_v53, %v1153_v12  ;;  %v893_v25 = vadd.f32 %v1492_v21, %v685_v18 }
 0x121   : > { %v1186_v27 = vsel %vm1178_vm4, %v1174_v57, %v1182_v23  ;;  %v1175_v28 = vadd.f32 %v1387_v61, %v1164_v24  ;;  %v1154_v29 = vadd.f32 %v1520_v22, %v893_v25 }
 0x122   : > { %v1401_v30 = vpack.c.bf16 %v1186_v27, %v1185_v26 }
 0x123   : > { %v1165_v31 = vmul.f32 %v1386_v53, %v1154_v29  ;;  %v1183_v32 = vmul.f32 0.2, %v1175_v28  ;;  %vm1179_vm5 = vcmp.ge.f32.partialorder %v1175_v28, 0.0 }
 0x124   : > { %1402 = vst [vmem:[%s227_s30] sm:$0xff] %v1401_v30  }
 0x125   : > { %v1176_v52 = vadd.f32 %v1387_v61, %v1165_v31  ;;  %v1187_v35 = vsel %vm1179_vm5, %v1175_v28, %v1183_v32 }
 0x127   : > { %vm1180_vm6 = vcmp.ge.f32.partialorder %v1176_v52, 0.0  ;;  %v1184_v34 = vmul.f32 0.2, %v1176_v52 }
 0x129   : > { %v1188_v36 = vsel %vm1180_vm6, %v1176_v52, %v1184_v34 }
 0x12a   : > { %v1406_v13 = vpack.c.bf16 %v1188_v36, %v1187_v35 }
 0x12c   : > { %1408 = vst [vmem:[%s227_s30 + $0x8] sm:$0xff] %v1406_v13  }
 0x12d PF: > { %s14_s17 = sadd.s32 1, %s1640_s17   ;;  %s1982_s15 = smov %s1636_s16 }
 0x12e   : > { %p11_p6 = scmp.ge.s32.totalorder %s14_s17, 4   ;;  %s1983_s16 = smov %s1985_s18 }
 0x130   :  { %13 = sbr.rel (!%p11_p6) target bundleno = 2 (0x2), region = 67 }

// kernel: discriminator_forward.8
= control target key start
LH: loop header
LB: loop body
LE: loop exit
PB: predicated region body
PF: predicated region fallthrough
CT: control target
= control target key end

     0   :  { %s3225_s15 = smov 0   ;;  %s3227_s16 = smov 0   ;;  %s4139_s0 = inlined_call_operand.vmem [shape: bf16[2,1,3,9,512], index: 0, kind: input, shape index: {}]   ;;  %s4140_s1 = inlined_call_operand.vmem [shape: bf16[2048,256], index: 1, kind: input, shape index: {}]   ;;  %s4141_s2 = inlined_call_operand.vmem [shape: f32[1,256], index: 2, kind: input, shape index: {}]   ;;  %s4142_s3 = inlined_call_operand.vmem [shape: f32[1,256], index: 3, kind: input, shape index: {}]   ;;  %s4143_s4 = inlined_call_operand.vmem [shape: bf16[32,256], index: 4, kind: output, shape index: {}]  }
   0x1   :  { %s3229_s17 = smov 0  }
   0x2 LB: > { %s26_s18 = sadd.s32 1, %s3194_s16  ;;  %p2469_p0 = scmp.ge.s32.totalorder %s3198_s17, 1  ;;  %s3198_s17 = sphi %s3229_s17, %s14_s17   ;;  %s3194_s16 = sphi %s3227_s16, %s4148_s16   ;;  %s3190_s15 = sphi %s3225_s15, %s4147_s15  }
   0x3   : > { %p28_p1 = scmp.ge.s32.totalorder %s26_s18, 2  ;;  %p182_p2 = scmp.lt.s32.totalorder %s3198_s17, 3 }
   0x5   : > { %s4150_s18 = smov (%p28_p1, %s26_s18), 0  ;;  %p183_p3 = pnand %p2469_p0, %p182_p2 }
   0x6   : > { %p214_p4 = scmp.lt.s32.totalorder (!%p183_p3), %s3190_s15, 1  ;;  %s2471_s26 = sshll.u32 (!%p183_p3), %s3190_s15, 1 }
   0x7   : > { %186 = sbr.rel (%p183_p3) target bundleno = 484 (0x1e4), region = 36  ;;  %p4121_p5 = scmp.lt.s32.totalorder (!%p183_p3), %s2471_s26, 3 }
   0xc   : > { %v2790_v0 = vld [vmem:[%s4140_s1 + $0x274] ss:$8 sps:$4 sm:$0xff]   ;;  %v2794_v2 = vld [vmem:[%s4140_s1 + $0x270] ss:$8 sps:$4 sm:$0xff]   ;;  %v2796_v4 = vld [vmem:[%s4140_s1 + $0x264] ss:$8 sps:$4 sm:$0xff]  }
   0xd   : > { %v2792_v1 = vld [vmem:[%s4140_s1 + $0x374] ss:$8 sps:$4 sm:$0xff]   ;;  %763 = vmatprep.subr.bf16.mxu0 %v2790_v0  ;;  %v2795_v3 = vld [vmem:[%s4140_s1 + $0x370] ss:$8 sps:$4 sm:$0xff]   ;;  %v2798_v5 = vld [vmem:[%s4140_s1 + $0x364] ss:$8 sps:$4 sm:$0xff]  }
   0xe   : > { %806 = vmatprep.subr.bf16.mxu1 %v2792_v1  ;;  %764 = vmatpush1.bf16.msra.mxu0 %v2794_v2  ;;  %v2800_v6 = vld [vmem:[%s4140_s1 + $0x260] ss:$8 sps:$4 sm:$0xff]   ;;  %v2802_v8 = vld [vmem:[%s4140_s1 + $0x254] ss:$8 sps:$4 sm:$0xff]   ;;  %v2806_v10 = vld [vmem:[%s4140_s1 + $0x250] ss:$8 sps:$4 sm:$0xff]  }
   0xf   : > { %807 = vmatpush1.bf16.msra.mxu1 %v2795_v3  ;;  %765 = vmatprep.subr.bf16.mxu0 %v2796_v4  ;;  %v2801_v7 = vld [vmem:[%s4140_s1 + $0x360] ss:$8 sps:$4 sm:$0xff]   ;;  %v2804_v9 = vld [vmem:[%s4140_s1 + $0x354] ss:$8 sps:$4 sm:$0xff]   ;;  %v2807_v11 = vld [vmem:[%s4140_s1 + $0x350] ss:$8 sps:$4 sm:$0xff]  }
  0x10   : > { %808 = vmatprep.subr.bf16.mxu1 %v2798_v5  ;;  %v2808_v12 = vld [vmem:[%s4140_s1 + $0x244] ss:$8 sps:$4 sm:$0xff]   ;;  %v2812_v14 = vld [vmem:[%s4140_s1 + $0x240] ss:$8 sps:$4 sm:$0xff]   ;;  %v2814_v16 = vld [vmem:[%s4140_s1 + $0x234] ss:$8 sps:$4 sm:$0xff]  }
  0x11   : > { %v2810_v13 = vld [vmem:[%s4140_s1 + $0x344] ss:$8 sps:$4 sm:$0xff]   ;;  %v2813_v15 = vld [vmem:[%s4140_s1 + $0x340] ss:$8 sps:$4 sm:$0xff]   ;;  %v2816_v17 = vld [vmem:[%s4140_s1 + $0x334] ss:$8 sps:$4 sm:$0xff]  }
  0x12   : > { %766 = vmatpush1.bf16.msra.mxu0 %v2800_v6  ;;  %v2818_v18 = vld [vmem:[%s4140_s1 + $0x230] ss:$8 sps:$4 sm:$0xff]   ;;  %v2820_v20 = vld [vmem:[%s4140_s1 + $0x224] ss:$8 sps:$4 sm:$0xff]   ;;  %v2824_v22 = vld [vmem:[%s4140_s1 + $0x220] ss:$8 sps:$4 sm:$0xff]  }
  0x13   : > { %809 = vmatpush1.bf16.msra.mxu1 %v2801_v7  ;;  %767 = vmatprep.subr.bf16.mxu0 %v2802_v8  ;;  %v2819_v19 = vld [vmem:[%s4140_s1 + $0x330] ss:$8 sps:$4 sm:$0xff]   ;;  %v2822_v21 = vld [vmem:[%s4140_s1 + $0x324] ss:$8 sps:$4 sm:$0xff]   ;;  %v2825_v23 = vld [vmem:[%s4140_s1 + $0x320] ss:$8 sps:$4 sm:$0xff]  }
  0x14   : > { %810 = vmatprep.subr.bf16.mxu1 %v2804_v9  ;;  %v2826_v24 = vld [vmem:[%s4140_s1 + $0x214] ss:$8 sps:$4 sm:$0xff]   ;;  %v2830_v26 = vld [vmem:[%s4140_s1 + $0x210] ss:$8 sps:$4 sm:$0xff]   ;;  %v2832_v28 = vld [vmem:[%s4140_s1 + $0x204] ss:$8 sps:$4 sm:$0xff]  }
  0x15   : > { %v2828_v25 = vld [vmem:[%s4140_s1 + $0x314] ss:$8 sps:$4 sm:$0xff]   ;;  %v2831_v27 = vld [vmem:[%s4140_s1 + $0x310] ss:$8 sps:$4 sm:$0xff]   ;;  %v2834_v29 = vld [vmem:[%s4140_s1 + $0x304] ss:$8 sps:$4 sm:$0xff]  }
  0x16   : > { %768 = vmatpush1.bf16.msra.mxu0 %v2806_v10  ;;  %v2836_v30 = vld [vmem:[%s4140_s1 + $0x200] ss:$8 sps:$4 sm:$0xff]   ;;  %v2838_v32 = vld [vmem:[%s4140_s1 + $0x2f4] ss:$8 sps:$4 sm:$0xff]   ;;  %v2842_v34 = vld [vmem:[%s4140_s1 + $0x2f0] ss:$8 sps:$4 sm:$0xff]  }
  0x17   : > { %811 = vmatpush1.bf16.msra.mxu1 %v2807_v11  ;;  %769 = vmatprep.subr.bf16.mxu0 %v2808_v12  ;;  %v2837_v31 = vld [vmem:[%s4140_s1 + $0x300] ss:$8 sps:$4 sm:$0xff]   ;;  %v2840_v33 = vld [vmem:[%s4140_s1 + $0x3f4] ss:$8 sps:$4 sm:$0xff]   ;;  %v2843_v35 = vld [vmem:[%s4140_s1 + $0x3f0] ss:$8 sps:$4 sm:$0xff]  }
  0x18   : > { %812 = vmatprep.subr.bf16.mxu1 %v2810_v13  ;;  %s215_s25 = scalar_select %p214_p4, %s3190_s15, 1  ;;  %v2844_v36 = vld [vmem:[%s4140_s1 + $0x2e4] ss:$8 sps:$4 sm:$0xff]   ;;  %v2848_v38 = vld [vmem:[%s4140_s1 + $0x2e0] ss:$8 sps:$4 sm:$0xff]  }
  0x19   : > { %v2846_v37 = vld [vmem:[%s4140_s1 + $0x3e4] ss:$8 sps:$4 sm:$0xff]   ;;  %v2849_v39 = vld [vmem:[%s4140_s1 + $0x3e0] ss:$8 sps:$4 sm:$0xff]   ;;  %v2850_v40 = vld [vmem:[%s4140_s1 + $0x2d4] ss:$8 sps:$4 sm:$0xff]  }
  0x1a   : > { %770 = vmatpush1.bf16.msra.mxu0 %v2812_v14  ;;  %s2765_s6 = smul.u32 96, %s215_s25  ;;  %v2852_v41 = vld [vmem:[%s4140_s1 + $0x3d4] ss:$8 sps:$4 sm:$0xff]   ;;  %v2854_v42 = vld [vmem:[%s4140_s1 + $0x2d0] ss:$8 sps:$4 sm:$0xff]   ;;  %s4152_s26 = smov (!%p4121_p5, %s2471_s26), 3 }
  0x1b   : > { %813 = vmatpush1.bf16.msra.mxu1 %v2813_v15  ;;  %771 = vmatprep.subr.bf16.mxu0 %v2814_v16  ;;  %v2855_v43 = vld [vmem:[%s4140_s1 + $0x3d0] ss:$8 sps:$4 sm:$0xff]   ;;  %v2856_v44 = vld [vmem:[%s4140_s1 + $0x2c4] ss:$8 sps:$4 sm:$0xff]   ;;  %vm304_vm0 = vsmask.f32 3328 }
  0x1c   : > { %814 = vmatprep.subr.bf16.mxu1 %v2816_v17  ;;  %s3382_s23 = scalar_lea.vmem %s4139_s0, %s2765_s6  ;;  %v2858_v45 = vld [vmem:[%s4140_s1 + $0x3c4] ss:$8 sps:$4 sm:$0xff]   ;;  %vm305_vm1 = vsmask.f32 7440  ;;  %v2860_v46 = vld [vmem:[%s4140_s1 + $0x2c0] ss:$8 sps:$4 sm:$0xff]  }
  0x1d   : > { %v2861_v47 = vld [vmem:[%s4140_s1 + $0x3c0] ss:$8 sps:$4 sm:$0xff]   ;;  %v2862_v49 = vld [vmem:[%s4140_s1 + $0x2b4] ss:$8 sps:$4 sm:$0xff]   ;;  %v2866_v1 = vld [vmem:[%s4140_s1 + $0x2b0] ss:$8 sps:$4 sm:$0xff]  }
  0x1e   : > { %772 = vmatpush1.bf16.msra.mxu0 %v2818_v18  ;;  %v3397_v48 = vld [vmem:[%s3382_s23] sm:$0xff]  ;;  %v2864_v50 = vld [vmem:[%s4140_s1 + $0x3b4] ss:$8 sps:$4 sm:$0xff]   ;;  %v3415_v59 = vld [vmem:[%s3382_s23 + $0x8] sm:$0xff]  ;;  %s2762_s15 = sshll.u32 %s4152_s26, 3 }
  0x1f   : > { %815 = vmatpush1.bf16.msra.mxu1 %v2819_v19  ;;  %773 = vmatprep.subr.bf16.mxu0 %v2820_v20  ;;  %v3406_v51 = vld [vmem:[%s3382_s23 + $0x20] sm:$0xff]  ;;  %v300_v52 = vld [vmem:[%s3382_s23 + $0x10] sm:$0x11]  ;;  %v308_v54 = vshrl.u32 %v3397_v48, 16  ;;  %v311_v55 = vshll.u32 %v3397_v48, 16  ;;  %v3418_v60 = vld [vmem:[%s3382_s23 + $0x28] sm:$0xff] }
  0x20   : > { %816 = vmatprep.subr.bf16.mxu1 %v2822_v21  ;;  %v302_v53 = vld [vmem:[%s3382_s23 + $0x30] sm:$0x11]  ;;  %v317_v56 = vshll.u32 %v300_v52, 16  ;;  %v336_v57 = vshrl.u32 %v3406_v51, 16  ;;  %v339_v58 = vshll.u32 %v3406_v51, 16  ;;  %v322_v8 = vshrl.u32 %v3415_v59, 16  ;;  %vm3440_vm2 = vmor %vm304_vm0, %vm305_vm1 }
  0x21   : > { %v310_v61 = vrot.slane %v308_v54, 4  ;;  %v345_v62 = vshll.u32 %v302_v53, 16  ;;  %v301_v63 = vld [vmem:[%s3382_s23 + $0x18] sm:$0x11]  ;;  %v313_v2 = vrot.slane %v311_v55, 5  ;;  %v325_v9 = vshll.u32 %v3415_v59, 16 }
  0x22   : > { %774 = vmatpush1.bf16.msra.mxu0 %v2824_v22  ;;  %v303_v0 = vld [vmem:[%s3382_s23 + $0x38] sm:$0x11]  ;;  %v319_v3 = vrot.slane %v317_v56, 5  ;;  %v338_v4 = vrot.slane %v336_v57, 4  ;;  %v341_v5 = vrot.slane %v339_v58, 5  ;;  %v331_v10 = vshll.u32 %v301_v63, 16 }
  0x23   : > { %817 = vmatpush1.bf16.msra.mxu1 %v2825_v23  ;;  %775 = vmatprep.subr.bf16.mxu0 %v2826_v24  ;;  %v2867_v6 = vld [vmem:[%s4140_s1 + $0x3b0] ss:$8 sps:$4 sm:$0xff]   ;;  %v347_v7 = vrot.slane %v345_v62, 5  ;;  %v2868_v11 = vld [vmem:[%s4140_s1 + $0x2a4] ss:$8 sps:$4 sm:$0xff]   ;;  %v314_v12 = vor.u32 %v313_v2, %v310_v61  ;;  %v350_v14 = vshrl.u32 %v3418_v60, 16  ;;  %v2543_v57 = vcombine.high %v3397_v48, %v3406_v51 }
  0x24   : > { %818 = vmatprep.subr.bf16.mxu1 %v2828_v25  ;;  %v342_v13 = vor.u32 %v341_v5, %v338_v4  ;;  %v353_v15 = vshll.u32 %v3418_v60, 16  ;;  %v2870_v16 = vld [vmem:[%s4140_s1 + $0x3a4] ss:$8 sps:$4 sm:$0xff]   ;;  %v324_v18 = vrot.slane %v322_v8, 4  ;;  %v327_v19 = vrot.slane %v325_v9, 5 }
  0x25   : > { %v359_v20 = vshll.u32 %v303_v0, 16  ;;  %v315_v21 = vrot.slane %v314_v12, 4  ;;  %v352_v23 = vrot.slane %v350_v14, 4  ;;  %v2872_v25 = vld [vmem:[%s4140_s1 + $0x2a0] ss:$8 sps:$4 sm:$0xff]   ;;  %v2545_v58 = vcombine.high %v3415_v59, %v3418_v60 }
  0x26   : > { %776 = vmatpush1.bf16.msra.mxu0 %v2830_v26  ;;  %v343_v22 = vrot.slane %v342_v13, 4  ;;  %v355_v24 = vrot.slane %v353_v15, 5  ;;  %v328_v26 = vor.u32 %v327_v19, %v324_v18  ;;  %v2886_v53 = vld [vmem:[%s4140_s1 + $0x70] ss:$8 sps:$4 sm:$0xff]   ;;  %v2894_v55 = vld [vmem:[%s4140_s1 + $0x64] ss:$8 sps:$4 sm:$0xff]  }
  0x27   : > { %819 = vmatpush1.bf16.msra.mxu1 %v2831_v27  ;;  %777 = vmatprep.subr.bf16.mxu0 %v2832_v28  ;;  %v333_v27 = vrot.slane %v331_v10, 5  ;;  %v2873_v28 = vld [vmem:[%s4140_s1 + $0x3a0] ss:$8 sps:$4 sm:$0xff]   ;;  %v2889_v54 = vld [vmem:[%s4140_s1 + $0x170] ss:$8 sps:$4 sm:$0xff]  }
  0x28   : > { %820 = vmatprep.subr.bf16.mxu1 %v2834_v29  ;;  %v320_v29 = vsel %vm3440_vm2, %v315_v21, %v319_v3  ;;  %v2897_v56 = vld [vmem:[%s4140_s1 + $0x164] ss:$8 sps:$4 sm:$0xff]   ;;  %v2892_v61 = vld [vmem:[%s4140_s1 + $0x60] ss:$8 sps:$4 sm:$0xff]   ;;  %v2900_v63 = vld [vmem:[%s4140_s1 + $0x54] ss:$8 sps:$4 sm:$0xff]  }
  0x29   : > { %v2895_v62 = vld [vmem:[%s4140_s1 + $0x160] ss:$8 sps:$4 sm:$0xff]   ;;  %v2903_v0 = vld [vmem:[%s4140_s1 + $0x154] ss:$8 sps:$4 sm:$0xff]   ;;  %v2901_v2 = vld [vmem:[%s4140_s1 + $0x150] ss:$8 sps:$4 sm:$0xff]  }
  0x2a   : > { %778 = vmatpush1.bf16.msra.mxu0 %v2836_v30  ;;  %v348_v30 = vsel %vm3440_vm2, %v343_v22, %v347_v7  ;;  %v2906_v3 = vld [vmem:[%s4140_s1 + $0x44] ss:$8 sps:$4 sm:$0xff]   ;;  %v2904_v5 = vld [vmem:[%s4140_s1 + $0x40] ss:$8 sps:$4 sm:$0xff]   ;;  %v2912_v7 = vld [vmem:[%s4140_s1 + $0x34] ss:$8 sps:$4 sm:$0xff]  }
  0x2b   : > { %821 = vmatpush1.bf16.msra.mxu1 %v2837_v31  ;;  %779 = vmatprep.subr.bf16.mxu0 %v2838_v32  ;;  %v356_v31 = vor.u32 %v355_v24, %v352_v23  ;;  %v361_v32 = vrot.slane %v359_v20, 5  ;;  %v2909_v4 = vld [vmem:[%s4140_s1 + $0x144] ss:$8 sps:$4 sm:$0xff]   ;;  %v2915_v8 = vld [vmem:[%s4140_s1 + $0x134] ss:$8 sps:$4 sm:$0xff]  }
  0x2c   : > { %822 = vmatprep.subr.bf16.mxu1 %v2840_v33  ;;  %v2874_v33 = vld [vmem:[%s4140_s1 + $0x294] ss:$8 sps:$4 sm:$0xff]   ;;  %v2910_v9 = vld [vmem:[%s4140_s1 + $0x30] ss:$8 sps:$4 sm:$0xff]   ;;  %v2921_v12 = vld [vmem:[%s4140_s1 + $0x124] ss:$8 sps:$4 sm:$0xff]  }
  0x2d   : > { %v2913_v10 = vld [vmem:[%s4140_s1 + $0x130] ss:$8 sps:$4 sm:$0xff]   ;;  %v2916_v13 = vld [vmem:[%s4140_s1 + $0x20] ss:$8 sps:$4 sm:$0xff]   ;;  %v2924_v15 = vld [vmem:[%s4140_s1 + $0x14] ss:$8 sps:$4 sm:$0xff]  }
  0x2e   : > { %780 = vmatpush2.bf16.msra.mxu0 %v2842_v34  ;;  %v2876_v34 = vld [vmem:[%s4140_s1 + $0x394] ss:$8 sps:$4 sm:$0xff]   ;;  %v2919_v14 = vld [vmem:[%s4140_s1 + $0x120] ss:$8 sps:$4 sm:$0xff]   ;;  %v2922_v18 = vld [vmem:[%s4140_s1 + $0x10] ss:$8 sps:$4 sm:$0xff]  }
  0x2f   : > { %823 = vmatpush2.bf16.msra.mxu1 %v2843_v35  ;;  %781 = vmatprep.subr.bf16.mxu0 %v2844_v36  ;;  %v2475_v35 = vcombine.high %v320_v29, %v348_v30  ;;  %v329_v36 = vrot.slane %v328_v26, 4  ;;  %v2925_v19 = vld [vmem:[%s4140_s1 + $0x110] ss:$8 sps:$4 sm:$0xff]   ;;  %v2930_v20 = vld [vmem:[%s4140_s1 + $0x4] ss:$8 sps:$4 sm:$0xff]  }
  0x30   : > { %824 = vmatprep.subr.bf16.mxu1 %v2846_v37  ;;  %v357_v37 = vrot.slane %v356_v31, 4  ;;  %v2933_v21 = vld [vmem:[%s4140_s1 + $0x104] ss:$8 sps:$4 sm:$0xff]   ;;  %v2928_v22 = vld [vmem:[%s4140_s1] ss:$8 sps:$4 sm:$0xff]  }
  0x31   : > { %795 = vmatprep.mubr.bf16.mxu0 %v2475_v35  ;;  %v2931_v23 = vld [vmem:[%s4140_s1 + $0x100] ss:$8 sps:$4 sm:$0xff]   ;;  %v2936_v24 = vld [vmem:[%s4140_s1 + $0xf4] ss:$8 sps:$4 sm:$0xff]   ;;  %v2934_v26 = vld [vmem:[%s4140_s1 + $0xf0] ss:$8 sps:$4 sm:$0xff]  }
  0x32   : > { %782 = vmatpush2.bf16.msra.mxu0 %v2848_v38  ;;  %v2878_v38 = vld [vmem:[%s4140_s1 + $0x290] ss:$8 sps:$4 sm:$0xff]   ;;  %v2943_v31 = vld [vmem:[%s4140_s1 + $0x1e0] ss:$8 sps:$4 sm:$0xff]   ;;  %v3089_v17 = vld [vmem:[%s4140_s1 + $0x764] ss:$8 sps:$4 sm:$0xff]  }
  0x33   : > { %825 = vmatpush2.bf16.msra.mxu1 %v2849_v39  ;;  %783 = vmatprep.subr.bf16.mxu0 %v2850_v40  ;;  %v334_v39 = vsel %vm3440_vm2, %v329_v36, %v333_v27  ;;  %v2879_v40 = vld [vmem:[%s4140_s1 + $0x390] ss:$8 sps:$4 sm:$0xff]   ;;  %v2954_v36 = vld [vmem:[%s4140_s1 + $0xc4] ss:$8 sps:$4 sm:$0xff]  }
  0x34   : > { %826 = vmatprep.subr.bf16.mxu1 %v2852_v41  ;;  %v362_v41 = vsel %vm3440_vm2, %v357_v37, %v361_v32  ;;  %v2937_v27 = vld [vmem:[%s4140_s1 + $0x1f0] ss:$8 sps:$4 sm:$0xff]   ;;  %v2948_v32 = vld [vmem:[%s4140_s1 + $0xd4] ss:$8 sps:$4 sm:$0xff]   ;;  %v2957_v37 = vld [vmem:[%s4140_s1 + $0x1c4] ss:$8 sps:$4 sm:$0xff]  }
  0x35   : > { %v2476_v52 = vcombine.low %v334_v39, %v362_v41  ;;  %v2949_v35 = vld [vmem:[%s4140_s1 + $0x1d0] ss:$8 sps:$4 sm:$0xff]  }
  0x36   : > { %784 = vmatpush2.bf16.msra.mxu0 %v2854_v42  ;;  %v2880_v42 = vld [vmem:[%s4140_s1 + $0x284] ss:$8 sps:$4 sm:$0xff]  }
  0x37   : > { %827 = vmatpush2.bf16.msra.mxu1 %v2855_v43  ;;  %785 = vmatprep.subr.bf16.mxu0 %v2856_v44  ;;  %v2882_v43 = vld [vmem:[%s4140_s1 + $0x384] ss:$8 sps:$4 sm:$0xff]   ;;  %v2477_v44 = vcombine.high %v334_v39, %v362_v41  ;;  %v2955_v39 = vld [vmem:[%s4140_s1 + $0x1c0] ss:$8 sps:$4 sm:$0xff]   ;;  %v2963_v41 = vld [vmem:[%s4140_s1 + $0x1b4] ss:$8 sps:$4 sm:$0xff]  }
  0x38   : > { %828 = vmatprep.subr.bf16.mxu1 %v2858_v45  ;;  %v2884_v45 = vld [vmem:[%s4140_s1 + $0x280] ss:$8 sps:$4 sm:$0xff]  }
  0x39   : > { %838 = vmatprep.mubr.bf16.mxu1 %v2477_v44  ;;  %v2966_v44 = vld [vmem:[%s4140_s1 + $0xa4] ss:$8 sps:$4 sm:$0xff]  }
  0x3a   : > { %786 = vmatpush2.bf16.msra.mxu0 %v2860_v46  ;;  %v2885_v46 = vld [vmem:[%s4140_s1 + $0x380] ss:$8 sps:$4 sm:$0xff]  }
  0x3b   : > { %829 = vmatpush2.bf16.msra.mxu1 %v2861_v47  ;;  %787 = vmatprep.subr.bf16.mxu0 %v2862_v49  ;;  %v2888_v47 = vld [vmem:[%s4140_s1 + $0x74] ss:$8 sps:$4 sm:$0xff]  }
  0x3c   : > { %830 = vmatprep.subr.bf16.mxu1 %v2864_v50  ;;  %v2891_v49 = vld [vmem:[%s4140_s1 + $0x174] ss:$8 sps:$4 sm:$0xff]   ;;  %v2474_v50 = vcombine.low %v320_v29, %v348_v30  ;;  %v2945_v29 = vld [vmem:[%s4140_s1 + $0x1e4] ss:$8 sps:$4 sm:$0xff]   ;;  %v2940_v30 = vld [vmem:[%s4140_s1 + $0xe0] ss:$8 sps:$4 sm:$0xff]  }
  0x3e   : > { %788 = vmatpush2.bf16.msra.mxu0 %v2866_v1  ;;  %v2898_v1 = vld [vmem:[%s4140_s1 + $0x50] ss:$8 sps:$4 sm:$0xff]  }
  0x3f   : > { %831 = vmatpush2.bf16.msra.mxu1 %v2867_v6  ;;  %789 = vmatprep.subr.bf16.mxu0 %v2868_v11  ;;  %v2907_v6 = vld [vmem:[%s4140_s1 + $0x140] ss:$8 sps:$4 sm:$0xff]   ;;  %v2918_v11 = vld [vmem:[%s4140_s1 + $0x24] ss:$8 sps:$4 sm:$0xff]  }
  0x40   : > { %832 = vmatprep.subr.bf16.mxu1 %v2870_v16  ;;  %v2927_v16 = vld [vmem:[%s4140_s1 + $0x114] ss:$8 sps:$4 sm:$0xff]  }
  0x42   : > { %790 = vmatpush2.bf16.msra.mxu0 %v2872_v25  ;;  %v2939_v25 = vld [vmem:[%s4140_s1 + $0x1f4] ss:$8 sps:$4 sm:$0xff]  }
  0x43   : > { %833 = vmatpush2.bf16.msra.mxu1 %v2873_v28  ;;  %791 = vmatprep.subr.bf16.mxu0 %v2874_v33  ;;  %v2942_v28 = vld [vmem:[%s4140_s1 + $0xe4] ss:$8 sps:$4 sm:$0xff]   ;;  %v2951_v33 = vld [vmem:[%s4140_s1 + $0x1d4] ss:$8 sps:$4 sm:$0xff]  }
  0x44   : > { %834 = vmatprep.subr.bf16.mxu1 %v2876_v34  ;;  %v2946_v34 = vld [vmem:[%s4140_s1 + $0xd0] ss:$8 sps:$4 sm:$0xff]  }
  0x46   : > { %792 = vmatpush2.bf16.msra.mxu0 %v2878_v38  ;;  %v2952_v38 = vld [vmem:[%s4140_s1 + $0xc0] ss:$8 sps:$4 sm:$0xff]  }
  0x47   : > { %835 = vmatpush2.bf16.msra.mxu1 %v2879_v40  ;;  %793 = vmatprep.subr.bf16.mxu0 %v2880_v42  ;;  %v2960_v40 = vld [vmem:[%s4140_s1 + $0xb4] ss:$8 sps:$4 sm:$0xff]   ;;  %v2958_v42 = vld [vmem:[%s4140_s1 + $0xb0] ss:$8 sps:$4 sm:$0xff]  }
  0x48   : > { %836 = vmatprep.subr.bf16.mxu1 %v2882_v43  ;;  %v2961_v43 = vld [vmem:[%s4140_s1 + $0x1b0] ss:$8 sps:$4 sm:$0xff]  }
  0x4a   : > { %794 = vmatpush2.bf16.msra.mxu0 %v2884_v45  ;;  %v2969_v45 = vld [vmem:[%s4140_s1 + $0x1a4] ss:$8 sps:$4 sm:$0xff]  }
  0x4b   : > { %837 = vmatpush2.bf16.msra.mxu1 %v2885_v46  ;;  %1189 = vmatprep.subr.bf16.mxu0 %v2888_v47  ;;  %v2964_v46 = vld [vmem:[%s4140_s1 + $0xa0] ss:$8 sps:$4 sm:$0xff]  }
  0x4c   : > { %1232 = vmatprep.subr.bf16.mxu1 %v2891_v49  ;;  %v2967_v47 = vld [vmem:[%s4140_s1 + $0x1a0] ss:$8 sps:$4 sm:$0xff]   ;;  %v2972_v49 = vld [vmem:[%s4140_s1 + $0x94] ss:$8 sps:$4 sm:$0xff]  }
  0x4d   : > { %796 = vmatmul.mubr.bf16.vlgmr.msra.gmra.mxu0 %v2474_v50  ;;  %v2975_v50 = vld [vmem:[%s4140_s1 + $0x194] ss:$8 sps:$4 sm:$0xff]  }
  0x4e   : > { %839 = vmatmul.mubr.bf16.vlgmr.msra.gmra.mxu1 %v2476_v52  ;;  %1190 = vmatpush1.bf16.msra.mxu0 %v2886_v53  ;;  %v2970_v52 = vld [vmem:[%s4140_s1 + $0x90] ss:$8 sps:$4 sm:$0xff]  }
  0x4f   : > { %1233 = vmatpush1.bf16.msra.mxu1 %v2889_v54  ;;  %1191 = vmatprep.subr.bf16.mxu0 %v2894_v55  ;;  %v2973_v53 = vld [vmem:[%s4140_s1 + $0x190] ss:$8 sps:$4 sm:$0xff]   ;;  %v2978_v54 = vld [vmem:[%s4140_s1 + $0x84] ss:$8 sps:$4 sm:$0xff]  }
  0x50   : > { %1234 = vmatprep.subr.bf16.mxu1 %v2897_v56  ;;  %1221 = vmatprep.mubr.bf16.mxu0 %v2543_v57  ;;  %v2981_v55 = vld [vmem:[%s4140_s1 + $0x184] ss:$8 sps:$4 sm:$0xff]   ;;  %v2976_v56 = vld [vmem:[%s4140_s1 + $0x80] ss:$8 sps:$4 sm:$0xff]  }
  0x51   : > { %1264 = vmatprep.mubr.bf16.mxu1 %v2545_v58  ;;  %v2979_v57 = vld [vmem:[%s4140_s1 + $0x180] ss:$8 sps:$4 sm:$0xff]   ;;  %v2984_v58 = vld [vmem:[%s4140_s1 + $0x474] ss:$8 sps:$4 sm:$0xff]  }
  0x52   : > { %1192 = vmatpush1.bf16.msra.mxu0 %v2892_v61  ;;  %v2987_v61 = vld [vmem:[%s4140_s1 + $0x574] ss:$8 sps:$4 sm:$0xff]  }
  0x53   : > { %1235 = vmatpush1.bf16.msra.mxu1 %v2895_v62  ;;  %1193 = vmatprep.subr.bf16.mxu0 %v2900_v63  ;;  %v2542_v62 = vcombine.low %v3397_v48, %v3406_v51  ;;  %v2544_v63 = vcombine.low %v3415_v59, %v3418_v60  ;;  %v2990_v48 = vld [vmem:[%s4140_s1 + $0x464] ss:$8 sps:$4 sm:$0xff]  }
  0x54   : > { %1236 = vmatprep.subr.bf16.mxu1 %v2903_v0  ;;  %v2982_v0 = vld [vmem:[%s4140_s1 + $0x470] ss:$8 sps:$4 sm:$0xff]   ;;  %v2993_v59 = vld [vmem:[%s4140_s1 + $0x564] ss:$8 sps:$4 sm:$0xff]  }
  0x56   : > { %1194 = vmatpush1.bf16.msra.mxu0 %v2898_v1  ;;  %v2985_v1 = vld [vmem:[%s4140_s1 + $0x570] ss:$8 sps:$4 sm:$0xff]  }
  0x57   : > { %1237 = vmatpush1.bf16.msra.mxu1 %v2901_v2  ;;  %1195 = vmatprep.subr.bf16.mxu0 %v2906_v3  ;;  %v2988_v2 = vld [vmem:[%s4140_s1 + $0x460] ss:$8 sps:$4 sm:$0xff]  }
  0x58   : > { %1238 = vmatprep.subr.bf16.mxu1 %v2909_v4  ;;  %v2991_v3 = vld [vmem:[%s4140_s1 + $0x560] ss:$8 sps:$4 sm:$0xff]   ;;  %v2996_v4 = vld [vmem:[%s4140_s1 + $0x454] ss:$8 sps:$4 sm:$0xff]  }
  0x5a   : > { %1196 = vmatpush1.bf16.msra.mxu0 %v2904_v5  ;;  %v2999_v5 = vld [vmem:[%s4140_s1 + $0x554] ss:$8 sps:$4 sm:$0xff]  }
  0x5b   : > { %1239 = vmatpush1.bf16.msra.mxu1 %v2907_v6  ;;  %1197 = vmatprep.subr.bf16.mxu0 %v2912_v7  ;;  %v3713_v6 = vld [vmem:[%s3382_s23 + $0x40] sm:$0xff] }
  0x5c   : > { %1240 = vmatprep.subr.bf16.mxu1 %v2915_v8  ;;  %v2615_v7 = vcombine.high %v3406_v51, %v3713_v6  ;;  %v3718_v8 = vld [vmem:[%s3382_s23 + $0x48] sm:$0xff] }
  0x5d   : > { %v3005_v51 = vld [vmem:[%s4140_s1 + $0x544] ss:$8 sps:$4 sm:$0xff]  }
  0x5e   : > { %1198 = vmatpush1.bf16.msra.mxu0 %v2910_v9  ;;  %v2994_v9 = vld [vmem:[%s4140_s1 + $0x450] ss:$8 sps:$4 sm:$0xff]  }
  0x5f   : > { %1241 = vmatpush1.bf16.msra.mxu1 %v2913_v10  ;;  %1199 = vmatprep.subr.bf16.mxu0 %v2918_v11  ;;  %v2617_v10 = vcombine.high %v3418_v60, %v3718_v8  ;;  %v2997_v11 = vld [vmem:[%s4140_s1 + $0x550] ss:$8 sps:$4 sm:$0xff]   ;;  %v3000_v60 = vld [vmem:[%s4140_s1 + $0x440] ss:$8 sps:$4 sm:$0xff]  }
  0x60   : > { %1242 = vmatprep.subr.bf16.mxu1 %v2921_v12  ;;  %v3002_v12 = vld [vmem:[%s4140_s1 + $0x444] ss:$8 sps:$4 sm:$0xff]  }
  0x62   : > { %1200 = vmatpush1.bf16.msra.mxu0 %v2916_v13  ;;  %v3003_v13 = vld [vmem:[%s4140_s1 + $0x540] ss:$8 sps:$4 sm:$0xff]  }
  0x63   : > { %1243 = vmatpush1.bf16.msra.mxu1 %v2919_v14  ;;  %1201 = vmatprep.subr.bf16.mxu0 %v2924_v15  ;;  %v3008_v14 = vld [vmem:[%s4140_s1 + $0x434] ss:$8 sps:$4 sm:$0xff]  }
  0x64   : > { %1244 = vmatprep.subr.bf16.mxu1 %v2927_v16  ;;  %v3011_v15 = vld [vmem:[%s4140_s1 + $0x534] ss:$8 sps:$4 sm:$0xff]   ;;  %v3006_v16 = vld [vmem:[%s4140_s1 + $0x430] ss:$8 sps:$4 sm:$0xff]  }
  0x66   : > { %1202 = vmatpush1.bf16.msra.mxu0 %v2922_v18  ;;  %v3009_v18 = vld [vmem:[%s4140_s1 + $0x530] ss:$8 sps:$4 sm:$0xff]  }
  0x67   : > { %1245 = vmatpush1.bf16.msra.mxu1 %v2925_v19  ;;  %1203 = vmatprep.subr.bf16.mxu0 %v2930_v20  ;;  %v3014_v19 = vld [vmem:[%s4140_s1 + $0x424] ss:$8 sps:$4 sm:$0xff]  }
  0x68   : > { %1246 = vmatprep.subr.bf16.mxu1 %v2933_v21  ;;  %v3017_v20 = vld [vmem:[%s4140_s1 + $0x524] ss:$8 sps:$4 sm:$0xff]   ;;  %v3012_v21 = vld [vmem:[%s4140_s1 + $0x420] ss:$8 sps:$4 sm:$0xff]  }
  0x6a   : > { %1204 = vmatpush1.bf16.msra.mxu0 %v2928_v22  ;;  %v3015_v22 = vld [vmem:[%s4140_s1 + $0x520] ss:$8 sps:$4 sm:$0xff]  }
  0x6b   : > { %1247 = vmatpush1.bf16.msra.mxu1 %v2931_v23  ;;  %1205 = vmatprep.subr.bf16.mxu0 %v2936_v24  ;;  %v3020_v23 = vld [vmem:[%s4140_s1 + $0x414] ss:$8 sps:$4 sm:$0xff]  }
  0x6c   : > { %1248 = vmatprep.subr.bf16.mxu1 %v2939_v25  ;;  %v3023_v24 = vld [vmem:[%s4140_s1 + $0x514] ss:$8 sps:$4 sm:$0xff]   ;;  %v3018_v25 = vld [vmem:[%s4140_s1 + $0x410] ss:$8 sps:$4 sm:$0xff]  }
  0x6e   : > { %1206 = vmatpush2.bf16.msra.mxu0 %v2934_v26  ;;  %v3021_v26 = vld [vmem:[%s4140_s1 + $0x510] ss:$8 sps:$4 sm:$0xff]  }
  0x6f   : > { %1249 = vmatpush2.bf16.msra.mxu1 %v2937_v27  ;;  %1207 = vmatprep.subr.bf16.mxu0 %v2942_v28  ;;  %v3026_v27 = vld [vmem:[%s4140_s1 + $0x404] ss:$8 sps:$4 sm:$0xff]  }
  0x70   : > { %1250 = vmatprep.subr.bf16.mxu1 %v2945_v29  ;;  %v3029_v28 = vld [vmem:[%s4140_s1 + $0x504] ss:$8 sps:$4 sm:$0xff]   ;;  %v3024_v29 = vld [vmem:[%s4140_s1 + $0x400] ss:$8 sps:$4 sm:$0xff]  }
  0x72   : > { %1208 = vmatpush2.bf16.msra.mxu0 %v2940_v30  ;;  %v3027_v30 = vld [vmem:[%s4140_s1 + $0x500] ss:$8 sps:$4 sm:$0xff]  }
  0x73   : > { %1251 = vmatpush2.bf16.msra.mxu1 %v2943_v31  ;;  %1209 = vmatprep.subr.bf16.mxu0 %v2948_v32  ;;  %v3032_v31 = vld [vmem:[%s4140_s1 + $0x4f4] ss:$8 sps:$4 sm:$0xff]  }
  0x74   : > { %1252 = vmatprep.subr.bf16.mxu1 %v2951_v33  ;;  %v3035_v32 = vld [vmem:[%s4140_s1 + $0x5f4] ss:$8 sps:$4 sm:$0xff]   ;;  %v3030_v33 = vld [vmem:[%s4140_s1 + $0x4f0] ss:$8 sps:$4 sm:$0xff]  }
  0x76   : > { %1210 = vmatpush2.bf16.msra.mxu0 %v2946_v34  ;;  %v3033_v34 = vld [vmem:[%s4140_s1 + $0x5f0] ss:$8 sps:$4 sm:$0xff]  }
  0x77   : > { %1253 = vmatpush2.bf16.msra.mxu1 %v2949_v35  ;;  %1211 = vmatprep.subr.bf16.mxu0 %v2954_v36  ;;  %v3038_v35 = vld [vmem:[%s4140_s1 + $0x4e4] ss:$8 sps:$4 sm:$0xff]  }
  0x78   : > { %1254 = vmatprep.subr.bf16.mxu1 %v2957_v37  ;;  %v3041_v36 = vld [vmem:[%s4140_s1 + $0x5e4] ss:$8 sps:$4 sm:$0xff]   ;;  %v3036_v37 = vld [vmem:[%s4140_s1 + $0x4e0] ss:$8 sps:$4 sm:$0xff]  }
  0x7a   : > { %1212 = vmatpush2.bf16.msra.mxu0 %v2952_v38  ;;  %v3039_v38 = vld [vmem:[%s4140_s1 + $0x5e0] ss:$8 sps:$4 sm:$0xff]  }
  0x7b   : > { %1255 = vmatpush2.bf16.msra.mxu1 %v2955_v39  ;;  %1213 = vmatprep.subr.bf16.mxu0 %v2960_v40  ;;  %v3044_v39 = vld [vmem:[%s4140_s1 + $0x4d4] ss:$8 sps:$4 sm:$0xff]  }
  0x7c   : > { %1256 = vmatprep.subr.bf16.mxu1 %v2963_v41  ;;  %v3047_v40 = vld [vmem:[%s4140_s1 + $0x5d4] ss:$8 sps:$4 sm:$0xff]   ;;  %v3042_v41 = vld [vmem:[%s4140_s1 + $0x4d0] ss:$8 sps:$4 sm:$0xff]  }
  0x7e   : > { %1214 = vmatpush2.bf16.msra.mxu0 %v2958_v42  ;;  %v3045_v42 = vld [vmem:[%s4140_s1 + $0x5d0] ss:$8 sps:$4 sm:$0xff]  }
  0x7f   : > { %1257 = vmatpush2.bf16.msra.mxu1 %v2961_v43  ;;  %1215 = vmatprep.subr.bf16.mxu0 %v2966_v44  ;;  %v3050_v43 = vld [vmem:[%s4140_s1 + $0x4c4] ss:$8 sps:$4 sm:$0xff]  }
  0x80   : > { %1258 = vmatprep.subr.bf16.mxu1 %v2969_v45  ;;  %v3053_v44 = vld [vmem:[%s4140_s1 + $0x5c4] ss:$8 sps:$4 sm:$0xff]   ;;  %v3048_v45 = vld [vmem:[%s4140_s1 + $0x4c0] ss:$8 sps:$4 sm:$0xff]  }
  0x82   : > { %1216 = vmatpush2.bf16.msra.mxu0 %v2964_v46  ;;  %v3051_v46 = vld [vmem:[%s4140_s1 + $0x5c0] ss:$8 sps:$4 sm:$0xff]  }
  0x83   : > { %1259 = vmatpush2.bf16.msra.mxu1 %v2967_v47  ;;  %1217 = vmatprep.subr.bf16.mxu0 %v2972_v49  ;;  %v3056_v47 = vld [vmem:[%s4140_s1 + $0x4b4] ss:$8 sps:$4 sm:$0xff]  }
  0x84   : > { %1260 = vmatprep.subr.bf16.mxu1 %v2975_v50  ;;  %v3059_v49 = vld [vmem:[%s4140_s1 + $0x5b4] ss:$8 sps:$4 sm:$0xff]   ;;  %v1811_v50 = vshrl.u32 %v3713_v6, 16 }
  0x86   : > { %1218 = vmatpush2.bf16.msra.mxu0 %v2970_v52  ;;  %v1814_v52 = vshll.u32 %v3713_v6, 16 }
  0x87   : > { %1261 = vmatpush2.bf16.msra.mxu1 %v2973_v53  ;;  %1219 = vmatprep.subr.bf16.mxu0 %v2978_v54  ;;  %v1825_v53 = vshrl.u32 %v3718_v8, 16  ;;  %v1828_v54 = vshll.u32 %v3718_v8, 16 }
  0x88   : > { %1262 = vmatprep.subr.bf16.mxu1 %v2981_v55  ;;  %v3054_v55 = vld [vmem:[%s4140_s1 + $0x4b0] ss:$8 sps:$4 sm:$0xff]  }
  0x8a   : > { %1220 = vmatpush2.bf16.msra.mxu0 %v2976_v56  ;;  %v3057_v56 = vld [vmem:[%s4140_s1 + $0x5b0] ss:$8 sps:$4 sm:$0xff]  }
  0x8b   : > { %1263 = vmatpush2.bf16.msra.mxu1 %v2979_v57  ;;  %1684 = vmatprep.subr.bf16.mxu0 %v2984_v58  ;;  %v3062_v57 = vld [vmem:[%s4140_s1 + $0x4a4] ss:$8 sps:$4 sm:$0xff]  }
  0x8c   : > { %1727 = vmatprep.subr.bf16.mxu1 %v2987_v61  ;;  %v3065_v58 = vld [vmem:[%s4140_s1 + $0x5a4] ss:$8 sps:$4 sm:$0xff]  }
  0x8d   : > { %1222 = vmatmul.mubr.bf16.vlgmr.msra.gmra.mxu0 %v2542_v62  ;;  %v2682_v61 = vld [vmem:[%s3382_s23 + $0x20] sm:$0xff]  ;;  %v1813_v62 = vrot.slane %v1811_v50, 4 }
  0x8e   : > { %1265 = vmatmul.mubr.bf16.vlgmr.msra.gmra.mxu1 %v2544_v63  ;;  %1685 = vmatpush1.bf16.msra.mxu0 %v2982_v0  ;;  %v1816_v63 = vrot.slane %v1814_v52, 5  ;;  %v3060_v0 = vld [vmem:[%s4140_s1 + $0x4a0] ss:$8 sps:$4 sm:$0xff]   ;;  %v3086_v52 = vld [vmem:[%s4140_s1 + $0x664] ss:$8 sps:$4 sm:$0xff]  }
  0x8f   : > { %1728 = vmatpush1.bf16.msra.mxu1 %v2985_v1  ;;  %1686 = vmatprep.subr.bf16.mxu0 %v2990_v48  ;;  %v3063_v1 = vld [vmem:[%s4140_s1 + $0x5a0] ss:$8 sps:$4 sm:$0xff]   ;;  %v1783_v48 = vshrl.u32 %v2682_v61, 16 }
  0x90   : > { %1729 = vmatprep.subr.bf16.mxu1 %v2993_v59  ;;  %1716 = vmatprep.mubr.bf16.mxu0 %v2615_v7  ;;  %v1786_v59 = vshll.u32 %v2682_v61, 16  ;;  %v2688_v7 = vld [vmem:[%s3382_s23 + $0x50] sm:$0x11] }
  0x91   : > { %1759 = vmatprep.mubr.bf16.mxu1 %v2617_v10  ;;  %v3090_v61 = vld [vmem:[%s4140_s1 + $0x650] ss:$8 sps:$4 sm:$0xff]  }
  0x92   : > { %1687 = vmatpush1.bf16.msra.mxu0 %v2988_v2  ;;  %v2683_v2 = vld [vmem:[%s3382_s23 + $0x28] sm:$0xff] }
  0x93   : > { %1730 = vmatpush1.bf16.msra.mxu1 %v2991_v3  ;;  %1688 = vmatprep.subr.bf16.mxu0 %v2996_v4  ;;  %v1827_v3 = vrot.slane %v1825_v53, 4  ;;  %v1830_v4 = vrot.slane %v1828_v54, 5  ;;  %v1800_v10 = vshll.u32 %v2683_v2, 16 }
  0x94   : > { %1731 = vmatprep.subr.bf16.mxu1 %v2999_v5  ;;  %v2684_v5 = vld [vmem:[%s3382_s23 + $0x30] sm:$0x11] }
  0x96   : > { %1689 = vmatpush1.bf16.msra.mxu0 %v2994_v9  ;;  %v1797_v9 = vshrl.u32 %v2683_v2, 16  ;;  %v3107_v2 = vld [vmem:[%s4140_s1 + $0x734] ss:$8 sps:$4 sm:$0xff]  }
  0x97   : > { %1732 = vmatpush1.bf16.msra.mxu1 %v2997_v11  ;;  %1690 = vmatprep.subr.bf16.mxu0 %v3002_v12  ;;  %v1785_v11 = vrot.slane %v1783_v48, 4  ;;  %v1788_v12 = vrot.slane %v1786_v59, 5  ;;  %v3099_v48 = vld [vmem:[%s4140_s1 + $0x740] ss:$8 sps:$4 sm:$0xff]   ;;  %v3104_v59 = vld [vmem:[%s4140_s1 + $0x634] ss:$8 sps:$4 sm:$0xff]  }
  0x98   : > { %1733 = vmatprep.subr.bf16.mxu1 %v3005_v51  ;;  %v2685_v51 = vld [vmem:[%s3382_s23 + $0x38] sm:$0x11] }
  0x9a   : > { %1691 = vmatpush1.bf16.msra.mxu0 %v3000_v60  ;;  %v2689_v60 = vld [vmem:[%s3382_s23 + $0x58] sm:$0x11] }
  0x9b   : > { %1734 = vmatpush1.bf16.msra.mxu1 %v3003_v13  ;;  %1692 = vmatprep.subr.bf16.mxu0 %v3008_v14  ;;  %v3068_v13 = vld [vmem:[%s4140_s1 + $0x494] ss:$8 sps:$4 sm:$0xff]  }
  0x9c   : > { %1735 = vmatprep.subr.bf16.mxu1 %v3011_v15  ;;  %v3071_v14 = vld [vmem:[%s4140_s1 + $0x594] ss:$8 sps:$4 sm:$0xff]   ;;  %v1799_v15 = vrot.slane %v1797_v9, 4  ;;  %v3108_v9 = vld [vmem:[%s4140_s1 + $0x620] ss:$8 sps:$4 sm:$0xff]  }
  0x9e   : > { %1693 = vmatpush1.bf16.msra.mxu0 %v3006_v16  ;;  %v1802_v16 = vrot.slane %v1800_v10, 5  ;;  %v3111_v10 = vld [vmem:[%s4140_s1 + $0x720] ss:$8 sps:$4 sm:$0xff]  }
  0x9f   : > { %1736 = vmatpush1.bf16.msra.mxu1 %v3009_v18  ;;  %1694 = vmatprep.subr.bf16.mxu0 %v3014_v19  ;;  %v1792_v18 = vshll.u32 %v2684_v5, 16  ;;  %v1817_v19 = vor.u32 %v1816_v63, %v1813_v62  ;;  %v3093_v62 = vld [vmem:[%s4140_s1 + $0x750] ss:$8 sps:$4 sm:$0xff]   ;;  %v3098_v63 = vld [vmem:[%s4140_s1 + $0x644] ss:$8 sps:$4 sm:$0xff]  }
  0xa0   : > { %1737 = vmatprep.subr.bf16.mxu1 %v3017_v20  ;;  %v1820_v20 = vshll.u32 %v2688_v7, 16  ;;  %v3110_v5 = vld [vmem:[%s4140_s1 + $0x624] ss:$8 sps:$4 sm:$0xff]  }
  0xa1   : > { %v3113_v7 = vld [vmem:[%s4140_s1 + $0x724] ss:$8 sps:$4 sm:$0xff]  }
  0xa2   : > { %1695 = vmatpush1.bf16.msra.mxu0 %v3012_v21  ;;  %v1831_v21 = vor.u32 %v1830_v4, %v1827_v3  ;;  %v3102_v3 = vld [vmem:[%s4140_s1 + $0x630] ss:$8 sps:$4 sm:$0xff]  }
  0xa3   : > { %1738 = vmatpush1.bf16.msra.mxu1 %v3015_v22  ;;  %1696 = vmatprep.subr.bf16.mxu0 %v3020_v23  ;;  %v1789_v22 = vor.u32 %v1788_v12, %v1785_v11  ;;  %v1803_v23 = vor.u32 %v1802_v16, %v1799_v15  ;;  %v3105_v4 = vld [vmem:[%s4140_s1 + $0x730] ss:$8 sps:$4 sm:$0xff]   ;;  %v3116_v11 = vld [vmem:[%s4140_s1 + $0x614] ss:$8 sps:$4 sm:$0xff]   ;;  %v3120_v15 = vld [vmem:[%s4140_s1 + $0x600] ss:$8 sps:$4 sm:$0xff]  }
  0xa4   : > { %1739 = vmatprep.subr.bf16.mxu1 %v3023_v24  ;;  %v1806_v24 = vshll.u32 %v2685_v51, 16  ;;  %v3119_v12 = vld [vmem:[%s4140_s1 + $0x714] ss:$8 sps:$4 sm:$0xff]   ;;  %v3114_v51 = vld [vmem:[%s4140_s1 + $0x610] ss:$8 sps:$4 sm:$0xff]  }
  0xa5   : > { %v3123_v16 = vld [vmem:[%s4140_s1 + $0x700] ss:$8 sps:$4 sm:$0xff]  }
  0xa6   : > { %1697 = vmatpush1.bf16.msra.mxu0 %v3018_v25  ;;  %v1834_v25 = vshll.u32 %v2689_v60, 16  ;;  %v3117_v60 = vld [vmem:[%s4140_s1 + $0x710] ss:$8 sps:$4 sm:$0xff]  }
  0xa7   : > { %1740 = vmatpush1.bf16.msra.mxu1 %v3021_v26  ;;  %1698 = vmatprep.subr.bf16.mxu0 %v3026_v27  ;;  %v3066_v26 = vld [vmem:[%s4140_s1 + $0x490] ss:$8 sps:$4 sm:$0xff]  }
  0xa8   : > { %1741 = vmatprep.subr.bf16.mxu1 %v3029_v28  ;;  %v3069_v27 = vld [vmem:[%s4140_s1 + $0x590] ss:$8 sps:$4 sm:$0xff]   ;;  %v3074_v28 = vld [vmem:[%s4140_s1 + $0x484] ss:$8 sps:$4 sm:$0xff]  }
  0xaa   : > { %1699 = vmatpush1.bf16.msra.mxu0 %v3024_v29  ;;  %v3077_v29 = vld [vmem:[%s4140_s1 + $0x584] ss:$8 sps:$4 sm:$0xff]  }
  0xab   : > { %1742 = vmatpush1.bf16.msra.mxu1 %v3027_v30  ;;  %1700 = vmatprep.subr.bf16.mxu0 %v3032_v31  ;;  %v1794_v30 = vrot.slane %v1792_v18, 5  ;;  %v1818_v31 = vrot.slane %v1817_v19, 4  ;;  %v3128_v18 = vld [vmem:[%s4140_s1 + $0x6f4] ss:$8 sps:$4 sm:$0xff]  }
  0xac   : > { %1743 = vmatprep.subr.bf16.mxu1 %v3035_v32  ;;  %v1822_v32 = vrot.slane %v1820_v20, 5  ;;  %v3131_v19 = vld [vmem:[%s4140_s1 + $0x7f4] ss:$8 sps:$4 sm:$0xff]   ;;  %v3126_v20 = vld [vmem:[%s4140_s1 + $0x6f0] ss:$8 sps:$4 sm:$0xff]  }
  0xae   : > { %1701 = vmatpush2.bf16.msra.mxu0 %v3030_v33  ;;  %v1832_v33 = vrot.slane %v1831_v21, 4  ;;  %v3129_v21 = vld [vmem:[%s4140_s1 + $0x7f0] ss:$8 sps:$4 sm:$0xff]  }
  0xaf   : > { %1744 = vmatpush2.bf16.msra.mxu1 %v3033_v34  ;;  %1702 = vmatprep.subr.bf16.mxu0 %v3038_v35  ;;  %v1790_v34 = vrot.slane %v1789_v22, 4  ;;  %v1804_v35 = vrot.slane %v1803_v23, 4  ;;  %v3134_v22 = vld [vmem:[%s4140_s1 + $0x6e4] ss:$8 sps:$4 sm:$0xff]  }
  0xb0   : > { %1745 = vmatprep.subr.bf16.mxu1 %v3041_v36  ;;  %v1808_v36 = vrot.slane %v1806_v24, 5  ;;  %v3137_v23 = vld [vmem:[%s4140_s1 + $0x7e4] ss:$8 sps:$4 sm:$0xff]   ;;  %v3132_v24 = vld [vmem:[%s4140_s1 + $0x6e0] ss:$8 sps:$4 sm:$0xff]  }
  0xb2   : > { %1703 = vmatpush2.bf16.msra.mxu0 %v3036_v37  ;;  %v1836_v37 = vrot.slane %v1834_v25, 5  ;;  %v3135_v25 = vld [vmem:[%s4140_s1 + $0x7e0] ss:$8 sps:$4 sm:$0xff]  }
  0xb3   : > { %1746 = vmatpush2.bf16.msra.mxu1 %v3039_v38  ;;  %1704 = vmatprep.subr.bf16.mxu0 %v3044_v39  ;;  %v3072_v38 = vld [vmem:[%s4140_s1 + $0x480] ss:$8 sps:$4 sm:$0xff]  }
  0xb4   : > { %1747 = vmatprep.subr.bf16.mxu1 %v3047_v40  ;;  %v3075_v39 = vld [vmem:[%s4140_s1 + $0x580] ss:$8 sps:$4 sm:$0xff]   ;;  %v3080_v40 = vld [vmem:[%s4140_s1 + $0x674] ss:$8 sps:$4 sm:$0xff]   ;;  %v3918_v50 = vsel %vm3440_vm2, %v1832_v33, %v1836_v37  ;;  %v3153_v37 = vld [vmem:[%s4140_s1 + $0x7b0] ss:$8 sps:$4 sm:$0xff]  }
  0xb5   : > { %v3147_v33 = vld [vmem:[%s4140_s1 + $0x7c0] ss:$8 sps:$4 sm:$0xff]  }
  0xb6   : > { %1705 = vmatpush2.bf16.msra.mxu0 %v3042_v41  ;;  %v3083_v41 = vld [vmem:[%s4140_s1 + $0x774] ss:$8 sps:$4 sm:$0xff]  }
  0xb7   : > { %1748 = vmatpush2.bf16.msra.mxu1 %v3045_v42  ;;  %1706 = vmatprep.subr.bf16.mxu0 %v3050_v43  ;;  %v3174_v42 = vld [vmem:[%s3382_s23 + $0x20] sm:$0xff] }
  0xb8   : > { %1749 = vmatprep.subr.bf16.mxu1 %v3053_v44  ;;  %v2614_v43 = vcombine.low %v3174_v42, %v3713_v6  ;;  %v3175_v44 = vld [vmem:[%s3382_s23 + $0x28] sm:$0xff]  ;;  %v3078_v6 = vld [vmem:[%s4140_s1 + $0x670] ss:$8 sps:$4 sm:$0xff]   ;;  %v3164_v42 = vld [vmem:[%s4140_s1 + $0x694] ss:$8 sps:$4 sm:$0xff]   ;;  %s229_s23 = scalar_lea.vmem %s4143_s4, %s2762_s15 }
  0xba   : > { %1707 = vmatpush2.bf16.msra.mxu0 %v3048_v45  ;;  %v2616_v45 = vcombine.low %v3175_v44, %v3718_v8  ;;  %v3081_v8 = vld [vmem:[%s4140_s1 + $0x770] ss:$8 sps:$4 sm:$0xff]  }
  0xbb   : > { %1750 = vmatpush2.bf16.msra.mxu1 %v3051_v46  ;;  %1708 = vmatprep.subr.bf16.mxu0 %v3056_v47  ;;  %v3906_v46 = vsel %vm3440_vm2, %v1790_v34, %v1794_v30  ;;  %v3910_v47 = vsel %vm3440_vm2, %v1818_v31, %v1822_v32  ;;  %v3146_v30 = vld [vmem:[%s4140_s1 + $0x6c4] ss:$8 sps:$4 sm:$0xff]   ;;  %v3144_v32 = vld [vmem:[%s4140_s1 + $0x6c0] ss:$8 sps:$4 sm:$0xff]   ;;  %v3152_v34 = vld [vmem:[%s4140_s1 + $0x6b4] ss:$8 sps:$4 sm:$0xff]  }
  0xbc   : > { %1751 = vmatprep.subr.bf16.mxu1 %v3059_v49  ;;  %v3914_v49 = vsel %vm3440_vm2, %v1804_v35, %v1808_v36  ;;  %v2691_v53 = vcombine.high %v3906_v46, %v3910_v47  ;;  %v3149_v31 = vld [vmem:[%s4140_s1 + $0x7c4] ss:$8 sps:$4 sm:$0xff]   ;;  %v3155_v35 = vld [vmem:[%s4140_s1 + $0x7b4] ss:$8 sps:$4 sm:$0xff]   ;;  %v3150_v36 = vld [vmem:[%s4140_s1 + $0x6b0] ss:$8 sps:$4 sm:$0xff]  }
  0xbd   : > { %v2693_v54 = vcombine.high %v3914_v49, %v3918_v50  ;;  %v3162_v44 = vld [vmem:[%s4140_s1 + $0x690] ss:$8 sps:$4 sm:$0xff]  }
  0xbe   : > { %1709 = vmatpush2.bf16.msra.mxu0 %v3054_v55  ;;  %v3084_v55 = vld [vmem:[%s4140_s1 + $0x660] ss:$8 sps:$4 sm:$0xff]  }
  0xbf   : > { %1752 = vmatpush2.bf16.msra.mxu1 %v3057_v56  ;;  %1710 = vmatprep.subr.bf16.mxu0 %v3062_v57  ;;  %v3087_v56 = vld [vmem:[%s4140_s1 + $0x760] ss:$8 sps:$4 sm:$0xff]   ;;  %v3092_v57 = vld [vmem:[%s4140_s1 + $0x654] ss:$8 sps:$4 sm:$0xff]  }
  0xc0   : > { %1753 = vmatprep.subr.bf16.mxu1 %v3065_v58  ;;  %v3095_v58 = vld [vmem:[%s4140_s1 + $0x754] ss:$8 sps:$4 sm:$0xff]  }
  0xc2   : > { %1711 = vmatpush2.bf16.msra.mxu0 %v3060_v0  ;;  %v3101_v0 = vld [vmem:[%s4140_s1 + $0x744] ss:$8 sps:$4 sm:$0xff]  }
  0xc3   : > { %1754 = vmatpush2.bf16.msra.mxu1 %v3063_v1  ;;  %1712 = vmatprep.subr.bf16.mxu0 %v3068_v13  ;;  %v3096_v1 = vld [vmem:[%s4140_s1 + $0x640] ss:$8 sps:$4 sm:$0xff]   ;;  %v3122_v13 = vld [vmem:[%s4140_s1 + $0x604] ss:$8 sps:$4 sm:$0xff]  }
  0xc4   : > { %1755 = vmatprep.subr.bf16.mxu1 %v3071_v14  ;;  %v3125_v14 = vld [vmem:[%s4140_s1 + $0x704] ss:$8 sps:$4 sm:$0xff]  }
  0xc6   : > { %1713 = vmatpush2.bf16.msra.mxu0 %v3066_v26  ;;  %v3140_v26 = vld [vmem:[%s4140_s1 + $0x6d4] ss:$8 sps:$4 sm:$0xff]  }
  0xc7   : > { %1756 = vmatpush2.bf16.msra.mxu1 %v3069_v27  ;;  %1714 = vmatprep.subr.bf16.mxu0 %v3074_v28  ;;  %v3143_v27 = vld [vmem:[%s4140_s1 + $0x7d4] ss:$8 sps:$4 sm:$0xff]   ;;  %v3138_v28 = vld [vmem:[%s4140_s1 + $0x6d0] ss:$8 sps:$4 sm:$0xff]  }
  0xc8   : > { %1757 = vmatprep.subr.bf16.mxu1 %v3077_v29  ;;  %v3141_v29 = vld [vmem:[%s4140_s1 + $0x7d0] ss:$8 sps:$4 sm:$0xff]  }
  0xca   : > { %1715 = vmatpush2.bf16.msra.mxu0 %v3072_v38  ;;  %v3158_v38 = vld [vmem:[%s4140_s1 + $0x6a4] ss:$8 sps:$4 sm:$0xff]  }
  0xcb   : > { %1758 = vmatpush2.bf16.msra.mxu1 %v3075_v39  ;;  %2238 = vmatprep.subr.bf16.mxu0 %v3080_v40  ;;  %v3161_v39 = vld [vmem:[%s4140_s1 + $0x7a4] ss:$8 sps:$4 sm:$0xff]   ;;  %v3156_v40 = vld [vmem:[%s4140_s1 + $0x6a0] ss:$8 sps:$4 sm:$0xff]  }
  0xcc   : > { %2281 = vmatprep.subr.bf16.mxu1 %v3083_v41  ;;  %v3159_v41 = vld [vmem:[%s4140_s1 + $0x7a0] ss:$8 sps:$4 sm:$0xff]  }
  0xcd   : > { %1717 = vmatmul.mubr.bf16.vlgmr.msra.gmra.mxu0 %v2614_v43  ;;  %v3167_v43 = vld [vmem:[%s4140_s1 + $0x794] ss:$8 sps:$4 sm:$0xff]  }
  0xce   : > { %1760 = vmatmul.mubr.bf16.vlgmr.msra.gmra.mxu1 %v2616_v45  ;;  %2239 = vmatpush1.bf16.msra.mxu0 %v3078_v6  ;;  %v3165_v45 = vld [vmem:[%s4140_s1 + $0x790] ss:$8 sps:$4 sm:$0xff]   ;;  %v3170_v6 = vld [vmem:[%s4140_s1 + $0x684] ss:$8 sps:$4 sm:$0xff]  }
  0xcf   : > { %2282 = vmatpush1.bf16.msra.mxu1 %v3081_v8  ;;  %2240 = vmatprep.subr.bf16.mxu0 %v3086_v52  ;;  %v3173_v8 = vld [vmem:[%s4140_s1 + $0x784] ss:$8 sps:$4 sm:$0xff]   ;;  %v3168_v52 = vld [vmem:[%s4140_s1 + $0x680] ss:$8 sps:$4 sm:$0xff]  }
  0xd0   : > { %2283 = vmatprep.subr.bf16.mxu1 %v3089_v17  ;;  %2270 = vmatprep.mubr.bf16.mxu0 %v2691_v53  ;;  %v3171_v17 = vld [vmem:[%s4140_s1 + $0x780] ss:$8 sps:$4 sm:$0xff]   ;;  %v2690_v53 = vcombine.low %v3906_v46, %v3910_v47 }
  0xd1   : > { %2313 = vmatprep.mubr.bf16.mxu1 %v2693_v54  ;;  %v2692_v54 = vcombine.low %v3914_v49, %v3918_v50 }
  0xd2   : > { %2241 = vmatpush1.bf16.msra.mxu0 %v3084_v55 }
  0xd3   : > { %2284 = vmatpush1.bf16.msra.mxu1 %v3087_v56  ;;  %2242 = vmatprep.subr.bf16.mxu0 %v3092_v57 }
  0xd4   : > { %2285 = vmatprep.subr.bf16.mxu1 %v3095_v58 }
  0xd6   : > { %2243 = vmatpush1.bf16.msra.mxu0 %v3090_v61 }
  0xd7   : > { %2286 = vmatpush1.bf16.msra.mxu1 %v3093_v62  ;;  %2244 = vmatprep.subr.bf16.mxu0 %v3098_v63 }
  0xd8   : > { %2287 = vmatprep.subr.bf16.mxu1 %v3101_v0 }
  0xda   : > { %2245 = vmatpush1.bf16.msra.mxu0 %v3096_v1 }
  0xdb   : > { %2288 = vmatpush1.bf16.msra.mxu1 %v3099_v48  ;;  %2246 = vmatprep.subr.bf16.mxu0 %v3104_v59 }
  0xdc   : > { %2289 = vmatprep.subr.bf16.mxu1 %v3107_v2 }
  0xde   : > { %2247 = vmatpush1.bf16.msra.mxu0 %v3102_v3 }
  0xdf   : > { %2290 = vmatpush1.bf16.msra.mxu1 %v3105_v4  ;;  %2248 = vmatprep.subr.bf16.mxu0 %v3110_v5  ;;  %v2330_v5 = vlaneseq }
  0xe0   : > { %2291 = vmatprep.subr.bf16.mxu1 %v3113_v7 }
  0xe2   : > { %2249 = vmatpush1.bf16.msra.mxu0 %v3108_v9 }
  0xe3   : > { %2292 = vmatpush1.bf16.msra.mxu1 %v3111_v10  ;;  %2250 = vmatprep.subr.bf16.mxu0 %v3116_v11  ;;  %v2331_v10 = vshrl.u32 %v2330_v5, 7 }
  0xe4   : > { %2293 = vmatprep.subr.bf16.mxu1 %v3119_v12 }
  0xe6   : > { %2251 = vmatpush1.bf16.msra.mxu0 %v3114_v51 }
  0xe7   : > { %2294 = vmatpush1.bf16.msra.mxu1 %v3117_v60  ;;  %2252 = vmatprep.subr.bf16.mxu0 %v3122_v13 }
  0xe8   : > { %2295 = vmatprep.subr.bf16.mxu1 %v3125_v14  ;;  %v2332_v14 = vsub.s32 0, %v2331_v10 }
  0xea   : > { %2253 = vmatpush1.bf16.msra.mxu0 %v3120_v15 }
  0xeb   : > { %2296 = vmatpush1.bf16.msra.mxu1 %v3123_v16  ;;  %2254 = vmatprep.subr.bf16.mxu0 %v3128_v18 }
  0xec   : > { %2297 = vmatprep.subr.bf16.mxu1 %v3131_v19  ;;  %v2328_v19 = vld [vmem:[%s4141_s2] sm:$0x3] }
  0xee   : > { %2255 = vmatpush2.bf16.msra.mxu0 %v3126_v20 }
  0xef   : > { %2298 = vmatpush2.bf16.msra.mxu1 %v3129_v21  ;;  %2256 = vmatprep.subr.bf16.mxu0 %v3134_v22  ;;  %v2336_v22 = vsub.s32 1, %v2331_v10 }
  0xf0   : > { %2299 = vmatprep.subr.bf16.mxu1 %v3137_v23 }
  0xf2   : > { %2257 = vmatpush2.bf16.msra.mxu0 %v3132_v24 }
  0xf3   : > { %2300 = vmatpush2.bf16.msra.mxu1 %v3135_v25  ;;  %2258 = vmatprep.subr.bf16.mxu0 %v3140_v26  ;;  %v2344_v26 = vld [vmem:[%s4142_s3] sm:$0x3] }
  0xf4   : > { %2301 = vmatprep.subr.bf16.mxu1 %v3143_v27 }
  0xf6   : > { %2259 = vmatpush2.bf16.msra.mxu0 %v3138_v28 }
  0xf7   : > { %2302 = vmatpush2.bf16.msra.mxu1 %v3141_v29  ;;  %2260 = vmatprep.subr.bf16.mxu0 %v3146_v30  ;;  %v2333_v30 = vrot.slane %v2328_v19, %v2332_v14 }
  0xf8   : > { %2303 = vmatprep.subr.bf16.mxu1 %v3149_v31 }
  0xfa   : > { %2261 = vmatpush2.bf16.msra.mxu0 %v3144_v32 }
  0xfb   : > { %2304 = vmatpush2.bf16.msra.mxu1 %v3147_v33  ;;  %2262 = vmatprep.subr.bf16.mxu0 %v3152_v34 }
  0xfc   : > { %2305 = vmatprep.subr.bf16.mxu1 %v3155_v35 }
  0xfe   : > { %2263 = vmatpush2.bf16.msra.mxu0 %v3150_v36  ;;  %v2349_v36 = vrot.slane %v2344_v26, %v2332_v14 }
  0xff   : > { %2306 = vmatpush2.bf16.msra.mxu1 %v3153_v37  ;;  %2264 = vmatprep.subr.bf16.mxu0 %v3158_v38 }
 0x100   : > { %2307 = vmatprep.subr.bf16.mxu1 %v3161_v39  ;;  %v2337_v39 = vrot.slane %v2328_v19, %v2336_v22 }
 0x102   : > { %2265 = vmatpush2.bf16.msra.mxu0 %v3156_v40 }
 0x103   : > { %2308 = vmatpush2.bf16.msra.mxu1 %v3159_v41  ;;  %2266 = vmatprep.subr.bf16.mxu0 %v3164_v42 }
 0x104   : > { %2309 = vmatprep.subr.bf16.mxu1 %v3167_v43 }
 0x106   : > { %2267 = vmatpush2.bf16.msra.mxu0 %v3162_v44 }
 0x107   : > { %2310 = vmatpush2.bf16.msra.mxu1 %v3165_v45  ;;  %2268 = vmatprep.subr.bf16.mxu0 %v3170_v6  ;;  %v2353_v45 = vrot.slane %v2344_v26, %v2336_v22 }
 0x108   : > { %2311 = vmatprep.subr.bf16.mxu1 %v3173_v8 }
 0x10a   : > { %2269 = vmatpush2.bf16.msra.mxu0 %v3168_v52 }
 0x10b   : > { %2312 = vmatpush2.bf16.msra.mxu1 %v3171_v17 }
 0x10d   : > { %2271 = vmatmul.mubr.bf16.vlgmr.msra.gmra.mxu0 %v2690_v53  ;;  %v797_v55 = vpop.f32.mrf.mxu0 }
 0x10e   : > { %2314 = vmatmul.mubr.bf16.vlgmr.msra.gmra.mxu1 %v2692_v54  ;;  %v840_v56 = vpop.f32.mrf.mxu1 }
 0x10f   : > { %v799_v57 = vpop.f32.mrf.mxu0  ;;  %v841_v11 = vadd.f32 %v840_v56, %v797_v55 }
 0x110   : > { %v842_v58 = vpop.f32.mrf.mxu1 }
 0x111   : > { %v801_v61 = vpop.f32.mrf.mxu0  ;;  %v843_v60 = vadd.f32 %v842_v58, %v799_v57 }
 0x112   : > { %v844_v62 = vpop.f32.mrf.mxu1 }
 0x113   : > { %v803_v63 = vpop.f32.mrf.mxu0  ;;  %v845_v15 = vadd.f32 %v844_v62, %v801_v61 }
 0x114   : > { %v846_v0 = vpop.f32.mrf.mxu1 }
 0x115   : > { %v847_v27 = vadd.f32 %v846_v0, %v803_v63 }
 0x14d   : > { %v1223_v1 = vpop.f32.mrf.mxu0 }
 0x14e   : > { %v1266_v48 = vpop.f32.mrf.mxu1  ;;  %v1224_v13 = vadd.f32 %v1223_v1, %v841_v11 }
 0x14f   : > { %v1225_v59 = vpop.f32.mrf.mxu0 }
 0x150   : > { %v1268_v2 = vpop.f32.mrf.mxu1  ;;  %v1226_v16 = vadd.f32 %v1225_v59, %v843_v60  ;;  %v1267_v23 = vadd.f32 %v1266_v48, %v1224_v13 }
 0x151   : > { %v1227_v46 = vpop.f32.mrf.mxu0 }
 0x152   : > { %v1270_v47 = vpop.f32.mrf.mxu1  ;;  %v1228_v24 = vadd.f32 %v1227_v46, %v845_v15  ;;  %v1269_v31 = vadd.f32 %v1268_v2, %v1226_v16 }
 0x153   : > { %v1229_v3 = vpop.f32.mrf.mxu0 }
 0x154   : > { %v1272_v49 = vpop.f32.mrf.mxu1  ;;  %v1230_v35 = vadd.f32 %v1229_v3, %v847_v27  ;;  %v1271_v40 = vadd.f32 %v1270_v47, %v1228_v24 }
 0x156   : > { %v1273_v55 = vadd.f32 %v1272_v49, %v1230_v35 }
 0x18d   : > { %v1718_v50 = vpop.f32.mrf.mxu0 }
 0x18e   : > { %v1761_v4 = vpop.f32.mrf.mxu1 }
 0x18f   : > { %v1720_v7 = vpop.f32.mrf.mxu0  ;;  %v1762_v18 = vadd.f32 %v1761_v4, %v1718_v50 }
 0x190   : > { %v1763_v9 = vpop.f32.mrf.mxu1 }
 0x191   : > { %v1722_v12 = vpop.f32.mrf.mxu0  ;;  %v1764_v25 = vadd.f32 %v1763_v9, %v1720_v7  ;;  %v1770_v32 = vadd.f32 %v1762_v18, %v1267_v23 }
 0x192   : > { %v1765_v51 = vpop.f32.mrf.mxu1 }
 0x193   : > { %v1724_v20 = vpop.f32.mrf.mxu0  ;;  %v1766_v33 = vadd.f32 %v1765_v51, %v1722_v12  ;;  %v1771_v41 = vadd.f32 %v1764_v25, %v1269_v31 }
 0x194   : > { %v1767_v21 = vpop.f32.mrf.mxu1 }
 0x195   : > { %v1768_v44 = vadd.f32 %v1767_v21, %v1724_v20  ;;  %v1772_v52 = vadd.f32 %v1766_v33, %v1271_v40 }
 0x197   : > { %v1773_v0 = vadd.f32 %v1768_v44, %v1273_v55 }
 0x1cd   : > { %v2272_v28 = vpop.f32.mrf.mxu0 }
 0x1ce   : > { %v2315_v29 = vpop.f32.mrf.mxu1 }
 0x1cf   : > { %v2316_v34 = vadd.f32 %v2315_v29, %v2272_v28  ;;  %v2274_v37 = vpop.f32.mrf.mxu0 }
 0x1d0   : > { %v2317_v38 = vpop.f32.mrf.mxu1 }
 0x1d1   : > { %v2324_v42 = vadd.f32 %v2316_v34, %v1770_v32  ;;  %v2318_v43 = vadd.f32 %v2317_v38, %v2274_v37  ;;  %v2276_v6 = vpop.f32.mrf.mxu0 }
 0x1d2   : > { %v2319_v8 = vpop.f32.mrf.mxu1 }
 0x1d3   : > { %v2340_v17 = vmul.f32 %v2333_v30, %v2324_v42  ;;  %v2325_v53 = vadd.f32 %v2318_v43, %v1771_v41  ;;  %v2320_v54 = vadd.f32 %v2319_v8, %v2276_v6  ;;  %v2278_v56 = vpop.f32.mrf.mxu0 }
 0x1d4   : > { %v2321_v57 = vpop.f32.mrf.mxu1 }
 0x1d5   : > { %v2356_v58 = vadd.f32 %v2349_v36, %v2340_v17  ;;  %v2341_v61 = vmul.f32 %v2337_v39, %v2325_v53  ;;  %v2326_v62 = vadd.f32 %v2320_v54, %v1772_v52  ;;  %v2322_v63 = vadd.f32 %v2321_v57, %v2278_v56 }
 0x1d7   : > { %v2364_v1 = vmul.f32 0.2, %v2356_v58  ;;  %v2357_v48 = vadd.f32 %v2353_v45, %v2341_v61  ;;  %v2342_v59 = vmul.f32 %v2333_v30, %v2326_v62  ;;  %vm2360_vm3 = vcmp.ge.f32.partialorder %v2356_v58, 0.0 }
 0x1d8   : > { %v2327_v2 = vadd.f32 %v2322_v63, %v1773_v0 }
 0x1d9   : > { %vm2361_vm4 = vcmp.ge.f32.partialorder %v2357_v48, 0.0  ;;  %v2365_v46 = vmul.f32 0.2, %v2357_v48  ;;  %v2358_v47 = vadd.f32 %v2349_v36, %v2342_v59  ;;  %v2368_v49 = vsel %vm2360_vm3, %v2356_v58, %v2364_v1 }
 0x1da   : > { %v2343_v3 = vmul.f32 %v2337_v39, %v2327_v2 }
 0x1db   : > { %v2369_v50 = vsel %vm2361_vm4, %v2357_v48, %v2365_v46  ;;  %v2366_v5 = vmul.f32 0.2, %v2358_v47  ;;  %vm2362_vm5 = vcmp.ge.f32.partialorder %v2358_v47, 0.0 }
 0x1dc   : > { %v2763_v4 = vpack.c.bf16 %v2369_v50, %v2368_v49  ;;  %v2359_v7 = vadd.f32 %v2353_v45, %v2343_v3 }
 0x1dd   : > { %v2370_v10 = vsel %vm2362_vm5, %v2358_v47, %v2366_v5 }
 0x1de   : > { %2384 = vst [vmem:[%s229_s23] sm:$0xff] %v2763_v4  ;;  %vm2363_vm6 = vcmp.ge.f32.partialorder %v2359_v7, 0.0  ;;  %v2367_v9 = vmul.f32 0.2, %v2359_v7 }
 0x1e0   : > { %v2371_v11 = vsel %vm2363_vm6, %v2359_v7, %v2367_v9 }
 0x1e1   : > { %v2764_v12 = vpack.c.bf16 %v2371_v11, %v2370_v10 }
 0x1e3   : > { %2385 = vst [vmem:[%s229_s23 + $0x8] sm:$0xff] %v2764_v12 }
 0x1e4 PF: > { %s14_s17 = sadd.s32 1, %s3198_s17   ;;  %s4147_s15 = smov %s3194_s16 }
 0x1e5   : > { %p11_p6 = scmp.ge.s32.totalorder %s14_s17, 4   ;;  %s4148_s16 = smov %s4150_s18 }
 0x1e7   :  { %13 = sbr.rel (!%p11_p6) target bundleno = 2 (0x2), region = 67 }

// kernel: discriminator_forward.9
= control target key start
LH: loop header
LB: loop body
LE: loop exit
PB: predicated region body
PF: predicated region fallthrough
CT: control target
= control target key end

     0   :  { %s2430_s15 = smov 0   ;;  %s2432_s16 = smov 0   ;;  %s2928_s0 = inlined_call_operand.vmem [shape: bf16[2,1024], index: 0, kind: input, shape index: {}]   ;;  %s2929_s1 = inlined_call_operand.vmem [shape: bf16[1024,512], index: 1, kind: input, shape index: {}]   ;;  %s2930_s2 = inlined_call_operand.vmem [shape: f32[1,512], index: 2, kind: input, shape index: {}]   ;;  %s2931_s3 = inlined_call_operand.vmem [shape: f32[1,512], index: 3, kind: input, shape index: {}]   ;;  %s2932_s4 = inlined_call_operand.vmem [shape: f32[2,512], index: 4, kind: output, shape index: {}]  }
   0x1   :  { %s2434_s17 = smov 0   ;;  %s2436_s18 = smov 0  }
   0x2   :  { %s2438_s19 = smov 0  }
   0x3 LB: > { %s26_s20 = sadd.s32 1, %s2396_s18  ;;  %p68_p1 = scmp.ne.s32.totalorder %s2388_s16, %s2384_s15  ;;  %s2400_s19 = sphi %s2438_s19, %s14_s19   ;;  %s2396_s18 = sphi %s2436_s18, %s2936_s18   ;;  %s2392_s17 = sphi %s2434_s17, %s2935_s17   ;;  %s2388_s16 = sphi %s2432_s16, %s2934_s16   ;;  %s2384_s15 = sphi %s2430_s15, %s2933_s15  }
   0x4   : > { %p28_p0 = scmp.ge.s32.totalorder %s26_s20, 2  ;;  %p69_p2 = scmp.eq.s32.totalorder %s2400_s19, 0 }
   0x5   : > { %s61_s22 = sadd.s32 1, %s2388_s16  ;;  %p1985_p5 = scmp.ge.s32.totalorder %s2400_s19, 2 }
   0x6   : > { %s2938_s20 = smov (%p28_p0, %s26_s20), 0  ;;  %p70_p3 = por %p69_p2, %p68_p1 }
   0x7   : > { %s57_s21 = ssub.s32 %s2396_s18, %s2938_s20  ;;  %180 = sbr.rel (%p1985_p5) target bundleno = 80 (0x50), region = 20 }
   0x8   : > { %p59_p4 = scmp.eq.s32.totalorder %s57_s21, 0 }
   0xa   : > { %s2465_s23 = scalar_select %p59_p4, %s2388_s16, %s61_s22  }
   0xc   : > { %183 = sbr.rel (!%p70_p3) target bundleno = 80 (0x50), region = 24  ;;  %s185_s24 = sand.u32 (%p70_p3), 1, %s2388_s16  }
   0xd   : > { %s2125_s25 = sshll.u32 (%p70_p3), %s2396_s18, 3  ;;  %s1986_s26 = sshll.u32 (%p70_p3), %s185_s24, 10 }
   0xe   : > { %s2473_s29 = scalar_lea.vmem (%p70_p3), %s2929_s1, %s2125_s25  ;;  %s2478_s30 = scalar_lea.vmem (%p70_p3), [#allocation3], %s1986_s26 }
   0xf   : > { %v476_v0 = vld [vmem:[%s2473_s29] sm:$0xff] (%p70_p3)  ;;  %v478_v1 = vld [vmem:[%s2473_s29 + $0x10] sm:$0xff] (%p70_p3) }
  0x10   : > { %v480_v2 = vld [vmem:[%s2473_s29 + $0x20] sm:$0xff] (%p70_p3)  ;;  %477 = vst [vmem:[%s2478_s30] sm:$0xff] (%p70_p3), %v476_v0  ;;  %479 = vst [vmem:[%s2478_s30 + $0x8] sm:$0xff] (%p70_p3), %v478_v1  ;;  %v482_v3 = vld [vmem:[%s2473_s29 + $0x30] sm:$0xff] (%p70_p3) }
  0x11   : > { %481 = vst [vmem:[%s2478_s30 + $0x10] sm:$0xff] %v480_v2  ;;  %v484_v4 = vld [vmem:[%s2473_s29 + $0x40] sm:$0xff]  ;;  %v486_v5 = vld [vmem:[%s2473_s29 + $0x50] sm:$0xff]  ;;  %483 = vst [vmem:[%s2478_s30 + $0x18] sm:$0xff] %v482_v3 }
  0x12   : > { %485 = vst [vmem:[%s2478_s30 + $0x20] sm:$0xff] %v484_v4  ;;  %487 = vst [vmem:[%s2478_s30 + $0x28] sm:$0xff] %v486_v5  ;;  %v488_v6 = vld [vmem:[%s2473_s29 + $0x60] sm:$0xff]  ;;  %v490_v7 = vld [vmem:[%s2473_s29 + $0x70] sm:$0xff] }
  0x13   : > { %v492_v8 = vld [vmem:[%s2473_s29 + $0x80] sm:$0xff]  ;;  %489 = vst [vmem:[%s2478_s30 + $0x30] sm:$0xff] %v488_v6  ;;  %491 = vst [vmem:[%s2478_s30 + $0x38] sm:$0xff] %v490_v7  ;;  %v494_v9 = vld [vmem:[%s2473_s29 + $0x90] sm:$0xff] }
  0x14   : > { %493 = vst [vmem:[%s2478_s30 + $0x40] sm:$0xff] %v492_v8  ;;  %v496_v10 = vld [vmem:[%s2473_s29 + $0xa0] sm:$0xff]  ;;  %v498_v11 = vld [vmem:[%s2473_s29 + $0xb0] sm:$0xff]  ;;  %495 = vst [vmem:[%s2478_s30 + $0x48] sm:$0xff] %v494_v9 }
  0x15   : > { %497 = vst [vmem:[%s2478_s30 + $0x50] sm:$0xff] %v496_v10  ;;  %499 = vst [vmem:[%s2478_s30 + $0x58] sm:$0xff] %v498_v11  ;;  %v500_v12 = vld [vmem:[%s2473_s29 + $0xc0] sm:$0xff]  ;;  %v502_v13 = vld [vmem:[%s2473_s29 + $0xd0] sm:$0xff] }
  0x16   : > { %v504_v14 = vld [vmem:[%s2473_s29 + $0xe0] sm:$0xff]  ;;  %501 = vst [vmem:[%s2478_s30 + $0x60] sm:$0xff] %v500_v12  ;;  %503 = vst [vmem:[%s2478_s30 + $0x68] sm:$0xff] %v502_v13  ;;  %v506_v15 = vld [vmem:[%s2473_s29 + $0xf0] sm:$0xff] }
  0x17   : > { %505 = vst [vmem:[%s2478_s30 + $0x70] sm:$0xff] %v504_v14  ;;  %v508_v16 = vld [vmem:[%s2473_s29 + $0x100] sm:$0xff]  ;;  %v510_v17 = vld [vmem:[%s2473_s29 + $0x110] sm:$0xff]  ;;  %507 = vst [vmem:[%s2478_s30 + $0x78] sm:$0xff] %v506_v15 }
  0x18   : > { %509 = vst [vmem:[%s2478_s30 + $0x80] sm:$0xff] %v508_v16  ;;  %511 = vst [vmem:[%s2478_s30 + $0x88] sm:$0xff] %v510_v17  ;;  %v512_v18 = vld [vmem:[%s2473_s29 + $0x120] sm:$0xff]  ;;  %v514_v19 = vld [vmem:[%s2473_s29 + $0x130] sm:$0xff] }
  0x19   : > { %v516_v20 = vld [vmem:[%s2473_s29 + $0x140] sm:$0xff]  ;;  %513 = vst [vmem:[%s2478_s30 + $0x90] sm:$0xff] %v512_v18  ;;  %515 = vst [vmem:[%s2478_s30 + $0x98] sm:$0xff] %v514_v19  ;;  %v518_v21 = vld [vmem:[%s2473_s29 + $0x150] sm:$0xff] }
  0x1a   : > { %517 = vst [vmem:[%s2478_s30 + $0xa0] sm:$0xff] %v516_v20  ;;  %v520_v22 = vld [vmem:[%s2473_s29 + $0x160] sm:$0xff]  ;;  %v522_v23 = vld [vmem:[%s2473_s29 + $0x170] sm:$0xff]  ;;  %519 = vst [vmem:[%s2478_s30 + $0xa8] sm:$0xff] %v518_v21 }
  0x1b   : > { %521 = vst [vmem:[%s2478_s30 + $0xb0] sm:$0xff] %v520_v22  ;;  %523 = vst [vmem:[%s2478_s30 + $0xb8] sm:$0xff] %v522_v23  ;;  %v524_v24 = vld [vmem:[%s2473_s29 + $0x180] sm:$0xff]  ;;  %v526_v25 = vld [vmem:[%s2473_s29 + $0x190] sm:$0xff] }
  0x1c   : > { %v528_v26 = vld [vmem:[%s2473_s29 + $0x1a0] sm:$0xff]  ;;  %525 = vst [vmem:[%s2478_s30 + $0xc0] sm:$0xff] %v524_v24  ;;  %527 = vst [vmem:[%s2478_s30 + $0xc8] sm:$0xff] %v526_v25  ;;  %v530_v27 = vld [vmem:[%s2473_s29 + $0x1b0] sm:$0xff] }
  0x1d   : > { %529 = vst [vmem:[%s2478_s30 + $0xd0] sm:$0xff] %v528_v26  ;;  %v532_v28 = vld [vmem:[%s2473_s29 + $0x1c0] sm:$0xff]  ;;  %v534_v29 = vld [vmem:[%s2473_s29 + $0x1d0] sm:$0xff]  ;;  %531 = vst [vmem:[%s2478_s30 + $0xd8] sm:$0xff] %v530_v27 }
  0x1e   : > { %533 = vst [vmem:[%s2478_s30 + $0xe0] sm:$0xff] %v532_v28  ;;  %535 = vst [vmem:[%s2478_s30 + $0xe8] sm:$0xff] %v534_v29  ;;  %v536_v30 = vld [vmem:[%s2473_s29 + $0x1e0] sm:$0xff]  ;;  %v538_v31 = vld [vmem:[%s2473_s29 + $0x1f0] sm:$0xff] }
  0x1f   : > { %v540_v32 = vld [vmem:[%s2473_s29 + $0x200] sm:$0xff]  ;;  %537 = vst [vmem:[%s2478_s30 + $0xf0] sm:$0xff] %v536_v30  ;;  %539 = vst [vmem:[%s2478_s30 + $0xf8] sm:$0xff] %v538_v31  ;;  %v542_v33 = vld [vmem:[%s2473_s29 + $0x210] sm:$0xff] }
  0x20   : > { %541 = vst [vmem:[%s2478_s30 + $0x100] sm:$0xff] %v540_v32  ;;  %v544_v34 = vld [vmem:[%s2473_s29 + $0x220] sm:$0xff]  ;;  %v546_v35 = vld [vmem:[%s2473_s29 + $0x230] sm:$0xff]  ;;  %543 = vst [vmem:[%s2478_s30 + $0x108] sm:$0xff] %v542_v33 }
  0x21   : > { %545 = vst [vmem:[%s2478_s30 + $0x110] sm:$0xff] %v544_v34  ;;  %547 = vst [vmem:[%s2478_s30 + $0x118] sm:$0xff] %v546_v35  ;;  %v548_v36 = vld [vmem:[%s2473_s29 + $0x240] sm:$0xff]  ;;  %v550_v37 = vld [vmem:[%s2473_s29 + $0x250] sm:$0xff] }
  0x22   : > { %v552_v38 = vld [vmem:[%s2473_s29 + $0x260] sm:$0xff]  ;;  %549 = vst [vmem:[%s2478_s30 + $0x120] sm:$0xff] %v548_v36  ;;  %551 = vst [vmem:[%s2478_s30 + $0x128] sm:$0xff] %v550_v37  ;;  %v554_v39 = vld [vmem:[%s2473_s29 + $0x270] sm:$0xff] }
  0x23   : > { %553 = vst [vmem:[%s2478_s30 + $0x130] sm:$0xff] %v552_v38  ;;  %v556_v40 = vld [vmem:[%s2473_s29 + $0x280] sm:$0xff]  ;;  %v558_v41 = vld [vmem:[%s2473_s29 + $0x290] sm:$0xff]  ;;  %555 = vst [vmem:[%s2478_s30 + $0x138] sm:$0xff] %v554_v39 }
  0x24   : > { %557 = vst [vmem:[%s2478_s30 + $0x140] sm:$0xff] %v556_v40  ;;  %559 = vst [vmem:[%s2478_s30 + $0x148] sm:$0xff] %v558_v41  ;;  %v560_v42 = vld [vmem:[%s2473_s29 + $0x2a0] sm:$0xff]  ;;  %v562_v43 = vld [vmem:[%s2473_s29 + $0x2b0] sm:$0xff] }
  0x25   : > { %v564_v44 = vld [vmem:[%s2473_s29 + $0x2c0] sm:$0xff]  ;;  %561 = vst [vmem:[%s2478_s30 + $0x150] sm:$0xff] %v560_v42  ;;  %563 = vst [vmem:[%s2478_s30 + $0x158] sm:$0xff] %v562_v43  ;;  %v566_v45 = vld [vmem:[%s2473_s29 + $0x2d0] sm:$0xff] }
  0x26   : > { %565 = vst [vmem:[%s2478_s30 + $0x160] sm:$0xff] %v564_v44  ;;  %v568_v46 = vld [vmem:[%s2473_s29 + $0x2e0] sm:$0xff]  ;;  %v570_v47 = vld [vmem:[%s2473_s29 + $0x2f0] sm:$0xff]  ;;  %567 = vst [vmem:[%s2478_s30 + $0x168] sm:$0xff] %v566_v45 }
  0x27   : > { %569 = vst [vmem:[%s2478_s30 + $0x170] sm:$0xff] %v568_v46  ;;  %571 = vst [vmem:[%s2478_s30 + $0x178] sm:$0xff] %v570_v47  ;;  %v572_v48 = vld [vmem:[%s2473_s29 + $0x300] sm:$0xff]  ;;  %v574_v49 = vld [vmem:[%s2473_s29 + $0x310] sm:$0xff] }
  0x28   : > { %v576_v50 = vld [vmem:[%s2473_s29 + $0x320] sm:$0xff]  ;;  %573 = vst [vmem:[%s2478_s30 + $0x180] sm:$0xff] %v572_v48  ;;  %575 = vst [vmem:[%s2478_s30 + $0x188] sm:$0xff] %v574_v49  ;;  %v578_v51 = vld [vmem:[%s2473_s29 + $0x330] sm:$0xff] }
  0x29   : > { %577 = vst [vmem:[%s2478_s30 + $0x190] sm:$0xff] %v576_v50  ;;  %v580_v52 = vld [vmem:[%s2473_s29 + $0x340] sm:$0xff]  ;;  %v582_v53 = vld [vmem:[%s2473_s29 + $0x350] sm:$0xff]  ;;  %579 = vst [vmem:[%s2478_s30 + $0x198] sm:$0xff] %v578_v51 }
  0x2a   : > { %581 = vst [vmem:[%s2478_s30 + $0x1a0] sm:$0xff] %v580_v52  ;;  %583 = vst [vmem:[%s2478_s30 + $0x1a8] sm:$0xff] %v582_v53  ;;  %v584_v54 = vld [vmem:[%s2473_s29 + $0x360] sm:$0xff]  ;;  %v586_v55 = vld [vmem:[%s2473_s29 + $0x370] sm:$0xff] }
  0x2b   : > { %v588_v56 = vld [vmem:[%s2473_s29 + $0x380] sm:$0xff]  ;;  %585 = vst [vmem:[%s2478_s30 + $0x1b0] sm:$0xff] %v584_v54  ;;  %587 = vst [vmem:[%s2478_s30 + $0x1b8] sm:$0xff] %v586_v55  ;;  %v590_v57 = vld [vmem:[%s2473_s29 + $0x390] sm:$0xff] }
  0x2c   : > { %589 = vst [vmem:[%s2478_s30 + $0x1c0] sm:$0xff] %v588_v56  ;;  %v592_v58 = vld [vmem:[%s2473_s29 + $0x3a0] sm:$0xff]  ;;  %v594_v59 = vld [vmem:[%s2473_s29 + $0x3b0] sm:$0xff]  ;;  %591 = vst [vmem:[%s2478_s30 + $0x1c8] sm:$0xff] %v590_v57 }
  0x2d   : > { %593 = vst [vmem:[%s2478_s30 + $0x1d0] sm:$0xff] %v592_v58  ;;  %595 = vst [vmem:[%s2478_s30 + $0x1d8] sm:$0xff] %v594_v59  ;;  %v596_v60 = vld [vmem:[%s2473_s29 + $0x3c0] sm:$0xff]  ;;  %v598_v61 = vld [vmem:[%s2473_s29 + $0x3d0] sm:$0xff] }
  0x2e   : > { %v600_v62 = vld [vmem:[%s2473_s29 + $0x3e0] sm:$0xff]  ;;  %597 = vst [vmem:[%s2478_s30 + $0x1e0] sm:$0xff] %v596_v60  ;;  %599 = vst [vmem:[%s2478_s30 + $0x1e8] sm:$0xff] %v598_v61  ;;  %v602_v63 = vld [vmem:[%s2473_s29 + $0x3f0] sm:$0xff] }
  0x2f   : > { %601 = vst [vmem:[%s2478_s30 + $0x1f0] sm:$0xff] %v600_v62  ;;  %v604_v0 = vld [vmem:[%s2473_s29 + $0x400] sm:$0xff]  ;;  %v606_v1 = vld [vmem:[%s2473_s29 + $0x410] sm:$0xff]  ;;  %603 = vst [vmem:[%s2478_s30 + $0x1f8] sm:$0xff] %v602_v63 }
  0x30   : > { %605 = vst [vmem:[%s2478_s30 + $0x200] sm:$0xff] %v604_v0  ;;  %607 = vst [vmem:[%s2478_s30 + $0x208] sm:$0xff] %v606_v1  ;;  %v608_v2 = vld [vmem:[%s2473_s29 + $0x420] sm:$0xff]  ;;  %v610_v3 = vld [vmem:[%s2473_s29 + $0x430] sm:$0xff] }
  0x31   : > { %v612_v4 = vld [vmem:[%s2473_s29 + $0x440] sm:$0xff]  ;;  %609 = vst [vmem:[%s2478_s30 + $0x210] sm:$0xff] %v608_v2  ;;  %611 = vst [vmem:[%s2478_s30 + $0x218] sm:$0xff] %v610_v3  ;;  %v614_v5 = vld [vmem:[%s2473_s29 + $0x450] sm:$0xff] }
  0x32   : > { %613 = vst [vmem:[%s2478_s30 + $0x220] sm:$0xff] %v612_v4  ;;  %v616_v6 = vld [vmem:[%s2473_s29 + $0x460] sm:$0xff]  ;;  %v618_v7 = vld [vmem:[%s2473_s29 + $0x470] sm:$0xff]  ;;  %615 = vst [vmem:[%s2478_s30 + $0x228] sm:$0xff] %v614_v5 }
  0x33   : > { %617 = vst [vmem:[%s2478_s30 + $0x230] sm:$0xff] %v616_v6  ;;  %619 = vst [vmem:[%s2478_s30 + $0x238] sm:$0xff] %v618_v7  ;;  %v620_v8 = vld [vmem:[%s2473_s29 + $0x480] sm:$0xff]  ;;  %v622_v9 = vld [vmem:[%s2473_s29 + $0x490] sm:$0xff] }
  0x34   : > { %v624_v10 = vld [vmem:[%s2473_s29 + $0x4a0] sm:$0xff]  ;;  %621 = vst [vmem:[%s2478_s30 + $0x240] sm:$0xff] %v620_v8  ;;  %623 = vst [vmem:[%s2478_s30 + $0x248] sm:$0xff] %v622_v9  ;;  %v626_v11 = vld [vmem:[%s2473_s29 + $0x4b0] sm:$0xff] }
  0x35   : > { %625 = vst [vmem:[%s2478_s30 + $0x250] sm:$0xff] %v624_v10  ;;  %v628_v12 = vld [vmem:[%s2473_s29 + $0x4c0] sm:$0xff]  ;;  %v630_v13 = vld [vmem:[%s2473_s29 + $0x4d0] sm:$0xff]  ;;  %627 = vst [vmem:[%s2478_s30 + $0x258] sm:$0xff] %v626_v11 }
  0x36   : > { %629 = vst [vmem:[%s2478_s30 + $0x260] sm:$0xff] %v628_v12  ;;  %631 = vst [vmem:[%s2478_s30 + $0x268] sm:$0xff] %v630_v13  ;;  %v632_v14 = vld [vmem:[%s2473_s29 + $0x4e0] sm:$0xff]  ;;  %v634_v15 = vld [vmem:[%s2473_s29 + $0x4f0] sm:$0xff] }
  0x37   : > { %v636_v16 = vld [vmem:[%s2473_s29 + $0x500] sm:$0xff]  ;;  %633 = vst [vmem:[%s2478_s30 + $0x270] sm:$0xff] %v632_v14  ;;  %635 = vst [vmem:[%s2478_s30 + $0x278] sm:$0xff] %v634_v15  ;;  %v638_v17 = vld [vmem:[%s2473_s29 + $0x510] sm:$0xff] }
  0x38   : > { %637 = vst [vmem:[%s2478_s30 + $0x280] sm:$0xff] %v636_v16  ;;  %v640_v18 = vld [vmem:[%s2473_s29 + $0x520] sm:$0xff]  ;;  %v642_v19 = vld [vmem:[%s2473_s29 + $0x530] sm:$0xff]  ;;  %639 = vst [vmem:[%s2478_s30 + $0x288] sm:$0xff] %v638_v17 }
  0x39   : > { %641 = vst [vmem:[%s2478_s30 + $0x290] sm:$0xff] %v640_v18  ;;  %643 = vst [vmem:[%s2478_s30 + $0x298] sm:$0xff] %v642_v19  ;;  %v644_v20 = vld [vmem:[%s2473_s29 + $0x540] sm:$0xff]  ;;  %v646_v21 = vld [vmem:[%s2473_s29 + $0x550] sm:$0xff] }
  0x3a   : > { %v648_v22 = vld [vmem:[%s2473_s29 + $0x560] sm:$0xff]  ;;  %645 = vst [vmem:[%s2478_s30 + $0x2a0] sm:$0xff] %v644_v20  ;;  %647 = vst [vmem:[%s2478_s30 + $0x2a8] sm:$0xff] %v646_v21  ;;  %v650_v23 = vld [vmem:[%s2473_s29 + $0x570] sm:$0xff] }
  0x3b   : > { %649 = vst [vmem:[%s2478_s30 + $0x2b0] sm:$0xff] %v648_v22  ;;  %v652_v24 = vld [vmem:[%s2473_s29 + $0x580] sm:$0xff]  ;;  %v654_v25 = vld [vmem:[%s2473_s29 + $0x590] sm:$0xff]  ;;  %651 = vst [vmem:[%s2478_s30 + $0x2b8] sm:$0xff] %v650_v23 }
  0x3c   : > { %653 = vst [vmem:[%s2478_s30 + $0x2c0] sm:$0xff] %v652_v24  ;;  %655 = vst [vmem:[%s2478_s30 + $0x2c8] sm:$0xff] %v654_v25  ;;  %v656_v26 = vld [vmem:[%s2473_s29 + $0x5a0] sm:$0xff]  ;;  %v658_v27 = vld [vmem:[%s2473_s29 + $0x5b0] sm:$0xff] }
  0x3d   : > { %v660_v28 = vld [vmem:[%s2473_s29 + $0x5c0] sm:$0xff]  ;;  %657 = vst [vmem:[%s2478_s30 + $0x2d0] sm:$0xff] %v656_v26  ;;  %659 = vst [vmem:[%s2478_s30 + $0x2d8] sm:$0xff] %v658_v27  ;;  %v662_v29 = vld [vmem:[%s2473_s29 + $0x5d0] sm:$0xff] }
  0x3e   : > { %661 = vst [vmem:[%s2478_s30 + $0x2e0] sm:$0xff] %v660_v28  ;;  %v664_v30 = vld [vmem:[%s2473_s29 + $0x5e0] sm:$0xff]  ;;  %v666_v31 = vld [vmem:[%s2473_s29 + $0x5f0] sm:$0xff]  ;;  %663 = vst [vmem:[%s2478_s30 + $0x2e8] sm:$0xff] %v662_v29 }
  0x3f   : > { %665 = vst [vmem:[%s2478_s30 + $0x2f0] sm:$0xff] %v664_v30  ;;  %667 = vst [vmem:[%s2478_s30 + $0x2f8] sm:$0xff] %v666_v31  ;;  %v668_v32 = vld [vmem:[%s2473_s29 + $0x600] sm:$0xff]  ;;  %v670_v33 = vld [vmem:[%s2473_s29 + $0x610] sm:$0xff] }
  0x40   : > { %v672_v34 = vld [vmem:[%s2473_s29 + $0x620] sm:$0xff]  ;;  %669 = vst [vmem:[%s2478_s30 + $0x300] sm:$0xff] %v668_v32  ;;  %671 = vst [vmem:[%s2478_s30 + $0x308] sm:$0xff] %v670_v33  ;;  %v674_v35 = vld [vmem:[%s2473_s29 + $0x630] sm:$0xff] }
  0x41   : > { %673 = vst [vmem:[%s2478_s30 + $0x310] sm:$0xff] %v672_v34  ;;  %v676_v36 = vld [vmem:[%s2473_s29 + $0x640] sm:$0xff]  ;;  %v678_v37 = vld [vmem:[%s2473_s29 + $0x650] sm:$0xff]  ;;  %675 = vst [vmem:[%s2478_s30 + $0x318] sm:$0xff] %v674_v35 }
  0x42   : > { %677 = vst [vmem:[%s2478_s30 + $0x320] sm:$0xff] %v676_v36  ;;  %679 = vst [vmem:[%s2478_s30 + $0x328] sm:$0xff] %v678_v37  ;;  %v680_v38 = vld [vmem:[%s2473_s29 + $0x660] sm:$0xff]  ;;  %v682_v39 = vld [vmem:[%s2473_s29 + $0x670] sm:$0xff] }
  0x43   : > { %v684_v40 = vld [vmem:[%s2473_s29 + $0x680] sm:$0xff]  ;;  %681 = vst [vmem:[%s2478_s30 + $0x330] sm:$0xff] %v680_v38  ;;  %683 = vst [vmem:[%s2478_s30 + $0x338] sm:$0xff] %v682_v39  ;;  %v686_v41 = vld [vmem:[%s2473_s29 + $0x690] sm:$0xff] }
  0x44   : > { %685 = vst [vmem:[%s2478_s30 + $0x340] sm:$0xff] %v684_v40  ;;  %v688_v42 = vld [vmem:[%s2473_s29 + $0x6a0] sm:$0xff]  ;;  %v690_v43 = vld [vmem:[%s2473_s29 + $0x6b0] sm:$0xff]  ;;  %687 = vst [vmem:[%s2478_s30 + $0x348] sm:$0xff] %v686_v41 }
  0x45   : > { %689 = vst [vmem:[%s2478_s30 + $0x350] sm:$0xff] %v688_v42  ;;  %691 = vst [vmem:[%s2478_s30 + $0x358] sm:$0xff] %v690_v43  ;;  %v692_v44 = vld [vmem:[%s2473_s29 + $0x6c0] sm:$0xff]  ;;  %v694_v45 = vld [vmem:[%s2473_s29 + $0x6d0] sm:$0xff] }
  0x46   : > { %v696_v46 = vld [vmem:[%s2473_s29 + $0x6e0] sm:$0xff]  ;;  %693 = vst [vmem:[%s2478_s30 + $0x360] sm:$0xff] %v692_v44  ;;  %695 = vst [vmem:[%s2478_s30 + $0x368] sm:$0xff] %v694_v45  ;;  %v698_v47 = vld [vmem:[%s2473_s29 + $0x6f0] sm:$0xff] }
  0x47   : > { %697 = vst [vmem:[%s2478_s30 + $0x370] sm:$0xff] %v696_v46  ;;  %v700_v48 = vld [vmem:[%s2473_s29 + $0x700] sm:$0xff]  ;;  %v702_v49 = vld [vmem:[%s2473_s29 + $0x710] sm:$0xff]  ;;  %699 = vst [vmem:[%s2478_s30 + $0x378] sm:$0xff] %v698_v47 }
  0x48   : > { %701 = vst [vmem:[%s2478_s30 + $0x380] sm:$0xff] %v700_v48  ;;  %703 = vst [vmem:[%s2478_s30 + $0x388] sm:$0xff] %v702_v49  ;;  %v704_v50 = vld [vmem:[%s2473_s29 + $0x720] sm:$0xff]  ;;  %v706_v51 = vld [vmem:[%s2473_s29 + $0x730] sm:$0xff] }
  0x49   : > { %v708_v52 = vld [vmem:[%s2473_s29 + $0x740] sm:$0xff]  ;;  %705 = vst [vmem:[%s2478_s30 + $0x390] sm:$0xff] %v704_v50  ;;  %707 = vst [vmem:[%s2478_s30 + $0x398] sm:$0xff] %v706_v51  ;;  %v710_v53 = vld [vmem:[%s2473_s29 + $0x750] sm:$0xff] }
  0x4a   : > { %709 = vst [vmem:[%s2478_s30 + $0x3a0] sm:$0xff] %v708_v52  ;;  %v712_v54 = vld [vmem:[%s2473_s29 + $0x760] sm:$0xff]  ;;  %v714_v55 = vld [vmem:[%s2473_s29 + $0x770] sm:$0xff]  ;;  %711 = vst [vmem:[%s2478_s30 + $0x3a8] sm:$0xff] %v710_v53 }
  0x4b   : > { %713 = vst [vmem:[%s2478_s30 + $0x3b0] sm:$0xff] %v712_v54  ;;  %715 = vst [vmem:[%s2478_s30 + $0x3b8] sm:$0xff] %v714_v55  ;;  %v716_v56 = vld [vmem:[%s2473_s29 + $0x780] sm:$0xff]  ;;  %v718_v57 = vld [vmem:[%s2473_s29 + $0x790] sm:$0xff] }
  0x4c   : > { %v720_v58 = vld [vmem:[%s2473_s29 + $0x7a0] sm:$0xff]  ;;  %717 = vst [vmem:[%s2478_s30 + $0x3c0] sm:$0xff] %v716_v56  ;;  %719 = vst [vmem:[%s2478_s30 + $0x3c8] sm:$0xff] %v718_v57  ;;  %v722_v59 = vld [vmem:[%s2473_s29 + $0x7b0] sm:$0xff] }
  0x4d   : > { %721 = vst [vmem:[%s2478_s30 + $0x3d0] sm:$0xff] %v720_v58  ;;  %v724_v60 = vld [vmem:[%s2473_s29 + $0x7c0] sm:$0xff]  ;;  %v726_v61 = vld [vmem:[%s2473_s29 + $0x7d0] sm:$0xff]  ;;  %723 = vst [vmem:[%s2478_s30 + $0x3d8] sm:$0xff] %v722_v59 }
  0x4e   : > { %725 = vst [vmem:[%s2478_s30 + $0x3e0] sm:$0xff] %v724_v60  ;;  %727 = vst [vmem:[%s2478_s30 + $0x3e8] sm:$0xff] %v726_v61  ;;  %v728_v62 = vld [vmem:[%s2473_s29 + $0x7e0] sm:$0xff]  ;;  %v730_v63 = vld [vmem:[%s2473_s29 + $0x7f0] sm:$0xff] }
  0x4f   : > { %729 = vst [vmem:[%s2478_s30 + $0x3f0] sm:$0xff] %v728_v62  ;;  %731 = vst [vmem:[%s2478_s30 + $0x3f8] sm:$0xff] %v730_v63 }
  0x50 PF: > { %p1989_p6 = scmp.ge.s32.totalorder %s2400_s19, 1  ;;  %p752_p7 = scmp.lt.s32.totalorder %s2400_s19, 3 }
  0x52   : > { %p753_p8 = pnand %p1989_p6, %p752_p7 }
  0x53   : > { %s759_s5 = sand.u32 (!%p753_p8), 1, %s2384_s15   ;;  %s1991_s10 = sshll.u32 (!%p753_p8), %s2392_s17, 1 }
  0x54   : > { %756 = sbr.rel (%p753_p8) target bundleno = 440 (0x1b8), region = 70  ;;  %s1990_s6 = sshll.u32 (!%p753_p8), %s759_s5, 10 }
  0x55   : > { %s2741_s9 = scalar_lea.vmem (!%p753_p8), [#allocation3], %s1990_s6  ;;  %p804_p9 = scmp.lt.s32.totalorder (!%p753_p8), %s1991_s10, 3 }
  0x59   : > { %v959_v0 = vlaneseq  ;;  %v2402_v1 = vmov 1966171168   ;;  %v825_v3 = vld [vmem:[%s2928_s0] sm:$0xff]  ;;  %v2173_v9 = vld [vmem:[%s2741_s9 + $0x70] ss:$8 sps:$4 sm:$0xff]   ;;  %s2940_s10 = smov (!%p804_p9, %s1991_s10), 3 }
  0x5a   : > { %v957_v2 = vunpack.c.l.s4 %v2402_v1  ;;  %v2169_v5 = vld [vmem:[%s2741_s9 + $0x74] ss:$8 sps:$4 sm:$0xff]   ;;  %v955_v6 = vcombine.high %v825_v3, %v825_v3  ;;  %v2174_v10 = vld [vmem:[%s2741_s9 + $0x170] ss:$8 sps:$4 sm:$0xff]   ;;  %v2175_v12 = vld [vmem:[%s2741_s9 + $0x64] ss:$8 sps:$4 sm:$0xff]   ;;  %s806_s13 = scalar_lea.vmem %s2930_s2, %s2940_s10  ;;  %s811_s17 = scalar_lea.vmem %s2931_s3, %s2940_s10 }
  0x5b   : > { %v2739_v4 = vshrl.u32 %v959_v0, 7  ;;  %v2171_v8 = vld [vmem:[%s2741_s9 + $0x174] ss:$8 sps:$4 sm:$0xff]   ;;  %1652 = vmatprep.subr.bf16.mxu0 %v2169_v5  ;;  %v2177_v13 = vld [vmem:[%s2741_s9 + $0x164] ss:$8 sps:$4 sm:$0xff]   ;;  %s1994_s21 = sshll.u32 %s2940_s10, 1 }
  0x5c   : > { %v958_v7 = vunpack.c.0.s8 %v957_v2  ;;  %1693 = vmatprep.subr.bf16.mxu1 %v2171_v8  ;;  %1653 = vmatpush1.bf16.msra.mxu0 %v2173_v9  ;;  %v2179_v14 = vld [vmem:[%s2741_s9 + $0x60] ss:$8 sps:$4 sm:$0xff]   ;;  %v2181_v18 = vld [vmem:[%s2741_s9 + $0x54] ss:$8 sps:$4 sm:$0xff]   ;;  %v2185_v22 = vld [vmem:[%s2741_s9 + $0x50] ss:$8 sps:$4 sm:$0xff]   ;;  %s817_s25 = scalar_lea.vmem %s2932_s4, %s1994_s21 }
  0x5d   : > { %1694 = vmatpush1.bf16.msra.mxu1 %v2174_v10  ;;  %1654 = vmatprep.subr.bf16.mxu0 %v2175_v12  ;;  %v2180_v17 = vld [vmem:[%s2741_s9 + $0x160] ss:$8 sps:$4 sm:$0xff]   ;;  %v2183_v21 = vld [vmem:[%s2741_s9 + $0x154] ss:$8 sps:$4 sm:$0xff]   ;;  %v2186_v23 = vld [vmem:[%s2741_s9 + $0x150] ss:$8 sps:$4 sm:$0xff]  }
  0x5e   : > { %v2748_v11 = vsub.s32 %v958_v7, %v2739_v4  ;;  %1695 = vmatprep.subr.bf16.mxu1 %v2177_v13  ;;  %v2187_v24 = vld [vmem:[%s2741_s9 + $0x44] ss:$8 sps:$4 sm:$0xff]   ;;  %v2191_v28 = vld [vmem:[%s2741_s9 + $0x40] ss:$8 sps:$4 sm:$0xff]   ;;  %v2193_v30 = vld [vmem:[%s2741_s9 + $0x34] ss:$8 sps:$4 sm:$0xff]  }
  0x5f   : > { %v2189_v26 = vld [vmem:[%s2741_s9 + $0x144] ss:$8 sps:$4 sm:$0xff]   ;;  %v2192_v29 = vld [vmem:[%s2741_s9 + $0x140] ss:$8 sps:$4 sm:$0xff]   ;;  %v2195_v31 = vld [vmem:[%s2741_s9 + $0x134] ss:$8 sps:$4 sm:$0xff]  }
  0x60   : > { %v2754_v15 = vrot.slane %v825_v3, %v2748_v11  ;;  %v2757_v16 = vrot.slane %v955_v6, %v2748_v11  ;;  %1655 = vmatpush1.bf16.msra.mxu0 %v2179_v14  ;;  %v2197_v32 = vld [vmem:[%s2741_s9 + $0x30] ss:$8 sps:$4 sm:$0xff]   ;;  %v2199_v34 = vld [vmem:[%s2741_s9 + $0x24] ss:$8 sps:$4 sm:$0xff]   ;;  %v2203_v36 = vld [vmem:[%s2741_s9 + $0x20] ss:$8 sps:$4 sm:$0xff]  }
  0x61   : > { %1696 = vmatpush1.bf16.msra.mxu1 %v2180_v17  ;;  %1656 = vmatprep.subr.bf16.mxu0 %v2181_v18  ;;  %v2198_v33 = vld [vmem:[%s2741_s9 + $0x130] ss:$8 sps:$4 sm:$0xff]   ;;  %v2201_v35 = vld [vmem:[%s2741_s9 + $0x124] ss:$8 sps:$4 sm:$0xff]   ;;  %v2204_v37 = vld [vmem:[%s2741_s9 + $0x120] ss:$8 sps:$4 sm:$0xff]  }
  0x62   : > { %v970_v19 = vcombine.high %v2754_v15, %v2754_v15  ;;  %v2765_v20 = vrot.slane %v2757_v16, %v2748_v11  ;;  %1697 = vmatprep.subr.bf16.mxu1 %v2183_v21  ;;  %v2205_v38 = vld [vmem:[%s2741_s9 + $0x14] ss:$8 sps:$4 sm:$0xff]   ;;  %v2209_v40 = vld [vmem:[%s2741_s9 + $0x10] ss:$8 sps:$4 sm:$0xff]   ;;  %v2211_v42 = vld [vmem:[%s2741_s9 + $0x4] ss:$8 sps:$4 sm:$0xff]   ;;  %v971_v14 = vcombine.high %v2757_v16, %v2757_v16 }
  0x63   : > { %v2207_v39 = vld [vmem:[%s2741_s9 + $0x114] ss:$8 sps:$4 sm:$0xff]   ;;  %v2210_v41 = vld [vmem:[%s2741_s9 + $0x110] ss:$8 sps:$4 sm:$0xff]   ;;  %v2213_v43 = vld [vmem:[%s2741_s9 + $0x104] ss:$8 sps:$4 sm:$0xff]  }
  0x64   : > { %v992_v25 = vrot.slane %v970_v19, %v2748_v11  ;;  %1657 = vmatpush1.bf16.msra.mxu0 %v2185_v22  ;;  %v2215_v44 = vld [vmem:[%s2741_s9] ss:$8 sps:$4 sm:$0xff]   ;;  %v2217_v46 = vld [vmem:[%s2741_s9 + $0xf4] ss:$8 sps:$4 sm:$0xff]   ;;  %v2221_v48 = vld [vmem:[%s2741_s9 + $0xf0] ss:$8 sps:$4 sm:$0xff]   ;;  %v978_v19 = vrot.slane %v2754_v15, %v2748_v11 }
  0x65   : > { %1698 = vmatpush1.bf16.msra.mxu1 %v2186_v23  ;;  %1658 = vmatprep.subr.bf16.mxu0 %v2187_v24  ;;  %v2216_v45 = vld [vmem:[%s2741_s9 + $0x100] ss:$8 sps:$4 sm:$0xff]   ;;  %v2219_v47 = vld [vmem:[%s2741_s9 + $0x1f4] ss:$8 sps:$4 sm:$0xff]   ;;  %v2222_v49 = vld [vmem:[%s2741_s9 + $0x1f0] ss:$8 sps:$4 sm:$0xff]   ;;  %v999_v23 = vrot.slane %v971_v14, %v2748_v11 }
  0x66   : > { %1684 = vmatprep.mubr.bf16.mxu0 %v992_v25  ;;  %v1002_v27 = vcombine.high %v992_v25, %v992_v25  ;;  %1699 = vmatprep.subr.bf16.mxu1 %v2189_v26  ;;  %v2223_v50 = vld [vmem:[%s2741_s9 + $0xe4] ss:$8 sps:$4 sm:$0xff]   ;;  %v2227_v52 = vld [vmem:[%s2741_s9 + $0xe0] ss:$8 sps:$4 sm:$0xff]   ;;  %v2229_v54 = vld [vmem:[%s2741_s9 + $0xd4] ss:$8 sps:$4 sm:$0xff]   ;;  %v1000_v24 = vcombine.high %v978_v19, %v978_v19 }
  0x67   : > { %v2225_v51 = vld [vmem:[%s2741_s9 + $0x1e4] ss:$8 sps:$4 sm:$0xff]   ;;  %v2228_v53 = vld [vmem:[%s2741_s9 + $0x1e0] ss:$8 sps:$4 sm:$0xff]   ;;  %v2231_v55 = vld [vmem:[%s2741_s9 + $0x1d4] ss:$8 sps:$4 sm:$0xff]  }
  0x68   : > { %1725 = vmatprep.mubr.bf16.mxu1 %v1002_v27  ;;  %1659 = vmatpush1.bf16.msra.mxu0 %v2191_v28  ;;  %v2233_v56 = vld [vmem:[%s2741_s9 + $0xd0] ss:$8 sps:$4 sm:$0xff]   ;;  %v2235_v58 = vld [vmem:[%s2741_s9 + $0xc4] ss:$8 sps:$4 sm:$0xff]   ;;  %v2239_v60 = vld [vmem:[%s2741_s9 + $0xc0] ss:$8 sps:$4 sm:$0xff]   ;;  %v1003_v27 = vcombine.high %v999_v23, %v999_v23 }
  0x69   : > { %1700 = vmatpush1.bf16.msra.mxu1 %v2192_v29  ;;  %1660 = vmatprep.subr.bf16.mxu0 %v2193_v30  ;;  %v2234_v57 = vld [vmem:[%s2741_s9 + $0x1d0] ss:$8 sps:$4 sm:$0xff]   ;;  %v2237_v59 = vld [vmem:[%s2741_s9 + $0x1c4] ss:$8 sps:$4 sm:$0xff]   ;;  %v2240_v61 = vld [vmem:[%s2741_s9 + $0x1c0] ss:$8 sps:$4 sm:$0xff]  }
  0x6a   : > { %1701 = vmatprep.subr.bf16.mxu1 %v2195_v31  ;;  %v2241_v62 = vld [vmem:[%s2741_s9 + $0xb4] ss:$8 sps:$4 sm:$0xff]   ;;  %v2245_v0 = vld [vmem:[%s2741_s9 + $0xb0] ss:$8 sps:$4 sm:$0xff]   ;;  %v2247_v2 = vld [vmem:[%s2741_s9 + $0xa4] ss:$8 sps:$4 sm:$0xff]  }
  0x6b   : > { %v2243_v63 = vld [vmem:[%s2741_s9 + $0x1b4] ss:$8 sps:$4 sm:$0xff]   ;;  %v2246_v1 = vld [vmem:[%s2741_s9 + $0x1b0] ss:$8 sps:$4 sm:$0xff]   ;;  %v2249_v3 = vld [vmem:[%s2741_s9 + $0x1a4] ss:$8 sps:$4 sm:$0xff]  }
  0x6c   : > { %1661 = vmatpush1.bf16.msra.mxu0 %v2197_v32  ;;  %v2251_v5 = vld [vmem:[%s2741_s9 + $0xa0] ss:$8 sps:$4 sm:$0xff]   ;;  %v2253_v7 = vld [vmem:[%s2741_s9 + $0x94] ss:$8 sps:$4 sm:$0xff]   ;;  %v2257_v9 = vld [vmem:[%s2741_s9 + $0x90] ss:$8 sps:$4 sm:$0xff]  }
  0x6d   : > { %1702 = vmatpush1.bf16.msra.mxu1 %v2198_v33  ;;  %1662 = vmatprep.subr.bf16.mxu0 %v2199_v34  ;;  %v2252_v6 = vld [vmem:[%s2741_s9 + $0x1a0] ss:$8 sps:$4 sm:$0xff]   ;;  %v2255_v8 = vld [vmem:[%s2741_s9 + $0x194] ss:$8 sps:$4 sm:$0xff]   ;;  %v2258_v10 = vld [vmem:[%s2741_s9 + $0x190] ss:$8 sps:$4 sm:$0xff]  }
  0x6e   : > { %1703 = vmatprep.subr.bf16.mxu1 %v2201_v35  ;;  %v2259_v12 = vld [vmem:[%s2741_s9 + $0x84] ss:$8 sps:$4 sm:$0xff]   ;;  %v2263_v17 = vld [vmem:[%s2741_s9 + $0x80] ss:$8 sps:$4 sm:$0xff]   ;;  %v2268_v21 = vld [vmem:[%s2741_s9 + $0x274] ss:$8 sps:$4 sm:$0xff]  }
  0x6f   : > { %v2261_v13 = vld [vmem:[%s2741_s9 + $0x184] ss:$8 sps:$4 sm:$0xff]   ;;  %v2264_v18 = vld [vmem:[%s2741_s9 + $0x180] ss:$8 sps:$4 sm:$0xff]   ;;  %v2271_v22 = vld [vmem:[%s2741_s9 + $0x374] ss:$8 sps:$4 sm:$0xff]  }
  0x70   : > { %1663 = vmatpush1.bf16.msra.mxu0 %v2203_v36  ;;  %v2266_v16 = vld [vmem:[%s2741_s9 + $0x270] ss:$8 sps:$4 sm:$0xff]   ;;  %v2274_v26 = vld [vmem:[%s2741_s9 + $0x264] ss:$8 sps:$4 sm:$0xff]   ;;  %v2272_v28 = vld [vmem:[%s2741_s9 + $0x260] ss:$8 sps:$4 sm:$0xff]  }
  0x71   : > { %1704 = vmatpush1.bf16.msra.mxu1 %v2204_v37  ;;  %1664 = vmatprep.subr.bf16.mxu0 %v2205_v38  ;;  %v2269_v25 = vld [vmem:[%s2741_s9 + $0x370] ss:$8 sps:$4 sm:$0xff]   ;;  %v2277_v15 = vld [vmem:[%s2741_s9 + $0x364] ss:$8 sps:$4 sm:$0xff]   ;;  %v2275_v29 = vld [vmem:[%s2741_s9 + $0x360] ss:$8 sps:$4 sm:$0xff]  }
  0x72   : > { %1705 = vmatprep.subr.bf16.mxu1 %v2207_v39  ;;  %v2280_v11 = vld [vmem:[%s2741_s9 + $0x254] ss:$8 sps:$4 sm:$0xff]   ;;  %v2278_v31 = vld [vmem:[%s2741_s9 + $0x250] ss:$8 sps:$4 sm:$0xff]   ;;  %v2286_v33 = vld [vmem:[%s2741_s9 + $0x244] ss:$8 sps:$4 sm:$0xff]  }
  0x73   : > { %v2283_v30 = vld [vmem:[%s2741_s9 + $0x354] ss:$8 sps:$4 sm:$0xff]   ;;  %v2281_v32 = vld [vmem:[%s2741_s9 + $0x350] ss:$8 sps:$4 sm:$0xff]   ;;  %v2289_v34 = vld [vmem:[%s2741_s9 + $0x344] ss:$8 sps:$4 sm:$0xff]  }
  0x74   : > { %1665 = vmatpush1.bf16.msra.mxu0 %v2209_v40  ;;  %v2284_v35 = vld [vmem:[%s2741_s9 + $0x240] ss:$8 sps:$4 sm:$0xff]   ;;  %v2292_v37 = vld [vmem:[%s2741_s9 + $0x234] ss:$8 sps:$4 sm:$0xff]   ;;  %v2290_v39 = vld [vmem:[%s2741_s9 + $0x230] ss:$8 sps:$4 sm:$0xff]  }
  0x75   : > { %1706 = vmatpush1.bf16.msra.mxu1 %v2210_v41  ;;  %1666 = vmatprep.subr.bf16.mxu0 %v2211_v42  ;;  %v2287_v36 = vld [vmem:[%s2741_s9 + $0x340] ss:$8 sps:$4 sm:$0xff]   ;;  %v2295_v38 = vld [vmem:[%s2741_s9 + $0x334] ss:$8 sps:$4 sm:$0xff]   ;;  %v2293_v40 = vld [vmem:[%s2741_s9 + $0x330] ss:$8 sps:$4 sm:$0xff]  }
  0x76   : > { %1707 = vmatprep.subr.bf16.mxu1 %v2213_v43  ;;  %v2298_v41 = vld [vmem:[%s2741_s9 + $0x224] ss:$8 sps:$4 sm:$0xff]   ;;  %v2296_v43 = vld [vmem:[%s2741_s9 + $0x220] ss:$8 sps:$4 sm:$0xff]  }
  0x77   : > { %v2301_v42 = vld [vmem:[%s2741_s9 + $0x324] ss:$8 sps:$4 sm:$0xff]   ;;  %v2347_v14 = vld [vmem:[%s2741_s9 + $0x3a0] ss:$8 sps:$4 sm:$0xff]  }
  0x78   : > { %1667 = vmatpush1.bf16.msra.mxu0 %v2215_v44  ;;  %v2299_v44 = vld [vmem:[%s2741_s9 + $0x320] ss:$8 sps:$4 sm:$0xff]  }
  0x79   : > { %1708 = vmatpush1.bf16.msra.mxu1 %v2216_v45  ;;  %1668 = vmatprep.subr.bf16.mxu0 %v2217_v46  ;;  %v2304_v45 = vld [vmem:[%s2741_s9 + $0x214] ss:$8 sps:$4 sm:$0xff]  }
  0x7a   : > { %1709 = vmatprep.subr.bf16.mxu1 %v2219_v47  ;;  %v2307_v46 = vld [vmem:[%s2741_s9 + $0x314] ss:$8 sps:$4 sm:$0xff]   ;;  %v2302_v47 = vld [vmem:[%s2741_s9 + $0x210] ss:$8 sps:$4 sm:$0xff]  }
  0x7c   : > { %1669 = vmatpush2.bf16.msra.mxu0 %v2221_v48  ;;  %v2305_v48 = vld [vmem:[%s2741_s9 + $0x310] ss:$8 sps:$4 sm:$0xff]  }
  0x7d   : > { %1710 = vmatpush2.bf16.msra.mxu1 %v2222_v49  ;;  %1670 = vmatprep.subr.bf16.mxu0 %v2223_v50  ;;  %v2310_v49 = vld [vmem:[%s2741_s9 + $0x204] ss:$8 sps:$4 sm:$0xff]  }
  0x7e   : > { %1711 = vmatprep.subr.bf16.mxu1 %v2225_v51  ;;  %v2313_v50 = vld [vmem:[%s2741_s9 + $0x304] ss:$8 sps:$4 sm:$0xff]   ;;  %v2308_v51 = vld [vmem:[%s2741_s9 + $0x200] ss:$8 sps:$4 sm:$0xff]  }
  0x80   : > { %1671 = vmatpush2.bf16.msra.mxu0 %v2227_v52  ;;  %v2311_v52 = vld [vmem:[%s2741_s9 + $0x300] ss:$8 sps:$4 sm:$0xff]  }
  0x81   : > { %1712 = vmatpush2.bf16.msra.mxu1 %v2228_v53  ;;  %1672 = vmatprep.subr.bf16.mxu0 %v2229_v54  ;;  %v2316_v53 = vld [vmem:[%s2741_s9 + $0x2f4] ss:$8 sps:$4 sm:$0xff]  }
  0x82   : > { %1713 = vmatprep.subr.bf16.mxu1 %v2231_v55  ;;  %v2319_v54 = vld [vmem:[%s2741_s9 + $0x3f4] ss:$8 sps:$4 sm:$0xff]   ;;  %v2314_v55 = vld [vmem:[%s2741_s9 + $0x2f0] ss:$8 sps:$4 sm:$0xff]  }
  0x84   : > { %1673 = vmatpush2.bf16.msra.mxu0 %v2233_v56  ;;  %v2317_v56 = vld [vmem:[%s2741_s9 + $0x3f0] ss:$8 sps:$4 sm:$0xff]  }
  0x85   : > { %1714 = vmatpush2.bf16.msra.mxu1 %v2234_v57  ;;  %1674 = vmatprep.subr.bf16.mxu0 %v2235_v58  ;;  %v2322_v57 = vld [vmem:[%s2741_s9 + $0x2e4] ss:$8 sps:$4 sm:$0xff]  }
  0x86   : > { %1715 = vmatprep.subr.bf16.mxu1 %v2237_v59  ;;  %v2325_v58 = vld [vmem:[%s2741_s9 + $0x3e4] ss:$8 sps:$4 sm:$0xff]   ;;  %v2320_v59 = vld [vmem:[%s2741_s9 + $0x2e0] ss:$8 sps:$4 sm:$0xff]  }
  0x88   : > { %1675 = vmatpush2.bf16.msra.mxu0 %v2239_v60  ;;  %v2323_v60 = vld [vmem:[%s2741_s9 + $0x3e0] ss:$8 sps:$4 sm:$0xff]  }
  0x89   : > { %1716 = vmatpush2.bf16.msra.mxu1 %v2240_v61  ;;  %1676 = vmatprep.subr.bf16.mxu0 %v2241_v62  ;;  %v2328_v61 = vld [vmem:[%s2741_s9 + $0x2d4] ss:$8 sps:$4 sm:$0xff]  }
  0x8a   : > { %1717 = vmatprep.subr.bf16.mxu1 %v2243_v63  ;;  %v2331_v62 = vld [vmem:[%s2741_s9 + $0x3d4] ss:$8 sps:$4 sm:$0xff]   ;;  %v2326_v63 = vld [vmem:[%s2741_s9 + $0x2d0] ss:$8 sps:$4 sm:$0xff]  }
  0x8c   : > { %1677 = vmatpush2.bf16.msra.mxu0 %v2245_v0  ;;  %v2329_v0 = vld [vmem:[%s2741_s9 + $0x3d0] ss:$8 sps:$4 sm:$0xff]  }
  0x8d   : > { %1718 = vmatpush2.bf16.msra.mxu1 %v2246_v1  ;;  %1678 = vmatprep.subr.bf16.mxu0 %v2247_v2  ;;  %v2334_v1 = vld [vmem:[%s2741_s9 + $0x2c4] ss:$8 sps:$4 sm:$0xff]  }
  0x8e   : > { %1719 = vmatprep.subr.bf16.mxu1 %v2249_v3  ;;  %v2337_v2 = vld [vmem:[%s2741_s9 + $0x3c4] ss:$8 sps:$4 sm:$0xff]   ;;  %v2332_v3 = vld [vmem:[%s2741_s9 + $0x2c0] ss:$8 sps:$4 sm:$0xff]  }
  0x90   : > { %1679 = vmatpush2.bf16.msra.mxu0 %v2251_v5  ;;  %v2335_v5 = vld [vmem:[%s2741_s9 + $0x3c0] ss:$8 sps:$4 sm:$0xff]  }
  0x91   : > { %1720 = vmatpush2.bf16.msra.mxu1 %v2252_v6  ;;  %1680 = vmatprep.subr.bf16.mxu0 %v2253_v7  ;;  %v2340_v6 = vld [vmem:[%s2741_s9 + $0x2b4] ss:$8 sps:$4 sm:$0xff]  }
  0x92   : > { %1721 = vmatprep.subr.bf16.mxu1 %v2255_v8  ;;  %v2343_v7 = vld [vmem:[%s2741_s9 + $0x3b4] ss:$8 sps:$4 sm:$0xff]   ;;  %v2338_v8 = vld [vmem:[%s2741_s9 + $0x2b0] ss:$8 sps:$4 sm:$0xff]  }
  0x94   : > { %1681 = vmatpush2.bf16.msra.mxu0 %v2257_v9  ;;  %v2341_v9 = vld [vmem:[%s2741_s9 + $0x3b0] ss:$8 sps:$4 sm:$0xff]  }
  0x95   : > { %1722 = vmatpush2.bf16.msra.mxu1 %v2258_v10  ;;  %1682 = vmatprep.subr.bf16.mxu0 %v2259_v12  ;;  %v2346_v10 = vld [vmem:[%s2741_s9 + $0x2a4] ss:$8 sps:$4 sm:$0xff]  }
  0x96   : > { %1723 = vmatprep.subr.bf16.mxu1 %v2261_v13  ;;  %v2349_v12 = vld [vmem:[%s2741_s9 + $0x3a4] ss:$8 sps:$4 sm:$0xff]   ;;  %v2344_v13 = vld [vmem:[%s2741_s9 + $0x2a0] ss:$8 sps:$4 sm:$0xff]  }
  0x98   : > { %1683 = vmatpush2.bf16.msra.mxu0 %v2263_v17  ;;  %v2352_v17 = vld [vmem:[%s2741_s9 + $0x294] ss:$8 sps:$4 sm:$0xff]  }
  0x99   : > { %1724 = vmatpush2.bf16.msra.mxu1 %v2264_v18  ;;  %1734 = vmatprep.subr.bf16.mxu0 %v2268_v21  ;;  %v2355_v18 = vld [vmem:[%s2741_s9 + $0x394] ss:$8 sps:$4 sm:$0xff]   ;;  %v2353_v21 = vld [vmem:[%s2741_s9 + $0x390] ss:$8 sps:$4 sm:$0xff]  }
  0x9a   : > { %1775 = vmatprep.subr.bf16.mxu1 %v2271_v22  ;;  %v2358_v22 = vld [vmem:[%s2741_s9 + $0x284] ss:$8 sps:$4 sm:$0xff]  }
  0x9b   : > { %1685 = vmatmul.mubr.bf16.vlgmr.msra.gmra.mxu0 %v978_v19  ;;  %v2350_v19 = vld [vmem:[%s2741_s9 + $0x290] ss:$8 sps:$4 sm:$0xff]  }
  0x9c   : > { %1726 = vmatmul.mubr.bf16.vlgmr.msra.gmra.mxu1 %v1000_v24  ;;  %1735 = vmatpush1.bf16.msra.mxu0 %v2266_v16  ;;  %v2356_v24 = vld [vmem:[%s2741_s9 + $0x280] ss:$8 sps:$4 sm:$0xff]  }
  0x9d   : > { %1776 = vmatpush1.bf16.msra.mxu1 %v2269_v25  ;;  %1736 = vmatprep.subr.bf16.mxu0 %v2274_v26  ;;  %v2359_v16 = vld [vmem:[%s2741_s9 + $0x380] ss:$8 sps:$4 sm:$0xff]   ;;  %v1001_v25 = vcombine.high %v2765_v20, %v2765_v20  ;;  %v2403_v26 = vmov 0.0  }
  0x9e   : > { %1777 = vmatprep.subr.bf16.mxu1 %v2277_v15  ;;  %1766 = vmatprep.mubr.bf16.mxu0 %v999_v23  ;;  %v2361_v23 = vld [vmem:[%s2741_s9 + $0x384] ss:$8 sps:$4 sm:$0xff]   ;;  %823 = vst [vmem:[#allocation2] sm:$0xf] %v2403_v26 }
  0x9f   : > { %1807 = vmatprep.mubr.bf16.mxu1 %v1003_v27 }
  0xa0   : > { %1737 = vmatpush1.bf16.msra.mxu0 %v2272_v28 }
  0xa1   : > { %1778 = vmatpush1.bf16.msra.mxu1 %v2275_v29  ;;  %1738 = vmatprep.subr.bf16.mxu0 %v2280_v11 }
  0xa2   : > { %1779 = vmatprep.subr.bf16.mxu1 %v2283_v30 }
  0xa4   : > { %1739 = vmatpush1.bf16.msra.mxu0 %v2278_v31 }
  0xa5   : > { %1780 = vmatpush1.bf16.msra.mxu1 %v2281_v32  ;;  %1740 = vmatprep.subr.bf16.mxu0 %v2286_v33 }
  0xa6   : > { %1781 = vmatprep.subr.bf16.mxu1 %v2289_v34  ;;  %v2404_v34 = vmov 1983009808  }
  0xa8   : > { %1741 = vmatpush1.bf16.msra.mxu0 %v2284_v35  ;;  %v1820_v35 = vunpack.c.l.s4 %v2404_v34 }
  0xa9   : > { %1782 = vmatpush1.bf16.msra.mxu1 %v2287_v36  ;;  %1742 = vmatprep.subr.bf16.mxu0 %v2292_v37 }
  0xaa   : > { %1783 = vmatprep.subr.bf16.mxu1 %v2295_v38  ;;  %v1821_v37 = vunpack.c.0.s8 %v1820_v35 }
  0xac   : > { %1743 = vmatpush1.bf16.msra.mxu0 %v2290_v39 }
  0xad   : > { %1784 = vmatpush1.bf16.msra.mxu1 %v2293_v40  ;;  %1744 = vmatprep.subr.bf16.mxu0 %v2298_v41 }
  0xae   : > { %1785 = vmatprep.subr.bf16.mxu1 %v2301_v42 }
  0xb0   : > { %1745 = vmatpush1.bf16.msra.mxu0 %v2296_v43  ;;  %v1824_v43 = vsub.s32 %v1821_v37, %v2739_v4 }
  0xb1   : > { %1786 = vmatpush1.bf16.msra.mxu1 %v2299_v44  ;;  %1746 = vmatprep.subr.bf16.mxu0 %v2304_v45 }
  0xb2   : > { %1787 = vmatprep.subr.bf16.mxu1 %v2307_v46 }
  0xb4   : > { %1747 = vmatpush1.bf16.msra.mxu0 %v2302_v47 }
  0xb5   : > { %1788 = vmatpush1.bf16.msra.mxu1 %v2305_v48  ;;  %1748 = vmatprep.subr.bf16.mxu0 %v2310_v49  ;;  %v1837_v48 = vsub.s32 0, %v2739_v4  ;;  %v1841_v49 = vsub.s32 1, %v2739_v4 }
  0xb6   : > { %1789 = vmatprep.subr.bf16.mxu1 %v2313_v50  ;;  %v1833_v50 = vld [vmem:[%s806_s13] sm:$0x3] }
  0xb8   : > { %1749 = vmatpush1.bf16.msra.mxu0 %v2308_v51 }
  0xb9   : > { %1790 = vmatpush1.bf16.msra.mxu1 %v2311_v52  ;;  %1750 = vmatprep.subr.bf16.mxu0 %v2316_v53 }
  0xba   : > { %1791 = vmatprep.subr.bf16.mxu1 %v2319_v54  ;;  %v824_v54 = vld [vmem:[#allocation2] sm:$0xf] }
  0xbc   : > { %1751 = vmatpush2.bf16.msra.mxu0 %v2314_v55 }
  0xbd   : > { %1792 = vmatpush2.bf16.msra.mxu1 %v2317_v56  ;;  %1752 = vmatprep.subr.bf16.mxu0 %v2322_v57  ;;  %v1838_v56 = vrot.slane %v1833_v50, %v1837_v48  ;;  %v1842_v57 = vrot.slane %v1833_v50, %v1841_v49 }
  0xbe   : > { %1793 = vmatprep.subr.bf16.mxu1 %v2325_v58 }
  0xc0   : > { %1753 = vmatpush2.bf16.msra.mxu0 %v2320_v59  ;;  %v1856_v59 = vld [vmem:[%s811_s17] sm:$0x3] }
  0xc1   : > { %1794 = vmatpush2.bf16.msra.mxu1 %v2323_v60  ;;  %1754 = vmatprep.subr.bf16.mxu0 %v2328_v61  ;;  %v1843_v60 = vcombine.low %v1838_v56, %v1842_v57  ;;  %v1861_v61 = vrot.slane %v1856_v59, %v1837_v48 }
  0xc2   : > { %1795 = vmatprep.subr.bf16.mxu1 %v2331_v62  ;;  %v1865_v62 = vrot.slane %v1856_v59, %v1841_v49 }
  0xc3   : > { %v1850_v4 = vrot.slane %v1843_v60, %v1824_v43 }
  0xc4   : > { %1755 = vmatpush2.bf16.msra.mxu0 %v2326_v63  ;;  %v1866_v63 = vcombine.low %v1861_v61, %v1865_v62 }
  0xc5   : > { %1796 = vmatpush2.bf16.msra.mxu1 %v2329_v0  ;;  %1756 = vmatprep.subr.bf16.mxu0 %v2334_v1 }
  0xc6   : > { %1797 = vmatprep.subr.bf16.mxu1 %v2337_v2  ;;  %v1873_v2 = vrot.slane %v1866_v63, %v1824_v43 }
  0xc8   : > { %1757 = vmatpush2.bf16.msra.mxu0 %v2332_v3 }
  0xc9   : > { %1798 = vmatpush2.bf16.msra.mxu1 %v2335_v5  ;;  %1758 = vmatprep.subr.bf16.mxu0 %v2340_v6 }
  0xca   : > { %1799 = vmatprep.subr.bf16.mxu1 %v2343_v7 }
  0xcc   : > { %1759 = vmatpush2.bf16.msra.mxu0 %v2338_v8 }
  0xcd   : > { %1800 = vmatpush2.bf16.msra.mxu1 %v2341_v9  ;;  %1760 = vmatprep.subr.bf16.mxu0 %v2346_v10 }
  0xce   : > { %1801 = vmatprep.subr.bf16.mxu1 %v2349_v12 }
  0xd0   : > { %1761 = vmatpush2.bf16.msra.mxu0 %v2344_v13 }
  0xd1   : > { %1802 = vmatpush2.bf16.msra.mxu1 %v2347_v14  ;;  %1762 = vmatprep.subr.bf16.mxu0 %v2352_v17 }
  0xd2   : > { %1803 = vmatprep.subr.bf16.mxu1 %v2355_v18 }
  0xd4   : > { %1763 = vmatpush2.bf16.msra.mxu0 %v2350_v19 }
  0xd5   : > { %1804 = vmatpush2.bf16.msra.mxu1 %v2353_v21  ;;  %1764 = vmatprep.subr.bf16.mxu0 %v2358_v22 }
  0xd6   : > { %1805 = vmatprep.subr.bf16.mxu1 %v2361_v23 }
  0xd8   : > { %1765 = vmatpush2.bf16.msra.mxu0 %v2356_v24 }
  0xd9   : > { %1806 = vmatpush2.bf16.msra.mxu1 %v2359_v16 }
  0xdb   : > { %1767 = vmatmul.mubr.bf16.vlgmr.msra.gmra.mxu0 %v2765_v20 }
  0xdc   : > { %1808 = vmatmul.mubr.bf16.vlgmr.msra.gmra.mxu1 %v1001_v25 }
 0x15b   : > { %v1686_v15 = vpop.f32.mrf.mxu0 }
 0x15c   : > { %v1727_v27 = vpop.f32.mrf.mxu1 }
 0x15d   : > { %v1728_v28 = vadd.f32 %v1727_v27, %v1686_v15  ;;  %v1688_v29 = vpop.f32.mrf.mxu0 }
 0x15e   : > { %v1729_v11 = vpop.f32.mrf.mxu1 }
 0x15f   : > { %v1690_v30 = vpop.f32.mrf.mxu0  ;;  %v1730_v38 = vadd.f32 %v1729_v11, %v1688_v29 }
 0x160   : > { %v1731_v31 = vpop.f32.mrf.mxu1 }
 0x161   : > { %v1691_v32 = vpop.f32.mrf.mxu0 }
 0x162   : > { %v1732_v33 = vpop.f32.mrf.mxu1 }
 0x19b   : > { %v1768_v20 = vpop.f32.mrf.mxu0 }
 0x19c   : > { %v1809_v36 = vpop.f32.mrf.mxu1  ;;  %v1769_v39 = vadd.f32 %v1768_v20, %v1728_v28 }
 0x19d   : > { %v1770_v40 = vpop.f32.mrf.mxu0 }
 0x19e   : > { %v1811_v41 = vpop.f32.mrf.mxu1  ;;  %v1771_v42 = vadd.f32 %v1770_v40, %v1730_v38  ;;  %v1810_v46 = vadd.f32 %v1809_v36, %v1769_v39 }
 0x19f   : > { %v1772_v44 = vpop.f32.mrf.mxu0 }
 0x1a0   : > { %v1813_v45 = vpop.f32.mrf.mxu1  ;;  %v1812_v47 = vadd.f32 %v1811_v41, %v1771_v42 }
 0x1a1   : > { %v1773_v51 = vpop.f32.mrf.mxu0 }
 0x1a2   : > { %v1814_v52 = vpop.f32.mrf.mxu1  ;;  %v1818_v53 = vcombine.low %v1810_v46, %v1812_v47 }
 0x1a4   : > { %v1825_v55 = vrot.slane %v1818_v53, %v1824_v43 }
 0x1a6   : > { %v1827_v58 = vadd.f32 %v1825_v55, %v824_v54 }
 0x1a8   : > { %1828 = vst [vmem:[#allocation2] sm:$0xf] %v1827_v58 }
 0x1af   : > { %v1832_v0 = vld [vmem:[#allocation2] sm:$0xf] }
 0x1b0   : > { %v1852_v1 = vadd.f32 %v1850_v4, %v1832_v0 }
 0x1b2   : > { %vm1853_vm0 = vcmp.ge.f32.partialorder %v1852_v1, 0.0  ;;  %v1854_v3 = vmul.f32 0.2, %v1852_v1 }
 0x1b4   : > { %v1855_v5 = vsel %vm1853_vm0, %v1852_v1, %v1854_v3 }
 0x1b5   : > { %v1875_v6 = vmul.f32 %v1873_v2, %v1855_v5 }
 0x1b7   : > { %1876 = vst [vmem:[%s817_s25] sm:$0xf] %v1875_v6 }
 0x1b8 PF: > { %s14_s19 = sadd.s32 1, %s2400_s19   ;;  %s2933_s15 = smov %s2388_s16 }
 0x1b9   : > { %p11_p10 = scmp.ge.s32.totalorder %s14_s19, 4   ;;  %s2934_s16 = smov %s2465_s23 }
 0x1ba   : > { %s2935_s17 = smov %s2396_s18  ;;  %s2936_s18 = smov %s2938_s20 }
 0x1bb   :  { %13 = sbr.rel (!%p11_p10) target bundleno = 3 (0x3), region = 126 }

</bundles_post_ra>
